<compile_context>
chip_gen: v5e
topology: v5e:2x2
jax: 0.10.0
libtpu: 0.0.40
codegen_flags: <defaults>
</compile_context>

<pallas_src>
import functools

import jax
import jax.numpy as jnp
from jax.experimental import pallas as pl
from jax.experimental.pallas import tpu as pltpu


# bf16 MXU operands (f32 accumulation) on all generations; the reference used
# for the correctness check applies the same per-conv operand casts.
MXU_DTYPE = jnp.bfloat16


# ----------------------------------------------------------------------------
# Fused kernel: one batch chunk per grid step, whole network in VMEM.
# Layout: activations (channels, pixels), pixels = padded-flat image(s) on the
# lane axis; x / staging buffers carry an extra SH-lane zero margin at both
# ends so a 3x3 tap is just a static lane-offset slice.
# ----------------------------------------------------------------------------
def _fused_coupling_kernel(
    x_ref, cb_ref, inv_ref, brd_ref,
    inw_ref, inb_ref,
    w1_ref, b1_ref, w2_ref, b2_ref, w3_ref, b3_ref,
    outw_ref, outb_ref, coef_ref,
    out_ref,
    hbuf, slab_f,
    *, NQ, SH, Wp, C, F, n_blocks, mxu_dtype):
    f32 = jnp.float32
    shifts = [dh * Wp + dw for dh in (-1, 0, 1) for dw in (-1, 0, 1)]

    # Zero ONLY the 2*SH shift margins of the staging buffer; its interior is
    # fully overwritten before every 3x3 conv that reads it.  (Do NOT guard
    # this with program_id==0: with a "parallel" grid axis the second core of
    # a 2-core part never executes step 0.)
    hbuf[:, :SH] = jnp.zeros((F, SH), mxu_dtype)
    hbuf[:, SH + NQ:] = jnp.zeros((F, SH), mxu_dtype)

    def conv3x3_f(w, b, relu):
        # im2col: 9 lane-shifted slices -> one (Cout, 9F) x (9F, NQ) MXU matmul.
        for k, s in enumerate(shifts):
            slab_f[k * F:(k + 1) * F, :] = hbuf[:, SH + s:SH + s + NQ]
        out = jnp.dot(w, slab_f[...], preferred_element_type=f32) + b
        return jnp.maximum(out, 0.0) if relu else out

    def conv1x1(h, w, b):
        out = jnp.dot(w, h.astype(mxu_dtype), preferred_element_type=f32) + b
        return jnp.maximum(out, 0.0)

    brd = jnp.broadcast_to(brd_ref[...], (F, NQ))     # hoisted sublane broadcast
    x_full = x_ref[0]                                 # (C, NQ + 2*SH)  f32
    x_in = x_full[:, SH:SH + NQ]                      # (C, NQ) original x
    xm = x_full * cb_ref[...]                         # checkerboard pre-mask

    # Input conv (3x3, C -> F, ReLU).  C is tiny, so the im2col slab is built
    # as a value (f32 slices, one bf16 cast) instead of a scratch buffer.
    slab0 = jnp.concatenate(
        [xm[:, SH + s:SH + s + NQ] for s in shifts], axis=0).astype(mxu_dtype)
    h = jnp.maximum(
        jnp.dot(inw_ref[...], slab0, preferred_element_type=f32) + inb_ref[...],
        0.0)                                          # (F, NQ) f32

    # Residual blocks: 1x1 -> ReLU -> 3x3 -> ReLU -> 1x1 -> ReLU, + skip.
    # The border mask is applied only where zero-padding semantics require it
    # (at the stagings feeding a 3x3 conv); ring values elsewhere are
    # neutralized by `inv` in the coupling math and by the final crop.
    for bi in range(n_blocks):
        h1 = conv1x1(h, w1_ref[bi], b1_ref[bi])
        hbuf[:, SH:SH + NQ] = (h1 * brd).astype(mxu_dtype)
        h2 = conv3x3_f(w2_ref[bi], b2_ref[bi], True)
        h = conv1x1(h2, w3_ref[bi], b3_ref[bi]) + h

    # Output conv (3x3, F -> 2C, no ReLU).
    hbuf[:, SH:SH + NQ] = (h * brd).astype(mxu_dtype)
    st = conv3x3_f(outw_ref[...], outb_ref[...], False)   # (2C, NQ) f32

    # Affine coupling; `inv` = (1 - mask), zero on the padding ring.
    inv = inv_ref[...]
    ls = (coef_ref[0] * jnp.tanh(st[:C, :]) + coef_ref[1]) * inv
    z = x_in * jnp.exp(ls) + st[C:, :] * inv
    out_ref[0] = jnp.concatenate([z, ls], axis=0).astype(out_ref.dtype)


# ----------------------------------------------------------------------------
# Host-side helpers (run once at trace time; tiny).
# ----------------------------------------------------------------------------
def _grid_steps(batch):
    """Grid steps over the batch: 1 (whole batch fused onto lanes) on
    single-TensorCore parts (v5e / v6e); 2 (one chunk per core, 'parallel'
    grid axis) on 2-core parts (v4 / v5p / v7x)."""
    try:
        kind = jax.devices()[0].device_kind.lower()
    except Exception:
        kind = ""
    single_core = any(t in kind for t in
                      ("v5e", "v5 lite", "v5lite", "v6e", "v6 lite", "v6lite"))
    if single_core or batch < 2 or batch % 2 != 0:
        return 1
    return 2


def _pack_weights(params, dtype):
    def c3(w):   # (3,3,Cin,Cout) -> (Cout, 9*Cin); rows tap-major, cin-minor
        co = w.shape[3]
        return jnp.transpose(w, (3, 0, 1, 2)).reshape(co, -1).astype(dtype)

    def c1(w):   # (1,1,Cin,Cout) -> (Cout, Cin)
        return jnp.transpose(w[0, 0], (1, 0)).astype(dtype)

    def bias(b):  # (Cout,) -> (Cout, 1), stays f32 (added post-accumulation)
        return b.reshape(-1, 1).astype(jnp.float32)

    blocks = params["blocks"]
    return dict(
        in_w=c3(params["in_w"]), in_b=bias(params["in_b"]),
        w1=jnp.stack([c1(b["w1"]) for b in blocks]),
        b1=jnp.stack([bias(b["b1"]) for b in blocks]),
        w2=jnp.stack([c3(b["w2"]) for b in blocks]),
        b2=jnp.stack([bias(b["b2"]) for b in blocks]),
        w3=jnp.stack([c1(b["w3"]) for b in blocks]),
        b3=jnp.stack([bias(b["b3"]) for b in blocks]),
        out_w=c3(params["out_w"]), out_b=bias(params["out_b"]))


def _make_masks(H, W, C, NB, SH, top_condition):
    Hp, Wp = H + 2, W + 2
    cb_hw = ((int(top_condition) + jnp.arange(H)[:, None] +
              jnp.arange(W)[None, :]) % 2).astype(jnp.float32)
    cb_p = jnp.pad(cb_hw, 1).reshape(-1)                        # (Q,) 0 on ring
    interior = jnp.pad(jnp.ones((H, W), jnp.float32), 1).reshape(-1)
    inv_p = (1.0 - cb_p) * interior                             # 0 on ring
    NQ = NB * Hp * Wp
    cb = jnp.broadcast_to(jnp.pad(jnp.tile(cb_p, NB), (SH, SH))[None, :],
                          (C, NQ + 2 * SH))
    inv = jnp.broadcast_to(jnp.tile(inv_p, NB)[None, :], (C, NQ))
    brd = jnp.tile(interior, NB)[None, :]                       # (1, NQ)
    return cb, inv, brd


# ----------------------------------------------------------------------------
# Forward pass (single pallas_call).
# ----------------------------------------------------------------------------
def coupling_forward(x_nchw, params, scale, shift, top_condition=True,
                     mxu_dtype=MXU_DTYPE):
    N, C, H, W = x_nchw.shape
    F = params["in_w"].shape[-1]
    n_blocks = len(params["blocks"])
    Hp, Wp = H + 2, W + 2
    Q = Hp * Wp
    SH = Wp + 1                      # max |dh*Wp + dw| shift margin

    nsteps = _grid_steps(N)
    NB = N // nsteps                 # images per grid step (folded onto lanes)
    NQ = NB * Q
    PTOT = NQ + 2 * SH

    pw = _pack_weights(params, mxu_dtype)
    cb, inv, brd = _make_masks(H, W, C, NB, SH, top_condition)

    # NCHW -> channel-major padded-flat; batch chunk folded onto the lane axis.
    xp = jnp.pad(x_nchw, ((0, 0), (0, 0), (1, 1), (1, 1))).reshape(N, C, Q)
    xp = xp.reshape(nsteps, NB, C, Q).transpose(0, 2, 1, 3).reshape(nsteps, C, NQ)
    xp = jnp.pad(xp, ((0, 0), (0, 0), (SH, SH)))                # (nsteps, C, PTOT)

    coef = jnp.concatenate([scale.reshape(1), shift.reshape(1)]).astype(jnp.float32)

    kern = functools.partial(_fused_coupling_kernel, NQ=NQ, SH=SH, Wp=Wp,
                             C=C, F=F, n_blocks=n_blocks, mxu_dtype=mxu_dtype)

    def full(a):   # whole-array block, invariant across the grid -> fetched once
        return pl.BlockSpec(a.shape, lambda s, nd=a.ndim: (0,) * nd)

    in_specs = [
        pl.BlockSpec((1, C, PTOT), lambda s: (s, 0, 0)),        # x
        full(cb), full(inv), full(brd),
        full(pw["in_w"]), full(pw["in_b"]),
        full(pw["w1"]), full(pw["b1"]),
        full(pw["w2"]), full(pw["b2"]),
        full(pw["w3"]), full(pw["b3"]),
        full(pw["out_w"]), full(pw["out_b"]),
        pl.BlockSpec(memory_space=pltpu.MemorySpace.SMEM),      # [scale, shift]
    ]
    out_spec = pl.BlockSpec((1, 2 * C, NQ), lambda s: (s, 0, 0))

    out = pl.pallas_call(
        kern,
        out_shape=jax.ShapeDtypeStruct((nsteps, 2 * C, NQ), jnp.float32),
        grid=(nsteps,),
        in_specs=in_specs,
        out_specs=out_spec,
        scratch_shapes=[
            pltpu.VMEM((F, PTOT), mxu_dtype),      # zero-margined hidden staging
            pltpu.VMEM((9 * F, NQ), mxu_dtype),    # im2col slab for F-channel 3x3s
        ],
        compiler_params=pltpu.CompilerParams(
            dimension_semantics=("parallel",)),
    )(xp, cb, inv, brd, pw["in_w"], pw["in_b"], pw["w1"], pw["b1"],
      pw["w2"], pw["b2"], pw["w3"], pw["b3"], pw["out_w"], pw["out_b"], coef)

    # (nsteps, 2C, NQ) -> (N, 2C, Hp, Wp) -> crop padding ring -> split z / ls.
    out = out.reshape(nsteps, 2 * C, NB, Q).transpose(0, 2, 1, 3)
    out = out.reshape(N, 2 * C, Hp, Wp)[:, :, 1:-1, 1:-1]
    return out[:, :C], out[:, C:]


# ----------------------------------------------------------------------------
# Deterministic parameter init (weight_norm: w = g * v / ||v||, with g := ||v||
# at init, i.e. the reparameterization folds to plain conv weights).
# ----------------------------------------------------------------------------
def init_params(key, in_ch, filters, blocks):
    def wn_conv(k, kh, kw, cin, cout):
        kv, kb = jax.random.split(k)
        v = 0.05 * jax.random.normal(kv, (kh, kw, cin, cout), jnp.float32)
        norm = jnp.sqrt(jnp.sum(v * v, axis=(0, 1, 2), keepdims=True))
        w = norm * v / norm
        b = 0.05 * jax.random.normal(kb, (cout,), jnp.float32)
        return w, b

    keys = jax.random.split(key, 2 + 3 * blocks)
    params = {}
    params["in_w"], params["in_b"] = wn_conv(keys[0], 3, 3, in_ch, filters)
    blks = []
    for i in range(blocks):
        w1, b1 = wn_conv(keys[2 + 3 * i + 0], 1, 1, filters, filters)
        w2, b2 = wn_conv(keys[2 + 3 * i + 1], 3, 3, filters, filters)
        w3, b3 = wn_conv(keys[2 + 3 * i + 2], 1, 1, filters, filters)
        blks.append(dict(w1=w1, b1=b1, w2=w2, b2=b2, w3=w3, b3=b3))
    params["blocks"] = blks
    params["out_w"], params["out_b"] = wn_conv(keys[1], 3, 3, filters, 2 * in_ch)
    return params


# ----------------------------------------------------------------------------
# Pure-JAX reference (NCHW), with the same per-conv operand dtype as the
# kernel so the correctness check is precision-matched.
# ----------------------------------------------------------------------------
def make_mask_nchw(H, W, top_condition=True):
    m = (int(top_condition) + jnp.arange(H)[:, None] + jnp.arange(W)[None, :]) % 2
    return m.astype(jnp.float32).reshape(1, 1, H, W)


def ref_forward(x, params, mask, scale, shift, mxu_dtype=jnp.float32):
    def conv(h, w, b, pad):
        out = jax.lax.conv_general_dilated(
            h.astype(mxu_dtype), w.astype(mxu_dtype), (1, 1),
            [(pad, pad), (pad, pad)],
            dimension_numbers=("NCHW", "HWIO", "NCHW"),
            preferred_element_type=jnp.float32)
        return out + b.reshape(1, -1, 1, 1)

    h = jax.nn.relu(conv(x * mask, params["in_w"], params["in_b"], 1))
    for blk in params["blocks"]:
        r = h
        h = jax.nn.relu(conv(h, blk["w1"], blk["b1"], 0))
        h = jax.nn.relu(conv(h, blk["w2"], blk["b2"], 1))
        h = jax.nn.relu(conv(h, blk["w3"], blk["b3"], 0)) + r
    st = conv(h, params["out_w"], params["out_b"], 1)
    C = x.shape[1]
    s, t = st[:, :C], st[:, C:]
    inv = 1.0 - mask
    log_scale = (scale[0] * jnp.tanh(s) + shift[0]) * inv
    z = x * jnp.exp(log_scale) + t * inv
    return z, log_scale


if __name__ == "__main__":
    # in_channels=4, conv_filters=32, residual_blocks=2, input_shape=(16,16), batch=2
    N, C, H, W = 2, 4, 16, 16
    CONV_FILTERS, RES_BLOCKS = 32, 2

    key = jax.random.PRNGKey(0)
    kx, kp = jax.random.split(key)
    x = jax.random.normal(kx, (N, C, H, W), jnp.float32)     # torch NCHW layout

    params = init_params(kp, C, CONV_FILTERS, RES_BLOCKS)
    scale = jnp.array([1.0], jnp.float32)    # nn.Parameter(torch.tensor([1.0]))
    shift = jnp.array([0.0], jnp.float32)    # nn.Parameter(torch.tensor([0.0]))

    fwd = jax.jit(lambda xx: coupling_forward(xx, params, scale, shift, True))
    z, log_scale = fwd(x)
    jax.block_until_ready((z, log_scale))

    mask = make_mask_nchw(H, W, top_condition=True)
    z_ref, ls_ref = ref_forward(x, params, mask, scale, shift, MXU_DTYPE)

    assert z.shape == (N, C, H, W) and log_scale.shape == (N, C, H, W)
    assert bool(jnp.all(jnp.isfinite(z))) and bool(jnp.all(jnp.isfinite(log_scale)))
    assert jnp.allclose(z, z_ref, atol=5e-3, rtol=5e-3), "z mismatch vs reference"
    assert jnp.allclose(log_scale, ls_ref, atol=5e-3, rtol=5e-3), "log_scale mismatch"

    print("KERNEL_OK")
</pallas_src>

<mosaic_0001>
module attributes {stable_mosaic.version = 11 : i64} {
  func.func @_fused_coupling_kernel(%arg0: i32, %arg1: memref<1x4x362xf32, #tpu.memory_space<vmem>>, %arg2: memref<4x362xf32, #tpu.memory_space<vmem>>, %arg3: memref<4x324xf32, #tpu.memory_space<vmem>>, %arg4: memref<1x324xf32, #tpu.memory_space<vmem>>, %arg5: memref<32x36xbf16, #tpu.memory_space<vmem>>, %arg6: memref<32x1xf32, #tpu.memory_space<vmem>>, %arg7: memref<2x32x32xbf16, #tpu.memory_space<vmem>>, %arg8: memref<2x32x1xf32, #tpu.memory_space<vmem>>, %arg9: memref<2x32x288xbf16, #tpu.memory_space<vmem>>, %arg10: memref<2x32x1xf32, #tpu.memory_space<vmem>>, %arg11: memref<2x32x32xbf16, #tpu.memory_space<vmem>>, %arg12: memref<2x32x1xf32, #tpu.memory_space<vmem>>, %arg13: memref<8x288xbf16, #tpu.memory_space<vmem>>, %arg14: memref<8x1xf32, #tpu.memory_space<vmem>>, %arg15: memref<2xf32, #tpu.memory_space<smem>>, %arg16: memref<1x8x324xf32, #tpu.memory_space<vmem>>, %arg17: memref<32x362xbf16, #tpu.memory_space<vmem>>, %arg18: memref<288x324xbf16, #tpu.memory_space<vmem>>) attributes {dimension_semantics = [#tpu.dimension_semantics<parallel>], iteration_bounds = array<i64: 2>, scalar_prefetch = 0 : i64, scratch_operands = 2 : i64, tpu.core_type = #tpu.core_type<tc>, window_params = [{transform_indices = @transform_0, window_bounds = array<i64: 1, 4, 362>}, {pipeline_mode = #tpu.pipeline_mode<synchronous>, transform_indices = @transform_1, window_bounds = array<i64: 4, 362>}, {pipeline_mode = #tpu.pipeline_mode<synchronous>, transform_indices = @transform_2, window_bounds = array<i64: 4, 324>}, {pipeline_mode = #tpu.pipeline_mode<synchronous>, transform_indices = @transform_3, window_bounds = array<i64: 1, 324>}, {pipeline_mode = #tpu.pipeline_mode<synchronous>, transform_indices = @transform_4, window_bounds = array<i64: 32, 36>}, {pipeline_mode = #tpu.pipeline_mode<synchronous>, transform_indices = @transform_5, window_bounds = array<i64: 32, 1>}, {pipeline_mode = #tpu.pipeline_mode<synchronous>, transform_indices = @transform_6, window_bounds = array<i64: 2, 32, 32>}, {pipeline_mode = #tpu.pipeline_mode<synchronous>, transform_indices = @transform_7, window_bounds = array<i64: 2, 32, 1>}, {pipeline_mode = #tpu.pipeline_mode<synchronous>, transform_indices = @transform_8, window_bounds = array<i64: 2, 32, 288>}, {pipeline_mode = #tpu.pipeline_mode<synchronous>, transform_indices = @transform_9, window_bounds = array<i64: 2, 32, 1>}, {pipeline_mode = #tpu.pipeline_mode<synchronous>, transform_indices = @transform_10, window_bounds = array<i64: 2, 32, 32>}, {pipeline_mode = #tpu.pipeline_mode<synchronous>, transform_indices = @transform_11, window_bounds = array<i64: 2, 32, 1>}, {pipeline_mode = #tpu.pipeline_mode<synchronous>, transform_indices = @transform_12, window_bounds = array<i64: 8, 288>}, {pipeline_mode = #tpu.pipeline_mode<synchronous>, transform_indices = @transform_13, window_bounds = array<i64: 8, 1>}, {transform_indices = @transform_14, window_bounds = array<i64: 2>}, {transform_indices = @transform_15, window_bounds = array<i64: 1, 8, 324>}]} {
    %cst = arith.constant 0.000000e+00 : bf16
    %0 = vector.broadcast %cst : bf16 to vector<32x19xbf16>
    %c0 = arith.constant 0 : index
    %c0_0 = arith.constant 0 : index
    %1 = vector.load %arg17[%c0, %c0_0] : memref<32x362xbf16, #tpu.memory_space<vmem>>, vector<32x19xbf16>
    tpu.vector_store %arg17[%c0, %c0_0], %0 {strides = array<i32>} : memref<32x362xbf16, #tpu.memory_space<vmem>>, vector<32x19xbf16>,
    %cst_1 = arith.constant 0.000000e+00 : bf16
    %2 = vector.broadcast %cst_1 : bf16 to vector<32x19xbf16>
    %c0_2 = arith.constant 0 : index
    %c343 = arith.constant 343 : index
    %3 = vector.load %arg17[%c0_2, %c343] : memref<32x362xbf16, #tpu.memory_space<vmem>>, vector<32x19xbf16>
    tpu.vector_store %arg17[%c0_2, %c343], %2 {strides = array<i32>} : memref<32x362xbf16, #tpu.memory_space<vmem>>, vector<32x19xbf16>,
    %c0_3 = arith.constant 0 : index
    %c0_4 = arith.constant 0 : index
    %4 = vector.load %arg4[%c0_3, %c0_4] : memref<1x324xf32, #tpu.memory_space<vmem>>, vector<1x324xf32>
    %5 = vector.shape_cast %4 : vector<1x324xf32> to vector<1x324xf32>
    %6 = vector.broadcast %5 : vector<1x324xf32> to vector<32x324xf32>
    %c0_5 = arith.constant 0 : index
    %c0_6 = arith.constant 0 : index
    %c0_7 = arith.constant 0 : index
    %7 = vector.load %arg1[%c0_5, %c0_6, %c0_7] : memref<1x4x362xf32, #tpu.memory_space<vmem>>, vector<1x4x362xf32>
    %8 = vector.shape_cast %7 : vector<1x4x362xf32> to vector<4x362xf32>
    %9 = vector.extract_strided_slice %8 {offsets = [0, 19], sizes = [4, 324], strides = [1, 1]} : vector<4x362xf32> to vector<4x324xf32>
    %c0_8 = arith.constant 0 : index
    %c0_9 = arith.constant 0 : index
    %10 = vector.load %arg2[%c0_8, %c0_9] : memref<4x362xf32, #tpu.memory_space<vmem>>, vector<4x362xf32>
    %11 = arith.mulf %8, %10 : vector<4x362xf32>
    %12 = vector.extract_strided_slice %11 {offsets = [0, 0], sizes = [4, 324], strides = [1, 1]} : vector<4x362xf32> to vector<4x324xf32>
    %13 = vector.extract_strided_slice %11 {offsets = [0, 1], sizes = [4, 324], strides = [1, 1]} : vector<4x362xf32> to vector<4x324xf32>
    %14 = vector.extract_strided_slice %11 {offsets = [0, 2], sizes = [4, 324], strides = [1, 1]} : vector<4x362xf32> to vector<4x324xf32>
    %15 = vector.extract_strided_slice %11 {offsets = [0, 18], sizes = [4, 324], strides = [1, 1]} : vector<4x362xf32> to vector<4x324xf32>
    %16 = vector.extract_strided_slice %11 {offsets = [0, 19], sizes = [4, 324], strides = [1, 1]} : vector<4x362xf32> to vector<4x324xf32>
    %17 = vector.extract_strided_slice %11 {offsets = [0, 20], sizes = [4, 324], strides = [1, 1]} : vector<4x362xf32> to vector<4x324xf32>
    %18 = vector.extract_strided_slice %11 {offsets = [0, 36], sizes = [4, 324], strides = [1, 1]} : vector<4x362xf32> to vector<4x324xf32>
    %19 = vector.extract_strided_slice %11 {offsets = [0, 37], sizes = [4, 324], strides = [1, 1]} : vector<4x362xf32> to vector<4x324xf32>
    %20 = vector.extract_strided_slice %11 {offsets = [0, 38], sizes = [4, 324], strides = [1, 1]} : vector<4x362xf32> to vector<4x324xf32>
    %21 = tpu.concatenate %12, %13, %14, %15, %16, %17, %18, %19, %20 in 0 : vector<4x324xf32>, vector<4x324xf32>, vector<4x324xf32>, vector<4x324xf32>, vector<4x324xf32>, vector<4x324xf32>, vector<4x324xf32>, vector<4x324xf32>, vector<4x324xf32> -> vector<36x324xf32>
    %22 = arith.truncf %21 : vector<36x324xf32> to vector<36x324xbf16>
    %c0_10 = arith.constant 0 : index
    %c0_11 = arith.constant 0 : index
    %23 = vector.load %arg5[%c0_10, %c0_11] : memref<32x36xbf16, #tpu.memory_space<vmem>>, vector<32x36xbf16>
    %cst_12 = arith.constant dense<0.000000e+00> : vector<32x324xf32>
    %24 = tpu.matmul %23, %22, %cst_12 {dimension_numbers = #tpu.dot_dimension_numbers<[1], [0], [0], [1], [0, 0, 1, 1], [], []>} : vector<32x36xbf16>, vector<36x324xbf16>, vector<32x324xf32> -> vector<32x324xf32>
    %c0_13 = arith.constant 0 : index
    %c0_14 = arith.constant 0 : index
    %25 = vector.load %arg6[%c0_13, %c0_14] : memref<32x1xf32, #tpu.memory_space<vmem>>, vector<32x1xf32>
    %26 = vector.broadcast %25 : vector<32x1xf32> to vector<32x324xf32>
    %27 = arith.addf %24, %26 : vector<32x324xf32>
    %cst_15 = arith.constant 0.000000e+00 : f32
    %28 = vector.broadcast %cst_15 : f32 to vector<32x324xf32>
    %29 = arith.maximumf %27, %28 : vector<32x324xf32>
    %c0_16 = arith.constant 0 : index
    %c0_17 = arith.constant 0 : index
    %c0_18 = arith.constant 0 : index
    %30 = vector.load %arg7[%c0_16, %c0_17, %c0_18] : memref<2x32x32xbf16, #tpu.memory_space<vmem>>, vector<1x32x32xbf16>
    %31 = vector.shape_cast %30 : vector<1x32x32xbf16> to vector<32x32xbf16>
    %c0_19 = arith.constant 0 : index
    %c0_20 = arith.constant 0 : index
    %c0_21 = arith.constant 0 : index
    %32 = vector.load %arg8[%c0_19, %c0_20, %c0_21] : memref<2x32x1xf32, #tpu.memory_space<vmem>>, vector<1x32x1xf32>
    %33 = vector.shape_cast %32 : vector<1x32x1xf32> to vector<32x1xf32>
    %34 = arith.truncf %29 : vector<32x324xf32> to vector<32x324xbf16>
    %cst_22 = arith.constant dense<0.000000e+00> : vector<32x324xf32>
    %35 = tpu.matmul %31, %34, %cst_22 {dimension_numbers = #tpu.dot_dimension_numbers<[1], [0], [0], [1], [0, 0, 1, 1], [], []>} : vector<32x32xbf16>, vector<32x324xbf16>, vector<32x324xf32> -> vector<32x324xf32>
    %36 = vector.broadcast %33 : vector<32x1xf32> to vector<32x324xf32>
    %37 = arith.addf %35, %36 : vector<32x324xf32>
    %cst_23 = arith.constant 0.000000e+00 : f32
    %38 = vector.broadcast %cst_23 : f32 to vector<32x324xf32>
    %39 = arith.maximumf %37, %38 : vector<32x324xf32>
    %40 = arith.mulf %39, %6 : vector<32x324xf32>
    %41 = arith.truncf %40 : vector<32x324xf32> to vector<32x324xbf16>
    %c0_24 = arith.constant 0 : index
    %c19 = arith.constant 19 : index
    %42 = vector.load %arg17[%c0_24, %c19] : memref<32x362xbf16, #tpu.memory_space<vmem>>, vector<32x324xbf16>
    tpu.vector_store %arg17[%c0_24, %c19], %41 {strides = array<i32>} : memref<32x362xbf16, #tpu.memory_space<vmem>>, vector<32x324xbf16>,
    %c0_25 = arith.constant 0 : index
    %c0_26 = arith.constant 0 : index
    %c0_27 = arith.constant 0 : index
    %43 = vector.load %arg9[%c0_25, %c0_26, %c0_27] : memref<2x32x288xbf16, #tpu.memory_space<vmem>>, vector<1x32x288xbf16>
    %44 = vector.shape_cast %43 : vector<1x32x288xbf16> to vector<32x288xbf16>
    %c0_28 = arith.constant 0 : index
    %c0_29 = arith.constant 0 : index
    %c0_30 = arith.constant 0 : index
    %45 = vector.load %arg10[%c0_28, %c0_29, %c0_30] : memref<2x32x1xf32, #tpu.memory_space<vmem>>, vector<1x32x1xf32>
    %46 = vector.shape_cast %45 : vector<1x32x1xf32> to vector<32x1xf32>
    %c0_31 = arith.constant 0 : index
    %c0_32 = arith.constant 0 : index
    %47 = vector.load %arg17[%c0_31, %c0_32] : memref<32x362xbf16, #tpu.memory_space<vmem>>, vector<32x324xbf16>
    %c0_33 = arith.constant 0 : index
    %c0_34 = arith.constant 0 : index
    %48 = vector.load %arg18[%c0_33, %c0_34] : memref<288x324xbf16, #tpu.memory_space<vmem>>, vector<32x324xbf16>
    tpu.vector_store %arg18[%c0_33, %c0_34], %47 {strides = array<i32>} : memref<288x324xbf16, #tpu.memory_space<vmem>>, vector<32x324xbf16>,
    %c0_35 = arith.constant 0 : index
    %c1 = arith.constant 1 : index
    %49 = vector.load %arg17[%c0_35, %c1] : memref<32x362xbf16, #tpu.memory_space<vmem>>, vector<32x324xbf16>
    %c32 = arith.constant 32 : index
    %c0_36 = arith.constant 0 : index
    %50 = vector.load %arg18[%c32, %c0_36] : memref<288x324xbf16, #tpu.memory_space<vmem>>, vector<32x324xbf16>
    tpu.vector_store %arg18[%c32, %c0_36], %49 {strides = array<i32>} : memref<288x324xbf16, #tpu.memory_space<vmem>>, vector<32x324xbf16>,
    %c0_37 = arith.constant 0 : index
    %c2 = arith.constant 2 : index
    %51 = vector.load %arg17[%c0_37, %c2] : memref<32x362xbf16, #tpu.memory_space<vmem>>, vector<32x324xbf16>
    %c64 = arith.constant 64 : index
    %c0_38 = arith.constant 0 : index
    %52 = vector.load %arg18[%c64, %c0_38] : memref<288x324xbf16, #tpu.memory_space<vmem>>, vector<32x324xbf16>
    tpu.vector_store %arg18[%c64, %c0_38], %51 {strides = array<i32>} : memref<288x324xbf16, #tpu.memory_space<vmem>>, vector<32x324xbf16>,
    %c0_39 = arith.constant 0 : index
    %c18 = arith.constant 18 : index
    %53 = vector.load %arg17[%c0_39, %c18] : memref<32x362xbf16, #tpu.memory_space<vmem>>, vector<32x324xbf16>
    %c96 = arith.constant 96 : index
    %c0_40 = arith.constant 0 : index
    %54 = vector.load %arg18[%c96, %c0_40] : memref<288x324xbf16, #tpu.memory_space<vmem>>, vector<32x324xbf16>
    tpu.vector_store %arg18[%c96, %c0_40], %53 {strides = array<i32>} : memref<288x324xbf16, #tpu.memory_space<vmem>>, vector<32x324xbf16>,
    %c0_41 = arith.constant 0 : index
    %c19_42 = arith.constant 19 : index
    %55 = vector.load %arg17[%c0_41, %c19_42] : memref<32x362xbf16, #tpu.memory_space<vmem>>, vector<32x324xbf16>
    %c128 = arith.constant 128 : index
    %c0_43 = arith.constant 0 : index
    %56 = vector.load %arg18[%c128, %c0_43] : memref<288x324xbf16, #tpu.memory_space<vmem>>, vector<32x324xbf16>
    tpu.vector_store %arg18[%c128, %c0_43], %55 {strides = array<i32>} : memref<288x324xbf16, #tpu.memory_space<vmem>>, vector<32x324xbf16>,
    %c0_44 = arith.constant 0 : index
    %c20 = arith.constant 20 : index
    %57 = vector.load %arg17[%c0_44, %c20] : memref<32x362xbf16, #tpu.memory_space<vmem>>, vector<32x324xbf16>
    %c160 = arith.constant 160 : index
    %c0_45 = arith.constant 0 : index
    %58 = vector.load %arg18[%c160, %c0_45] : memref<288x324xbf16, #tpu.memory_space<vmem>>, vector<32x324xbf16>
    tpu.vector_store %arg18[%c160, %c0_45], %57 {strides = array<i32>} : memref<288x324xbf16, #tpu.memory_space<vmem>>, vector<32x324xbf16>,
    %c0_46 = arith.constant 0 : index
    %c36 = arith.constant 36 : index
    %59 = vector.load %arg17[%c0_46, %c36] : memref<32x362xbf16, #tpu.memory_space<vmem>>, vector<32x324xbf16>
    %c192 = arith.constant 192 : index
    %c0_47 = arith.constant 0 : index
    %60 = vector.load %arg18[%c192, %c0_47] : memref<288x324xbf16, #tpu.memory_space<vmem>>, vector<32x324xbf16>
    tpu.vector_store %arg18[%c192, %c0_47], %59 {strides = array<i32>} : memref<288x324xbf16, #tpu.memory_space<vmem>>, vector<32x324xbf16>,
    %c0_48 = arith.constant 0 : index
    %c37 = arith.constant 37 : index
    %61 = vector.load %arg17[%c0_48, %c37] : memref<32x362xbf16, #tpu.memory_space<vmem>>, vector<32x324xbf16>
    %c224 = arith.constant 224 : index
    %c0_49 = arith.constant 0 : index
    %62 = vector.load %arg18[%c224, %c0_49] : memref<288x324xbf16, #tpu.memory_space<vmem>>, vector<32x324xbf16>
    tpu.vector_store %arg18[%c224, %c0_49], %61 {strides = array<i32>} : memref<288x324xbf16, #tpu.memory_space<vmem>>, vector<32x324xbf16>,
    %c0_50 = arith.constant 0 : index
    %c38 = arith.constant 38 : index
    %63 = vector.load %arg17[%c0_50, %c38] : memref<32x362xbf16, #tpu.memory_space<vmem>>, vector<32x324xbf16>
    %c256 = arith.constant 256 : index
    %c0_51 = arith.constant 0 : index
    %64 = vector.load %arg18[%c256, %c0_51] : memref<288x324xbf16, #tpu.memory_space<vmem>>, vector<32x324xbf16>
    tpu.vector_store %arg18[%c256, %c0_51], %63 {strides = array<i32>} : memref<288x324xbf16, #tpu.memory_space<vmem>>, vector<32x324xbf16>,
    %c0_52 = arith.constant 0 : index
    %c0_53 = arith.constant 0 : index
    %65 = vector.load %arg18[%c0_52, %c0_53] : memref<288x324xbf16, #tpu.memory_space<vmem>>, vector<288x324xbf16>
    %cst_54 = arith.constant dense<0.000000e+00> : vector<32x324xf32>
    %66 = tpu.matmul %44, %65, %cst_54 {dimension_numbers = #tpu.dot_dimension_numbers<[1], [0], [0], [1], [0, 0, 1, 1], [], []>} : vector<32x288xbf16>, vector<288x324xbf16>, vector<32x324xf32> -> vector<32x324xf32>
    %67 = vector.broadcast %46 : vector<32x1xf32> to vector<32x324xf32>
    %68 = arith.addf %66, %67 : vector<32x324xf32>
    %cst_55 = arith.constant 0.000000e+00 : f32
    %69 = vector.broadcast %cst_55 : f32 to vector<32x324xf32>
    %70 = arith.maximumf %68, %69 : vector<32x324xf32>
    %c0_56 = arith.constant 0 : index
    %c0_57 = arith.constant 0 : index
    %c0_58 = arith.constant 0 : index
    %71 = vector.load %arg11[%c0_56, %c0_57, %c0_58] : memref<2x32x32xbf16, #tpu.memory_space<vmem>>, vector<1x32x32xbf16>
    %72 = vector.shape_cast %71 : vector<1x32x32xbf16> to vector<32x32xbf16>
    %c0_59 = arith.constant 0 : index
    %c0_60 = arith.constant 0 : index
    %c0_61 = arith.constant 0 : index
    %73 = vector.load %arg12[%c0_59, %c0_60, %c0_61] : memref<2x32x1xf32, #tpu.memory_space<vmem>>, vector<1x32x1xf32>
    %74 = vector.shape_cast %73 : vector<1x32x1xf32> to vector<32x1xf32>
    %75 = arith.truncf %70 : vector<32x324xf32> to vector<32x324xbf16>
    %cst_62 = arith.constant dense<0.000000e+00> : vector<32x324xf32>
    %76 = tpu.matmul %72, %75, %cst_62 {dimension_numbers = #tpu.dot_dimension_numbers<[1], [0], [0], [1], [0, 0, 1, 1], [], []>} : vector<32x32xbf16>, vector<32x324xbf16>, vector<32x324xf32> -> vector<32x324xf32>
    %77 = vector.broadcast %74 : vector<32x1xf32> to vector<32x324xf32>
    %78 = arith.addf %76, %77 : vector<32x324xf32>
    %cst_63 = arith.constant 0.000000e+00 : f32
    %79 = vector.broadcast %cst_63 : f32 to vector<32x324xf32>
    %80 = arith.maximumf %78, %79 : vector<32x324xf32>
    %81 = arith.addf %80, %29 : vector<32x324xf32>
    %c1_64 = arith.constant 1 : index
    %c0_65 = arith.constant 0 : index
    %c0_66 = arith.constant 0 : index
    %82 = vector.load %arg7[%c1_64, %c0_65, %c0_66] : memref<2x32x32xbf16, #tpu.memory_space<vmem>>, vector<1x32x32xbf16>
    %83 = vector.shape_cast %82 : vector<1x32x32xbf16> to vector<32x32xbf16>
    %c1_67 = arith.constant 1 : index
    %c0_68 = arith.constant 0 : index
    %c0_69 = arith.constant 0 : index
    %84 = vector.load %arg8[%c1_67, %c0_68, %c0_69] : memref<2x32x1xf32, #tpu.memory_space<vmem>>, vector<1x32x1xf32>
    %85 = vector.shape_cast %84 : vector<1x32x1xf32> to vector<32x1xf32>
    %86 = arith.truncf %81 : vector<32x324xf32> to vector<32x324xbf16>
    %cst_70 = arith.constant dense<0.000000e+00> : vector<32x324xf32>
    %87 = tpu.matmul %83, %86, %cst_70 {dimension_numbers = #tpu.dot_dimension_numbers<[1], [0], [0], [1], [0, 0, 1, 1], [], []>} : vector<32x32xbf16>, vector<32x324xbf16>, vector<32x324xf32> -> vector<32x324xf32>
    %88 = vector.broadcast %85 : vector<32x1xf32> to vector<32x324xf32>
    %89 = arith.addf %87, %88 : vector<32x324xf32>
    %cst_71 = arith.constant 0.000000e+00 : f32
    %90 = vector.broadcast %cst_71 : f32 to vector<32x324xf32>
    %91 = arith.maximumf %89, %90 : vector<32x324xf32>
    %92 = arith.mulf %91, %6 : vector<32x324xf32>
    %93 = arith.truncf %92 : vector<32x324xf32> to vector<32x324xbf16>
    %c0_72 = arith.constant 0 : index
    %c19_73 = arith.constant 19 : index
    %94 = vector.load %arg17[%c0_72, %c19_73] : memref<32x362xbf16, #tpu.memory_space<vmem>>, vector<32x324xbf16>
    tpu.vector_store %arg17[%c0_72, %c19_73], %93 {strides = array<i32>} : memref<32x362xbf16, #tpu.memory_space<vmem>>, vector<32x324xbf16>,
    %c1_74 = arith.constant 1 : index
    %c0_75 = arith.constant 0 : index
    %c0_76 = arith.constant 0 : index
    %95 = vector.load %arg9[%c1_74, %c0_75, %c0_76] : memref<2x32x288xbf16, #tpu.memory_space<vmem>>, vector<1x32x288xbf16>
    %96 = vector.shape_cast %95 : vector<1x32x288xbf16> to vector<32x288xbf16>
    %c1_77 = arith.constant 1 : index
    %c0_78 = arith.constant 0 : index
    %c0_79 = arith.constant 0 : index
    %97 = vector.load %arg10[%c1_77, %c0_78, %c0_79] : memref<2x32x1xf32, #tpu.memory_space<vmem>>, vector<1x32x1xf32>
    %98 = vector.shape_cast %97 : vector<1x32x1xf32> to vector<32x1xf32>
    %c0_80 = arith.constant 0 : index
    %c0_81 = arith.constant 0 : index
    %99 = vector.load %arg17[%c0_80, %c0_81] : memref<32x362xbf16, #tpu.memory_space<vmem>>, vector<32x324xbf16>
    %c0_82 = arith.constant 0 : index
    %c0_83 = arith.constant 0 : index
    %100 = vector.load %arg18[%c0_82, %c0_83] : memref<288x324xbf16, #tpu.memory_space<vmem>>, vector<32x324xbf16>
    tpu.vector_store %arg18[%c0_82, %c0_83], %99 {strides = array<i32>} : memref<288x324xbf16, #tpu.memory_space<vmem>>, vector<32x324xbf16>,
    %c0_84 = arith.constant 0 : index
    %c1_85 = arith.constant 1 : index
    %101 = vector.load %arg17[%c0_84, %c1_85] : memref<32x362xbf16, #tpu.memory_space<vmem>>, vector<32x324xbf16>
    %c32_86 = arith.constant 32 : index
    %c0_87 = arith.constant 0 : index
    %102 = vector.load %arg18[%c32_86, %c0_87] : memref<288x324xbf16, #tpu.memory_space<vmem>>, vector<32x324xbf16>
    tpu.vector_store %arg18[%c32_86, %c0_87], %101 {strides = array<i32>} : memref<288x324xbf16, #tpu.memory_space<vmem>>, vector<32x324xbf16>,
    %c0_88 = arith.constant 0 : index
    %c2_89 = arith.constant 2 : index
    %103 = vector.load %arg17[%c0_88, %c2_89] : memref<32x362xbf16, #tpu.memory_space<vmem>>, vector<32x324xbf16>
    %c64_90 = arith.constant 64 : index
    %c0_91 = arith.constant 0 : index
    %104 = vector.load %arg18[%c64_90, %c0_91] : memref<288x324xbf16, #tpu.memory_space<vmem>>, vector<32x324xbf16>
    tpu.vector_store %arg18[%c64_90, %c0_91], %103 {strides = array<i32>} : memref<288x324xbf16, #tpu.memory_space<vmem>>, vector<32x324xbf16>,
    %c0_92 = arith.constant 0 : index
    %c18_93 = arith.constant 18 : index
    %105 = vector.load %arg17[%c0_92, %c18_93] : memref<32x362xbf16, #tpu.memory_space<vmem>>, vector<32x324xbf16>
    %c96_94 = arith.constant 96 : index
    %c0_95 = arith.constant 0 : index
    %106 = vector.load %arg18[%c96_94, %c0_95] : memref<288x324xbf16, #tpu.memory_space<vmem>>, vector<32x324xbf16>
    tpu.vector_store %arg18[%c96_94, %c0_95], %105 {strides = array<i32>} : memref<288x324xbf16, #tpu.memory_space<vmem>>, vector<32x324xbf16>,
    %c0_96 = arith.constant 0 : index
    %c19_97 = arith.constant 19 : index
    %107 = vector.load %arg17[%c0_96, %c19_97] : memref<32x362xbf16, #tpu.memory_space<vmem>>, vector<32x324xbf16>
    %c128_98 = arith.constant 128 : index
    %c0_99 = arith.constant 0 : index
    %108 = vector.load %arg18[%c128_98, %c0_99] : memref<288x324xbf16, #tpu.memory_space<vmem>>, vector<32x324xbf16>
    tpu.vector_store %arg18[%c128_98, %c0_99], %107 {strides = array<i32>} : memref<288x324xbf16, #tpu.memory_space<vmem>>, vector<32x324xbf16>,
    %c0_100 = arith.constant 0 : index
    %c20_101 = arith.constant 20 : index
    %109 = vector.load %arg17[%c0_100, %c20_101] : memref<32x362xbf16, #tpu.memory_space<vmem>>, vector<32x324xbf16>
    %c160_102 = arith.constant 160 : index
    %c0_103 = arith.constant 0 : index
    %110 = vector.load %arg18[%c160_102, %c0_103] : memref<288x324xbf16, #tpu.memory_space<vmem>>, vector<32x324xbf16>
    tpu.vector_store %arg18[%c160_102, %c0_103], %109 {strides = array<i32>} : memref<288x324xbf16, #tpu.memory_space<vmem>>, vector<32x324xbf16>,
    %c0_104 = arith.constant 0 : index
    %c36_105 = arith.constant 36 : index
    %111 = vector.load %arg17[%c0_104, %c36_105] : memref<32x362xbf16, #tpu.memory_space<vmem>>, vector<32x324xbf16>
    %c192_106 = arith.constant 192 : index
    %c0_107 = arith.constant 0 : index
    %112 = vector.load %arg18[%c192_106, %c0_107] : memref<288x324xbf16, #tpu.memory_space<vmem>>, vector<32x324xbf16>
    tpu.vector_store %arg18[%c192_106, %c0_107], %111 {strides = array<i32>} : memref<288x324xbf16, #tpu.memory_space<vmem>>, vector<32x324xbf16>,
    %c0_108 = arith.constant 0 : index
    %c37_109 = arith.constant 37 : index
    %113 = vector.load %arg17[%c0_108, %c37_109] : memref<32x362xbf16, #tpu.memory_space<vmem>>, vector<32x324xbf16>
    %c224_110 = arith.constant 224 : index
    %c0_111 = arith.constant 0 : index
    %114 = vector.load %arg18[%c224_110, %c0_111] : memref<288x324xbf16, #tpu.memory_space<vmem>>, vector<32x324xbf16>
    tpu.vector_store %arg18[%c224_110, %c0_111], %113 {strides = array<i32>} : memref<288x324xbf16, #tpu.memory_space<vmem>>, vector<32x324xbf16>,
    %c0_112 = arith.constant 0 : index
    %c38_113 = arith.constant 38 : index
    %115 = vector.load %arg17[%c0_112, %c38_113] : memref<32x362xbf16, #tpu.memory_space<vmem>>, vector<32x324xbf16>
    %c256_114 = arith.constant 256 : index
    %c0_115 = arith.constant 0 : index
    %116 = vector.load %arg18[%c256_114, %c0_115] : memref<288x324xbf16, #tpu.memory_space<vmem>>, vector<32x324xbf16>
    tpu.vector_store %arg18[%c256_114, %c0_115], %115 {strides = array<i32>} : memref<288x324xbf16, #tpu.memory_space<vmem>>, vector<32x324xbf16>,
    %c0_116 = arith.constant 0 : index
    %c0_117 = arith.constant 0 : index
    %117 = vector.load %arg18[%c0_116, %c0_117] : memref<288x324xbf16, #tpu.memory_space<vmem>>, vector<288x324xbf16>
    %cst_118 = arith.constant dense<0.000000e+00> : vector<32x324xf32>
    %118 = tpu.matmul %96, %117, %cst_118 {dimension_numbers = #tpu.dot_dimension_numbers<[1], [0], [0], [1], [0, 0, 1, 1], [], []>} : vector<32x288xbf16>, vector<288x324xbf16>, vector<32x324xf32> -> vector<32x324xf32>
    %119 = vector.broadcast %98 : vector<32x1xf32> to vector<32x324xf32>
    %120 = arith.addf %118, %119 : vector<32x324xf32>
    %cst_119 = arith.constant 0.000000e+00 : f32
    %121 = vector.broadcast %cst_119 : f32 to vector<32x324xf32>
    %122 = arith.maximumf %120, %121 : vector<32x324xf32>
    %c1_120 = arith.constant 1 : index
    %c0_121 = arith.constant 0 : index
    %c0_122 = arith.constant 0 : index
    %123 = vector.load %arg11[%c1_120, %c0_121, %c0_122] : memref<2x32x32xbf16, #tpu.memory_space<vmem>>, vector<1x32x32xbf16>
    %124 = vector.shape_cast %123 : vector<1x32x32xbf16> to vector<32x32xbf16>
    %c1_123 = arith.constant 1 : index
    %c0_124 = arith.constant 0 : index
    %c0_125 = arith.constant 0 : index
    %125 = vector.load %arg12[%c1_123, %c0_124, %c0_125] : memref<2x32x1xf32, #tpu.memory_space<vmem>>, vector<1x32x1xf32>
    %126 = vector.shape_cast %125 : vector<1x32x1xf32> to vector<32x1xf32>
    %127 = arith.truncf %122 : vector<32x324xf32> to vector<32x324xbf16>
    %cst_126 = arith.constant dense<0.000000e+00> : vector<32x324xf32>
    %128 = tpu.matmul %124, %127, %cst_126 {dimension_numbers = #tpu.dot_dimension_numbers<[1], [0], [0], [1], [0, 0, 1, 1], [], []>} : vector<32x32xbf16>, vector<32x324xbf16>, vector<32x324xf32> -> vector<32x324xf32>
    %129 = vector.broadcast %126 : vector<32x1xf32> to vector<32x324xf32>
    %130 = arith.addf %128, %129 : vector<32x324xf32>
    %cst_127 = arith.constant 0.000000e+00 : f32
    %131 = vector.broadcast %cst_127 : f32 to vector<32x324xf32>
    %132 = arith.maximumf %130, %131 : vector<32x324xf32>
    %133 = arith.addf %132, %81 : vector<32x324xf32>
    %134 = arith.mulf %133, %6 : vector<32x324xf32>
    %135 = arith.truncf %134 : vector<32x324xf32> to vector<32x324xbf16>
    %c0_128 = arith.constant 0 : index
    %c19_129 = arith.constant 19 : index
    %136 = vector.load %arg17[%c0_128, %c19_129] : memref<32x362xbf16, #tpu.memory_space<vmem>>, vector<32x324xbf16>
    tpu.vector_store %arg17[%c0_128, %c19_129], %135 {strides = array<i32>} : memref<32x362xbf16, #tpu.memory_space<vmem>>, vector<32x324xbf16>,
    %c0_130 = arith.constant 0 : index
    %c0_131 = arith.constant 0 : index
    %137 = vector.load %arg13[%c0_130, %c0_131] : memref<8x288xbf16, #tpu.memory_space<vmem>>, vector<8x288xbf16>
    %c0_132 = arith.constant 0 : index
    %c0_133 = arith.constant 0 : index
    %138 = vector.load %arg14[%c0_132, %c0_133] : memref<8x1xf32, #tpu.memory_space<vmem>>, vector<8x1xf32>
    %c0_134 = arith.constant 0 : index
    %c0_135 = arith.constant 0 : index
    %139 = vector.load %arg17[%c0_134, %c0_135] : memref<32x362xbf16, #tpu.memory_space<vmem>>, vector<32x324xbf16>
    %c0_136 = arith.constant 0 : index
    %c0_137 = arith.constant 0 : index
    %140 = vector.load %arg18[%c0_136, %c0_137] : memref<288x324xbf16, #tpu.memory_space<vmem>>, vector<32x324xbf16>
    tpu.vector_store %arg18[%c0_136, %c0_137], %139 {strides = array<i32>} : memref<288x324xbf16, #tpu.memory_space<vmem>>, vector<32x324xbf16>,
    %c0_138 = arith.constant 0 : index
    %c1_139 = arith.constant 1 : index
    %141 = vector.load %arg17[%c0_138, %c1_139] : memref<32x362xbf16, #tpu.memory_space<vmem>>, vector<32x324xbf16>
    %c32_140 = arith.constant 32 : index
    %c0_141 = arith.constant 0 : index
    %142 = vector.load %arg18[%c32_140, %c0_141] : memref<288x324xbf16, #tpu.memory_space<vmem>>, vector<32x324xbf16>
    tpu.vector_store %arg18[%c32_140, %c0_141], %141 {strides = array<i32>} : memref<288x324xbf16, #tpu.memory_space<vmem>>, vector<32x324xbf16>,
    %c0_142 = arith.constant 0 : index
    %c2_143 = arith.constant 2 : index
    %143 = vector.load %arg17[%c0_142, %c2_143] : memref<32x362xbf16, #tpu.memory_space<vmem>>, vector<32x324xbf16>
    %c64_144 = arith.constant 64 : index
    %c0_145 = arith.constant 0 : index
    %144 = vector.load %arg18[%c64_144, %c0_145] : memref<288x324xbf16, #tpu.memory_space<vmem>>, vector<32x324xbf16>
    tpu.vector_store %arg18[%c64_144, %c0_145], %143 {strides = array<i32>} : memref<288x324xbf16, #tpu.memory_space<vmem>>, vector<32x324xbf16>,
    %c0_146 = arith.constant 0 : index
    %c18_147 = arith.constant 18 : index
    %145 = vector.load %arg17[%c0_146, %c18_147] : memref<32x362xbf16, #tpu.memory_space<vmem>>, vector<32x324xbf16>
    %c96_148 = arith.constant 96 : index
    %c0_149 = arith.constant 0 : index
    %146 = vector.load %arg18[%c96_148, %c0_149] : memref<288x324xbf16, #tpu.memory_space<vmem>>, vector<32x324xbf16>
    tpu.vector_store %arg18[%c96_148, %c0_149], %145 {strides = array<i32>} : memref<288x324xbf16, #tpu.memory_space<vmem>>, vector<32x324xbf16>,
    %c0_150 = arith.constant 0 : index
    %c19_151 = arith.constant 19 : index
    %147 = vector.load %arg17[%c0_150, %c19_151] : memref<32x362xbf16, #tpu.memory_space<vmem>>, vector<32x324xbf16>
    %c128_152 = arith.constant 128 : index
    %c0_153 = arith.constant 0 : index
    %148 = vector.load %arg18[%c128_152, %c0_153] : memref<288x324xbf16, #tpu.memory_space<vmem>>, vector<32x324xbf16>
    tpu.vector_store %arg18[%c128_152, %c0_153], %147 {strides = array<i32>} : memref<288x324xbf16, #tpu.memory_space<vmem>>, vector<32x324xbf16>,
    %c0_154 = arith.constant 0 : index
    %c20_155 = arith.constant 20 : index
    %149 = vector.load %arg17[%c0_154, %c20_155] : memref<32x362xbf16, #tpu.memory_space<vmem>>, vector<32x324xbf16>
    %c160_156 = arith.constant 160 : index
    %c0_157 = arith.constant 0 : index
    %150 = vector.load %arg18[%c160_156, %c0_157] : memref<288x324xbf16, #tpu.memory_space<vmem>>, vector<32x324xbf16>
    tpu.vector_store %arg18[%c160_156, %c0_157], %149 {strides = array<i32>} : memref<288x324xbf16, #tpu.memory_space<vmem>>, vector<32x324xbf16>,
    %c0_158 = arith.constant 0 : index
    %c36_159 = arith.constant 36 : index
    %151 = vector.load %arg17[%c0_158, %c36_159] : memref<32x362xbf16, #tpu.memory_space<vmem>>, vector<32x324xbf16>
    %c192_160 = arith.constant 192 : index
    %c0_161 = arith.constant 0 : index
    %152 = vector.load %arg18[%c192_160, %c0_161] : memref<288x324xbf16, #tpu.memory_space<vmem>>, vector<32x324xbf16>
    tpu.vector_store %arg18[%c192_160, %c0_161], %151 {strides = array<i32>} : memref<288x324xbf16, #tpu.memory_space<vmem>>, vector<32x324xbf16>,
    %c0_162 = arith.constant 0 : index
    %c37_163 = arith.constant 37 : index
    %153 = vector.load %arg17[%c0_162, %c37_163] : memref<32x362xbf16, #tpu.memory_space<vmem>>, vector<32x324xbf16>
    %c224_164 = arith.constant 224 : index
    %c0_165 = arith.constant 0 : index
    %154 = vector.load %arg18[%c224_164, %c0_165] : memref<288x324xbf16, #tpu.memory_space<vmem>>, vector<32x324xbf16>
    tpu.vector_store %arg18[%c224_164, %c0_165], %153 {strides = array<i32>} : memref<288x324xbf16, #tpu.memory_space<vmem>>, vector<32x324xbf16>,
    %c0_166 = arith.constant 0 : index
    %c38_167 = arith.constant 38 : index
    %155 = vector.load %arg17[%c0_166, %c38_167] : memref<32x362xbf16, #tpu.memory_space<vmem>>, vector<32x324xbf16>
    %c256_168 = arith.constant 256 : index
    %c0_169 = arith.constant 0 : index
    %156 = vector.load %arg18[%c256_168, %c0_169] : memref<288x324xbf16, #tpu.memory_space<vmem>>, vector<32x324xbf16>
    tpu.vector_store %arg18[%c256_168, %c0_169], %155 {strides = array<i32>} : memref<288x324xbf16, #tpu.memory_space<vmem>>, vector<32x324xbf16>,
    %c0_170 = arith.constant 0 : index
    %c0_171 = arith.constant 0 : index
    %157 = vector.load %arg18[%c0_170, %c0_171] : memref<288x324xbf16, #tpu.memory_space<vmem>>, vector<288x324xbf16>
    %cst_172 = arith.constant dense<0.000000e+00> : vector<8x324xf32>
    %158 = tpu.matmul %137, %157, %cst_172 {dimension_numbers = #tpu.dot_dimension_numbers<[1], [0], [0], [1], [0, 0, 1, 1], [], []>} : vector<8x288xbf16>, vector<288x324xbf16>, vector<8x324xf32> -> vector<8x324xf32>
    %159 = vector.broadcast %138 : vector<8x1xf32> to vector<8x324xf32>
    %160 = arith.addf %158, %159 : vector<8x324xf32>
    %c0_173 = arith.constant 0 : index
    %c0_174 = arith.constant 0 : index
    %161 = vector.load %arg3[%c0_173, %c0_174] : memref<4x324xf32, #tpu.memory_space<vmem>>, vector<4x324xf32>
    %c0_175 = arith.constant 0 : index
    %162 = memref.load %arg15[%c0_175] : memref<2xf32, #tpu.memory_space<smem>>
    %163 = vector.extract_strided_slice %160 {offsets = [0, 0], sizes = [4, 324], strides = [1, 1]} : vector<8x324xf32> to vector<4x324xf32>
    %164 = math.tanh %163 : vector<4x324xf32>
    %165 = vector.broadcast %162 : f32 to vector<4x324xf32>
    %166 = arith.mulf %165, %164 : vector<4x324xf32>
    %c1_176 = arith.constant 1 : index
    %167 = memref.load %arg15[%c1_176] : memref<2xf32, #tpu.memory_space<smem>>
    %168 = vector.broadcast %167 : f32 to vector<4x324xf32>
    %169 = arith.addf %166, %168 : vector<4x324xf32>
    %170 = arith.mulf %169, %161 : vector<4x324xf32>
    %171 = math.exp %170 : vector<4x324xf32>
    %172 = arith.mulf %9, %171 : vector<4x324xf32>
    %173 = vector.extract_strided_slice %160 {offsets = [4, 0], sizes = [4, 324], strides = [1, 1]} : vector<8x324xf32> to vector<4x324xf32>
    %174 = arith.mulf %173, %161 : vector<4x324xf32>
    %175 = arith.addf %172, %174 : vector<4x324xf32>
    %176 = tpu.concatenate %175, %170 in 0 : vector<4x324xf32>, vector<4x324xf32> -> vector<8x324xf32>
    %c0_177 = arith.constant 0 : index
    %c0_178 = arith.constant 0 : index
    %c0_179 = arith.constant 0 : index
    %177 = vector.load %arg16[%c0_177, %c0_178, %c0_179] : memref<1x8x324xf32, #tpu.memory_space<vmem>>, vector<1x8x324xf32>
    %178 = vector.shape_cast %177 : vector<1x8x324xf32> to vector<8x324xf32>
    %179 = vector.shape_cast %176 : vector<8x324xf32> to vector<1x8x324xf32>
    tpu.vector_store %arg16[%c0_177, %c0_178, %c0_179], %179 {strides = array<i32>} : memref<1x8x324xf32, #tpu.memory_space<vmem>>, vector<1x8x324xf32>,
    return
  }
  func.func @transform_0(%arg0: i32) -> (i32, i32, i32) {
    %c0_i32 = arith.constant 0 : i32
    %c0_i32_0 = arith.constant 0 : i32
    %c0_i32_1 = arith.constant 0 : i32
    return %arg0, %c0_i32, %c0_i32_0 : i32, i32, i32
  }
  func.func @transform_1(%arg0: i32) -> (i32, i32) {
    %c0_i32 = arith.constant 0 : i32
    %c0_i32_0 = arith.constant 0 : i32
    %c0_i32_1 = arith.constant 0 : i32
    return %c0_i32, %c0_i32_0 : i32, i32
  }
  func.func @transform_2(%arg0: i32) -> (i32, i32) {
    %c0_i32 = arith.constant 0 : i32
    %c0_i32_0 = arith.constant 0 : i32
    %c0_i32_1 = arith.constant 0 : i32
    return %c0_i32, %c0_i32_0 : i32, i32
  }
  func.func @transform_3(%arg0: i32) -> (i32, i32) {
    %c0_i32 = arith.constant 0 : i32
    %c0_i32_0 = arith.constant 0 : i32
    %c0_i32_1 = arith.constant 0 : i32
    return %c0_i32, %c0_i32_0 : i32, i32
  }
  func.func @transform_4(%arg0: i32) -> (i32, i32) {
    %c0_i32 = arith.constant 0 : i32
    %c0_i32_0 = arith.constant 0 : i32
    %c0_i32_1 = arith.constant 0 : i32
    return %c0_i32, %c0_i32_0 : i32, i32
  }
  func.func @transform_5(%arg0: i32) -> (i32, i32) {
    %c0_i32 = arith.constant 0 : i32
    %c0_i32_0 = arith.constant 0 : i32
    %c0_i32_1 = arith.constant 0 : i32
    return %c0_i32, %c0_i32_0 : i32, i32
  }
  func.func @transform_6(%arg0: i32) -> (i32, i32, i32) {
    %c0_i32 = arith.constant 0 : i32
    %c0_i32_0 = arith.constant 0 : i32
    %c0_i32_1 = arith.constant 0 : i32
    %c0_i32_2 = arith.constant 0 : i32
    return %c0_i32, %c0_i32_0, %c0_i32_1 : i32, i32, i32
  }
  func.func @transform_7(%arg0: i32) -> (i32, i32, i32) {
    %c0_i32 = arith.constant 0 : i32
    %c0_i32_0 = arith.constant 0 : i32
    %c0_i32_1 = arith.constant 0 : i32
    %c0_i32_2 = arith.constant 0 : i32
    return %c0_i32, %c0_i32_0, %c0_i32_1 : i32, i32, i32
  }
  func.func @transform_8(%arg0: i32) -> (i32, i32, i32) {
    %c0_i32 = arith.constant 0 : i32
    %c0_i32_0 = arith.constant 0 : i32
    %c0_i32_1 = arith.constant 0 : i32
    %c0_i32_2 = arith.constant 0 : i32
    return %c0_i32, %c0_i32_0, %c0_i32_1 : i32, i32, i32
  }
  func.func @transform_9(%arg0: i32) -> (i32, i32, i32) {
    %c0_i32 = arith.constant 0 : i32
    %c0_i32_0 = arith.constant 0 : i32
    %c0_i32_1 = arith.constant 0 : i32
    %c0_i32_2 = arith.constant 0 : i32
    return %c0_i32, %c0_i32_0, %c0_i32_1 : i32, i32, i32
  }
  func.func @transform_10(%arg0: i32) -> (i32, i32, i32) {
    %c0_i32 = arith.constant 0 : i32
    %c0_i32_0 = arith.constant 0 : i32
    %c0_i32_1 = arith.constant 0 : i32
    %c0_i32_2 = arith.constant 0 : i32
    return %c0_i32, %c0_i32_0, %c0_i32_1 : i32, i32, i32
  }
  func.func @transform_11(%arg0: i32) -> (i32, i32, i32) {
    %c0_i32 = arith.constant 0 : i32
    %c0_i32_0 = arith.constant 0 : i32
    %c0_i32_1 = arith.constant 0 : i32
    %c0_i32_2 = arith.constant 0 : i32
    return %c0_i32, %c0_i32_0, %c0_i32_1 : i32, i32, i32
  }
  func.func @transform_12(%arg0: i32) -> (i32, i32) {
    %c0_i32 = arith.constant 0 : i32
    %c0_i32_0 = arith.constant 0 : i32
    %c0_i32_1 = arith.constant 0 : i32
    return %c0_i32, %c0_i32_0 : i32, i32
  }
  func.func @transform_13(%arg0: i32) -> (i32, i32) {
    %c0_i32 = arith.constant 0 : i32
    %c0_i32_0 = arith.constant 0 : i32
    %c0_i32_1 = arith.constant 0 : i32
    return %c0_i32, %c0_i32_0 : i32, i32
  }
  func.func @transform_14(%arg0: i32) -> i32 {
    %c0_i32 = arith.constant 0 : i32
    %c0_i32_0 = arith.constant 0 : i32
    return %c0_i32 : i32
  }
  func.func @transform_15(%arg0: i32) -> (i32, i32, i32) {
    %c0_i32 = arith.constant 0 : i32
    %c0_i32_0 = arith.constant 0 : i32
    %c0_i32_1 = arith.constant 0 : i32
    return %arg0, %c0_i32, %c0_i32_0 : i32, i32, i32
  }
}

</mosaic_0001>

<bundles_post_ra>
// kernel: _lambda_.1
= control target key start
LH: loop header
LB: loop body
LE: loop exit
PB: predicated region body
PF: predicated region fallthrough
CT: control target
= control target key end

     0   :  { %20 = vsyncpa [#allocation5], 0  ;;  %s6294_s18 = smov 0   ;;  %s7904_s0 = inlined_call_operand.vmem [shape: f32[2,4,362], index: 0, kind: input, shape index: {}]   ;;  %s7905_s1 = inlined_call_operand.vmem [shape: f32[4,362], index: 1, kind: input, shape index: {}]   ;;  %s7906_s2 = inlined_call_operand.vmem [shape: f32[4,324], index: 2, kind: input, shape index: {}]   ;;  %s7907_s3 = inlined_call_operand.vmem [shape: f32[1,324], index: 3, kind: input, shape index: {}]   ;;  %s7908_s4 = inlined_call_operand.vmem [shape: bf16[32,36], index: 4, kind: input, shape index: {}]   ;;  %s7909_s5 = inlined_call_operand.vmem [shape: f32[32,1], index: 5, kind: input, shape index: {}]   ;;  %s7910_s6 = inlined_call_operand.vmem [shape: bf16[2,32,32], index: 6, kind: input, shape index: {}]   ;;  %s7911_s7 = inlined_call_operand.vmem [shape: f32[2,32,1], index: 7, kind: input, shape index: {}]   ;;  %s7912_s8 = inlined_call_operand.vmem [shape: bf16[2,32,288], index: 8, kind: input, shape index: {}]   ;;  %s7913_s9 = inlined_call_operand.vmem [shape: f32[2,32,1], index: 9, kind: input, shape index: {}]   ;;  %s7914_s10 = inlined_call_operand.vmem [shape: bf16[2,32,32], index: 10, kind: input, shape index: {}]   ;;  %s7915_s11 = inlined_call_operand.vmem [shape: f32[2,32,1], index: 11, kind: input, shape index: {}]   ;;  %s7916_s12 = inlined_call_operand.vmem [shape: bf16[8,288], index: 12, kind: input, shape index: {}]   ;;  %s7917_s13 = inlined_call_operand.vmem [shape: f32[8,1], index: 13, kind: input, shape index: {}]   ;;  %s7918_s14 = inlined_call_operand.vmem [shape: f32[2], index: 14, kind: input, shape index: {}]   ;;  %s7919_s15 = inlined_call_operand.vmem [shape: f32[2,8,324], index: 15, kind: output, shape index: {}]  }
   0x1 LB: > { %s5083_s19 = sadd.s32 4294967295, %s6201_s18   ;;  %p5085_p0 = scmp.ge.s32.totalorder %s6201_s18, 1  ;;  %s6201_s18 = sphi %s6294_s18, %s26_s18  }
   0x2   : > { %p377_p1 = scmp.lt.s32.totalorder %s6201_s18, 3  ;;  %s428_s22 = sshll.u32 %s7918_s14, 4  ;;  %s429_s22 = int_to_ptr.vmem [resolvable:$true] %s428_s22 }
   0x3   : > { %p6098_p3 = scmp.eq.s32.totalorder %s5083_s19, 0  ;;  %s6203_s23 = smov [#allocation4]  }
   0x4   : > { %p378_p2 = pnand %p5085_p0, %p377_p1 }
   0x6   : > { %p6094_p4 = pneg %p378_p2  ;;  %449 = sbr.rel (%p378_p2) target bundleno = 3092 (0xc14), region = 80 }
   0x8   : > { %p6095_p5 = pnand %p6098_p3, %p6094_p4 }
   0xa   : > { %6097 = dma.vmem_to_smem (!%p6095_p5), %s429_s22, 16, %s6203_s23, [#allocation5]  }
   0xb   : > { %6196 = dma.done.wait (%p6098_p3), [#allocation5], 16  }
   0xc   : > { %6198 = vsyncadd (%p6098_p3), [#allocation5], 4294967280 }
   0xd   : > { %456 = sfence }
   0xe   : > { %p499_p6 = scmp.lt.s32.totalorder %s5083_s19, 1  ;;  %v530_v0 = vld [vmem:[%s7905_s1] sm:$0xff]  ;;  %v531_v1 = vld [vmem:[%s7905_s1 + $0x8] sm:$0xf]  ;;  %s7920_s17 = smov 109   ;;  %v6212_v50 = vmov 0  }
   0xf   : > { %s7924_s20 = smov 108   ;;  %s7926_s21 = smov 92   ;;  %v6335_v35 = vld [vmem:[%s7906_s2 + $0x8] sm:$0xf]  ;;  %6159 = vset.pattern.permute.xlu1 %v6212_v50  ;;  %6161 = vset.pattern.permute.xlu0 %v6212_v50  ;;  %vm760_vm0 = vcmask 1041408   ;;  %v721_v52 = vld [vmem:[%s7909_s5 + $0x10] sm:$0xff] }
  0x10   : > { %s7963_s19 = smov (!%p499_p6, %s5083_s19), 1  ;;  %s7942_s22 = smov 110   ;;  %6160 = vset.pattern.permute.xlu2 %v6212_v50  ;;  %vm613_vm1 = vcmask 891904   ;;  %vm669_vm2 = vcmask 744448   ;;  %vm650_vm3 = vcmask 752640   ;;  %vm632_vm4 = vcmask 883712  }
  0x11   : > { %s6088_s24 = smul.u32 12, %s7963_s19  ;;  %s7928_s23 = smov 91   ;;  %vm687_vm5 = vcmask 736256   ;;  %vm693_vm6 = vcmask 1043456   ;;  %vm558_vm7 = vcmask 1039360   ;;  %vm595_vm8 = vcmask 900096  }
  0x12   : > { %s7922_s26 = smov 90   ;;  %s7938_s27 = smov 127   ;;  %vm576_vm9 = vcmask 1031168   ;;  %vm753_vm10 = vcmask 293888   ;;  %vm883_vm11 = vcmask 261120   ;;  %vm510_vm12 = vcmask 150528  }
  0x13   : > { %s6317_s16 = scalar_lea.vmem %s7904_s0, %s6088_s24  ;;  %s7940_s28 = smov 126   ;;  %511 = vst.msk [vmem:[#allocation2] sm:$0xf] %vm510_vm12, %v6212_v50  ;;  %vm515_vm13 = vcmask 863928   ;;  %vm1024_vm14 = vcmask 1043608   ;;  %vm1025_vm15 = vcmask 1047556  }
  0x14   : > { %v528_v2 = vld [vmem:[%s6317_s16] sm:$0xff]  ;;  %v529_v3 = vld [vmem:[%s6317_s16 + $0x8] sm:$0xf]  ;;  %s6213_s24 = smov 19   ;;  %512 = vst.msk [vmem:[#allocation2 + $0xc] sm:$0xf] %vm510_vm12, %v6212_v50 }
  0x15   : > { %v532_v4 = vmul.f32 %v530_v0, %v528_v2  ;;  %v533_v5 = vmul.f32 %v531_v1, %v529_v3  ;;  %v719_v0 = vld [vmem:[%s7909_s5] sm:$0xff]  ;;  %513 = vst.msk [vmem:[#allocation2 + $0x18] sm:$0xf] %vm510_vm12, %v6212_v50  ;;  %s7957_s30 = smov 90   ;;  %s7958_s25 = smov 109  }
  0x16   : > { %514 = vst.msk [vmem:[#allocation2 + $0x24] sm:$0xf] %vm510_vm12, %v6212_v50  ;;  %vm1028_vm12 = vcmask 707584   ;;  %s7961_s29 = smov 127  }
  0x17   : > { %536 = vst [vmem:[#allocation1] ss:$2 sm:$0xff] %v532_v4 }
  0x18   : > { %538 = vst [vmem:[#allocation1 + $0x10] ss:$2 sm:$0xff] %v533_v5 }
  0x19   : > { %516 = vst.msk [vmem:[#allocation2 + $0x8] sm:$0xf] %vm515_vm13, %v6212_v50 }
  0x1a   : > { %517 = vst.msk [vmem:[#allocation2 + $0x14] sm:$0xf] %vm515_vm13, %v6212_v50 }
  0x1b   : > { %518 = vst.msk [vmem:[#allocation2 + $0x20] sm:$0xf] %vm515_vm13, %v6212_v50 }
  0x1c   : > { %519 = vst.msk [vmem:[#allocation2 + $0x2c] sm:$0xf] %vm515_vm13, %v6212_v50  ;;  %vm1057_vm13 = vcmask 551936  }
  0x1e   : > { %v6321_v6 = vld.sshfl [vmem:[#allocation1] sm:$0xff pattern:$0x75316420]  ;;  %v6323_v7 = vld.sshfl [vmem:[#allocation1 + $0x8] sm:$0xff pattern:$0x75316420] }
  0x1f   : > { %546 = vst [vmem:[#allocation1 + $0x1] ss:$2 sm:$0xff] %v532_v4  ;;  %v6325_v8 = vld.sshfl [vmem:[#allocation1 + $0x10] sm:$0xff pattern:$0x75316420] }
  0x20   : > { %548 = vst [vmem:[#allocation1 + $0x11] ss:$2 sm:$0xff] %v533_v5 }
  0x26   : > { %v549_v9 = vld.sshfl [vmem:[#allocation1] sm:$0xff pattern:$0x75316420]  ;;  %v550_v10 = vld.sshfl [vmem:[#allocation1 + $0x8] sm:$0xff pattern:$0x75316420] }
  0x27   : > { %564 = vst [vmem:[#allocation1] ss:$2 sm:$0xff] %v532_v4  ;;  %v551_v11 = vld.sshfl [vmem:[#allocation1 + $0x10] sm:$0xff pattern:$0x75316420]  ;;  %v6139_v38 = vpack.i.bf16 %v550_v10, %v549_v9 }
  0x28   : > { %566 = vst [vmem:[#allocation1 + $0x10] ss:$2 sm:$0xff] %v533_v5 }
  0x2e   : > { %v567_v12 = vld.sshfl [vmem:[#allocation1] sm:$0xff pattern:$0x75316420]  ;;  %v568_v13 = vld.sshfl [vmem:[#allocation1 + $0x8] sm:$0xff pattern:$0x75316420] }
  0x2f   : > { %583 = vst [vmem:[#allocation1 + $0x1] ss:$2 sm:$0xff] %v532_v4  ;;  %v569_v14 = vld.sshfl [vmem:[#allocation1 + $0x10] sm:$0xff pattern:$0x75316420]  ;;  %v6149_v41 = vpack.i.bf16 %v568_v13, %v567_v12 }
  0x30   : > { %585 = vst [vmem:[#allocation1 + $0x11] ss:$2 sm:$0xff] %v533_v5 }
  0x36   : > { %v586_v15 = vld.sshfl [vmem:[#allocation1] sm:$0xff pattern:$0x75316420]  ;;  %v587_v16 = vld.sshfl [vmem:[#allocation1 + $0x8] sm:$0xff pattern:$0x75316420] }
  0x37   : > { %601 = vst [vmem:[#allocation1] ss:$2 sm:$0xff] %v532_v4  ;;  %v588_v17 = vld.sshfl [vmem:[#allocation1 + $0x10] sm:$0xff pattern:$0x75316420]  ;;  %v6154_v30 = vpack.i.bf16 %v587_v16, %v586_v15  ;;  %v720_v15 = vld [vmem:[%s7909_s5 + $0x8] sm:$0xff] }
  0x38   : > { %603 = vst [vmem:[#allocation1 + $0x10] ss:$2 sm:$0xff] %v533_v5 }
  0x3e   : > { %v604_v18 = vld.sshfl [vmem:[#allocation1] sm:$0xff pattern:$0x75316420]  ;;  %v605_v19 = vld.sshfl [vmem:[#allocation1 + $0x8] sm:$0xff pattern:$0x75316420] }
  0x3f   : > { %620 = vst [vmem:[#allocation1 + $0x1] ss:$2 sm:$0xff] %v532_v4  ;;  %v6119_v20 = vpack.i.bf16 %v605_v19, %v604_v18  ;;  %v606_v21 = vld.sshfl [vmem:[#allocation1 + $0x10] sm:$0xff pattern:$0x75316420] }
  0x40   : > { %622 = vst [vmem:[#allocation1 + $0x11] ss:$2 sm:$0xff] %v533_v5 }
  0x41   : > { %6120 = vrot.lane.b32.xlu0 %v6119_v20, %s7920_s17 }
  0x46   : > { %v623_v22 = vld.sshfl [vmem:[#allocation1] sm:$0xff pattern:$0x75316420]  ;;  %v624_v23 = vld.sshfl [vmem:[#allocation1 + $0x8] sm:$0xff pattern:$0x75316420] }
  0x47   : > { %v6124_v24 = vpack.i.bf16 %v624_v23, %v623_v22  ;;  %638 = vst [vmem:[#allocation1] ss:$2 sm:$0xff] %v532_v4  ;;  %v625_v25 = vld.sshfl [vmem:[#allocation1 + $0x10] sm:$0xff pattern:$0x75316420] }
  0x48   : > { %640 = vst [vmem:[#allocation1 + $0x10] ss:$2 sm:$0xff] %v533_v5 }
  0x49   : > { %6125 = vrot.lane.b32.xlu1 %v6124_v24, %s7924_s20 }
  0x4e   : > { %v641_v26 = vld.sshfl [vmem:[#allocation1] sm:$0xff pattern:$0x75316420]  ;;  %v642_v27 = vld.sshfl [vmem:[#allocation1 + $0x8] sm:$0xff pattern:$0x75316420] }
  0x4f   : > { %v6129_v28 = vpack.i.bf16 %v642_v27, %v641_v26  ;;  %657 = vst [vmem:[#allocation1 + $0x1] ss:$2 sm:$0xff] %v532_v4  ;;  %v643_v29 = vld.sshfl [vmem:[#allocation1 + $0x10] sm:$0xff pattern:$0x75316420] }
  0x50   : > { %659 = vst [vmem:[#allocation1 + $0x11] ss:$2 sm:$0xff] %v533_v5 }
  0x51   : > { %6130 = vrot.lane.b32.xlu1 %v6129_v28, %s7926_s21 }
  0x56   : > { %v660_v31 = vld.sshfl [vmem:[#allocation1] sm:$0xff pattern:$0x75316420]  ;;  %v661_v32 = vld.sshfl [vmem:[#allocation1 + $0x8] sm:$0xff pattern:$0x75316420] }
  0x57   : > { %675 = vst [vmem:[#allocation1] ss:$2 sm:$0xff] %v532_v4  ;;  %v6134_v33 = vpack.i.bf16 %v661_v32, %v660_v31  ;;  %v662_v34 = vld.sshfl [vmem:[#allocation1 + $0x10] sm:$0xff pattern:$0x75316420] }
  0x58   : > { %677 = vst [vmem:[#allocation1 + $0x10] ss:$2 sm:$0xff] %v533_v5 }
  0x59   : > { %6155 = vrot.lane.b32.xlu1 %v6154_v30, %s7942_s22  ;;  %6135 = vrot.lane.b32.xlu2 %v6134_v33, %s7928_s23  ;;  %v5904_v33 = vld [vmem:[%s7908_s4] sm:$0xff] }
  0x5e   : > { %v678_v36 = vld.sshfl [vmem:[#allocation1] sm:$0xff pattern:$0x75316420]  ;;  %v679_v37 = vld.sshfl [vmem:[#allocation1 + $0x8] sm:$0xff pattern:$0x75316420] }
  0x5f   : > { %v6144_v39 = vpack.i.bf16 %v679_v37, %v678_v36  ;;  %v680_v40 = vld.sshfl [vmem:[#allocation1 + $0x10] sm:$0xff pattern:$0x75316420] }
  0x60   : > { %4900 = vst [vmem:[#allocation1 + $0x10] ss:$2 sm:$0xff] %v6335_v35 }
  0x61   : > { %630 = vrot.lane.b32.xlu1 %v625_v25, %s7924_s20  ;;  %6145 = vrot.lane.b32.xlu0 %v6144_v39, %s7922_s26 }
  0x62   : > { %6140 = vrot.lane.b32.xlu2 %v6139_v38, %s7938_s27 }
  0x69   : > { %6150 = vrot.lane.b32.xlu0 %v6149_v41, %s7940_s28  ;;  %556 = vrot.lane.b32.xlu1 %v551_v11, %s7938_s27  ;;  %v722_v41 = vld [vmem:[%s7909_s5 + $0x18] sm:$0xff] }
  0x6a   : > { %648 = vrot.lane.b32.xlu2 %v643_v29, %s7926_s21  ;;  %v846_v29 = vld [vmem:[%s7911_s7 + $0x18] sm:$0xff] }
  0x71   : > { %611 = vrot.lane.b32.xlu0 %v606_v21, %s7920_s17  ;;  %735 = vperm.xlu1 %6159, %v721_v52  }
  0x72   : > { %685 = vrot.lane.b32.xlu2 %v680_v40, %s7922_s26  ;;  %v844_v40 = vld [vmem:[%s7911_s7 + $0x8] sm:$0xff] }
  0x79   : > { %667 = vrot.lane.b32.xlu0 %v662_v34, %s7928_s23  ;;  %730 = vperm.xlu1 %6159, %v720_v15  }
  0x7a   : > { %574 = vrot.lane.b32.xlu2 %v569_v14, %s7940_s28 }
  0x81   : > { %593 = vrot.lane.b32.xlu0 %v588_v17, %s7942_s22  ;;  %870 = vperm.xlu1 %6159, %v846_v29  }
  0x82   : > { %740 = vperm.xlu2 %6160, %v722_v41  }
  0x89   : > { %725 = vperm.xlu0 %6161, %v719_v0  }
  0x91   : > { %860 = vperm.xlu0 %6161, %v844_v40  }
  0xb3   : > { %v6349_v42 = vpop.permute.xlu2 %6135  ;;  %v6357_v46 = vpop.permute.xlu0 %6120 }
  0xb4   : > { %v6138_v53 = vunpack.i.h.bf16 %v6349_v42  ;;  %v6137_v54 = vunpack.i.l.bf16 %v6349_v42  ;;  %v6123_v55 = vunpack.i.h.bf16 %v6357_v46  ;;  %v6122_v56 = vunpack.i.l.bf16 %v6357_v46  ;;  %v5905_v42 = vld [vmem:[%s7908_s4 + $0x8] sm:$0xff] }
  0xb6   : > { %v614_v3 = vsel %vm613_vm1, %v6122_v56, %v6123_v55  ;;  %v670_v4 = vsel %vm669_vm2, %v6137_v54, %v6138_v53 }
  0xbb   : > { %v6353_v44 = vpop.permute.xlu1 %6125 }
  0xbc   : > { %v6351_v43 = vpop.permute.xlu2 %6140  ;;  %v6128_v57 = vunpack.i.h.bf16 %v6353_v44  ;;  %v6127_v58 = vunpack.i.l.bf16 %v6353_v44 }
  0xbd   : > { %v6143_v1 = vunpack.i.h.bf16 %v6351_v43  ;;  %v6142_v2 = vunpack.i.l.bf16 %v6351_v43 }
  0xbe   : > { %v633_v10 = vsel %vm632_vm4, %v6127_v58, %v6128_v57 }
  0xbf   : > { %v700_v20 = vsel %vm693_vm6, %v614_v3, %v633_v10  ;;  %v559_v22 = vsel %vm558_vm7, %v6142_v2, %v6143_v1 }
  0xc0   : > { %v694_v28 = vsel %vm693_vm6, %v6321_v6, %v559_v22 }
  0xc3   : > { %v6359_v48 = vpop.permute.xlu1 %6130 }
  0xc4   : > { %v6355_v45 = vpop.permute.xlu2 %648  ;;  %v6133_v59 = vunpack.i.h.bf16 %v6359_v48  ;;  %v6132_v60 = vunpack.i.l.bf16 %v6359_v48 }
  0xc6   : > { %v651_v11 = vsel %vm650_vm3, %v6132_v60, %v6133_v59  ;;  %v652_v37 = vsel %vm650_vm3, %v6133_v59, %v6355_v45 }
  0xc7   : > { %v703_v21 = vsel %vm693_vm6, %v651_v11, %v670_v4 }
  0xc8   : > { %v709_v26 = vpack.c.bf16 %v703_v21, %v700_v20 }
  0xcb   : > { %v6156_v12 = vpop.permute.xlu1 %6155 }
  0xcc   : > { %v686_v47 = vpop.permute.xlu2 %685  ;;  %v6158_v16 = vunpack.i.h.bf16 %v6156_v12  ;;  %v6157_v17 = vunpack.i.l.bf16 %v6156_v12 }
  0xcd   : > { %v714_v49 = vpack.c.bf16 %v686_v47, %v686_v47 }
  0xce   : > { %v596_v27 = vsel %vm595_vm8, %v6157_v17, %v6158_v16 }
  0xcf   : > { %v768_v51 = vsel %vm760_vm0, %v714_v49, 0 }
  0xd0   : > { %813 = vmatpush.bf16.msra.mxu2 %v768_v51 }
  0xd3   : > { %v6146_v61 = vpop.permute.xlu0 %6145  ;;  %v631_v6 = vpop.permute.xlu1 %630 }
  0xd4   : > { %v6148_v62 = vunpack.i.h.bf16 %v6146_v61  ;;  %v6147_v63 = vunpack.i.l.bf16 %v6146_v61  ;;  %v634_v38 = vsel %vm632_vm4, %v6128_v57, %v631_v6 }
  0xd6   : > { %v688_v5 = vsel %vm687_vm5, %v6147_v63, %v6148_v62  ;;  %v689_v9 = vsel %vm687_vm5, %v6148_v62, %v686_v47 }
  0xd7   : > { %v712_v13 = vpack.c.bf16 %v688_v5, %v688_v5  ;;  %v713_v14 = vpack.c.bf16 %v689_v9, %v689_v9 }
  0xd9   : > { %v762_v18 = vsel %vm760_vm0, %v712_v13, 0  ;;  %v765_v19 = vsel %vm760_vm0, %v713_v14, 0  ;;  %vm1007_vm0 = vcmask 154624  }
  0xda   : > { %775 = vmatpush.bf16.msra.mxu0 %v762_v18  ;;  %794 = vmatpush.bf16.msra.mxu1 %v765_v19 }
  0xdb   : > { %v6151_v23 = vpop.permute.xlu0 %6150  ;;  %v557_v54 = vpop.permute.xlu1 %556 }
  0xdc   : > { %v6153_v24 = vunpack.i.h.bf16 %v6151_v23  ;;  %v6152_v25 = vunpack.i.l.bf16 %v6151_v23  ;;  %v696_v56 = vsel %vm693_vm6, %v6325_v8, %v557_v54  ;;  %v843_v8 = vld [vmem:[%s7911_s7] sm:$0xff] }
  0xdd   : > { %v5906_v23 = vld [vmem:[%s7910_s6] sm:$0xff] }
  0xde   : > { %776 = vmatpush.bf16.msra.mxu0 %v709_v26  ;;  %v577_v30 = vsel %vm576_vm9, %v6152_v25, %v6153_v24 }
  0xdf   : > { %v697_v31 = vsel %vm693_vm6, %v577_v30, %v596_v27 }
  0xe0   : > { %v706_v32 = vpack.c.bf16 %v697_v31, %v694_v28 }
  0xe2   : > { %777 = vmatpush.bf16.msra.mxu0 %v706_v32 }
  0xe3   : > { %v612_v34 = vpop.permute.xlu0 %611 }
  0xe4   : > { %v615_v36 = vsel %vm613_vm1, %v6123_v55, %v612_v34  ;;  %v702_v46 = vsel %vm693_vm6, %v612_v34, %v631_v6  ;;  %v575_v55 = vpop.permute.xlu2 %574  ;;  %v5907_v6 = vld [vmem:[%s7910_s6 + $0x8] sm:$0xff] }
  0xe5   : > { %5100 = vmatmul.msk.bf16.vlgmr.msra.gmra.mxu0 %vm753_vm10, %v5904_v33  ;;  %v701_v49 = vsel %vm693_vm6, %v615_v36, %v634_v38  ;;  %v578_v58 = vsel %vm576_vm9, %v6153_v24, %v575_v55 }
  0xeb   : > { %v668_v39 = vpop.permute.xlu0 %667 }
  0xec   : > { %v671_v44 = vsel %vm669_vm2, %v6138_v53, %v668_v39  ;;  %v705_v47 = vsel %vm693_vm6, %v6355_v45, %v668_v39  ;;  %v845_v45 = vld [vmem:[%s7911_s7 + $0x10] sm:$0xff]  ;;  %v560_v53 = vsel %vm558_vm7, %v6143_v1, %v557_v54  ;;  %v736_v1 = vpop.permute.xlu1 %735  ;;  %v741_v10 = vpop.permute.xlu2 %740 }
  0xed   : > { %v711_v48 = vpack.c.bf16 %v705_v47, %v702_v46  ;;  %v704_v51 = vsel %vm693_vm6, %v652_v37, %v671_v44  ;;  %865 = vperm.xlu2 %6160, %v845_v45   ;;  %v695_v62 = vsel %vm693_vm6, %v6323_v7, %v560_v53 }
  0xee   : > { %v710_v52 = vpack.c.bf16 %v704_v51, %v701_v49 }
  0xef   : > { %814 = vmatpush.bf16.msra.mxu2 %v711_v48 }
  0xf0   : > { %795 = vmatpush.bf16.msra.mxu1 %v710_v52 }
  0xf3   : > { %v594_v57 = vpop.permute.xlu0 %593 }
  0xf4   : > { %v597_v59 = vsel %vm595_vm8, %v6158_v16, %v594_v57  ;;  %v699_v60 = vsel %vm693_vm6, %v575_v55, %v594_v57  ;;  %v731_v3 = vpop.permute.xlu1 %730  ;;  %v520_v57 = vld [vmem:[%s7907_s3] sm:$0x7] }
  0xf5   : > { %5101 = vmatmul.msk.bf16.gmra.mxu0 %vm753_vm10, %v5905_v42  ;;  %v708_v61 = vpack.c.bf16 %v699_v60, %v696_v56  ;;  %v698_v43 = vsel %vm693_vm6, %v578_v58, %v597_v59  ;;  %855 = vperm.xlu2 %6160, %v843_v8   ;;  %v6529_v59 = vperm.slane %v520_v57, 2 }
  0xf6   : > { %v707_v63 = vpack.c.bf16 %v698_v43, %v695_v62 }
  0xf7   : > { %815 = vmatpush.bf16.msra.mxu2 %v708_v61 }
  0xf8   : > { %796 = vmatpush.bf16.msra.mxu1 %v707_v63 }
  0xfa   : > { %5104 = vmatmul.msk.bf16.vlgmr.msra.gmra.mxu2 %vm753_vm10, %v5904_v33 }
  0xfb   : > { %5102 = vmatmul.msk.bf16.vlgmr.msra.gmra.mxu1 %vm753_vm10, %v5904_v33  ;;  %v726_v5 = vpop.permute.xlu0 %725 }
 0x103   : > { %v861_v8 = vpop.permute.xlu0 %860 }
 0x10a   : > { %5105 = vmatmul.msk.bf16.gmra.mxu2 %vm753_vm10, %v5905_v42 }
 0x10b   : > { %5103 = vmatmul.msk.bf16.gmra.mxu1 %vm753_vm10, %v5905_v42  ;;  %vm6563_vm10 = vmor %vm1025_vm15, %vm1024_vm14 }
 0x147   : > { %v866_v45 = vpop.permute.xlu2 %865 }
 0x14f   : > { %v856_v56 = vpop.permute.xlu2 %855 }
 0x162   : > { %v779_v0 = vpop.f32.mrf.mxu0 }
 0x163   : > { %v6462_v17 = vadd.f32 %v779_v0, %v726_v5 }
 0x165   : > { %v827_v21 = vmax.f32 %v6462_v17, 0.0 }
 0x16a   : > { %v781_v7 = vpop.f32.mrf.mxu0 }
 0x16b   : > { %v6456_v12 = vadd.f32 %v781_v7, %v731_v3 }
 0x16d   : > { %v830_v18 = vmax.f32 %v6456_v12, 0.0 }
 0x16f   : > { %v847_v22 = vpack.c.bf16 %v830_v18, %v827_v21 }
 0x172   : > { %v784_v2 = vpop.f32.mrf.mxu0 }
 0x173   : > { %v6454_v9 = vadd.f32 %v784_v2, %v736_v1 }
 0x175   : > { %v833_v14 = vmax.f32 %v6454_v9, 0.0 }
 0x178   : > { %v798_v4 = vpop.f32.mrf.mxu1 }
 0x179   : > { %v6480_v29 = vadd.f32 %v798_v4, %v726_v5 }
 0x17a   : > { %v786_v11 = vpop.f32.mrf.mxu0 }
 0x17b   : > { %v6458_v13 = vadd.f32 %v786_v11, %v741_v10  ;;  %v7932_v36 = vmax.f32 %v6480_v29, 0.0 }
 0x17d   : > { %v817_v15 = vpop.f32.mrf.mxu2  ;;  %v836_v16 = vmax.f32 %v6458_v13, 0.0  ;;  %v5970_v13 = vld [vmem:[%s7910_s6 + $0x10] sm:$0xff] }
 0x17e   : > { %v6503_v44 = vadd.f32 %v817_v15, %v726_v5 }
 0x17f   : > { %v850_v19 = vpack.c.bf16 %v836_v16, %v833_v14 }
 0x180   : > { %v800_v20 = vpop.f32.mrf.mxu1  ;;  %v7930_v52 = vmax.f32 %v6503_v44, 0.0 }
 0x181   : > { %896 = vmatpush.bf16.msra.mxu3 %v850_v19  ;;  %v6482_v30 = vadd.f32 %v800_v20, %v731_v3  ;;  %v6536_v20 = vperm.slane %v520_v57, 0 }
 0x183   : > { %v7935_v37 = vmax.f32 %v6482_v30, 0.0 }
 0x185   : > { %v819_v24 = vpop.f32.mrf.mxu2  ;;  %897 = vmatpush.bf16.msra.mxu3 %v847_v22  ;;  %v848_v48 = vpack.c.bf16 %v7935_v37, %v7932_v36 }
 0x186   : > { %v6499_v40 = vadd.f32 %v819_v24, %v731_v3 }
 0x188   : > { %v803_v25 = vpop.f32.mrf.mxu1  ;;  %5114 = vmatmul.msk.bf16.vlgmr.msra.gmra.mxu3 %vm883_vm11, %v5906_v23  ;;  %v7931_v49 = vmax.f32 %v6499_v40, 0.0 }
 0x189   : > { %v6478_v27 = vadd.f32 %v803_v25, %v736_v1 }
 0x18a   : > { %v849_v54 = vpack.c.bf16 %v7931_v49, %v7930_v52 }
 0x18b   : > { %v7937_v32 = vmax.f32 %v6478_v27, 0.0 }
 0x18d   : > { %v822_v26 = vpop.f32.mrf.mxu2 }
 0x18e   : > { %v6488_v34 = vadd.f32 %v822_v26, %v736_v1 }
 0x190   : > { %v805_v28 = vpop.f32.mrf.mxu1  ;;  %v7934_v46 = vmax.f32 %v6488_v34, 0.0 }
 0x191   : > { %v6484_v31 = vadd.f32 %v805_v28, %v741_v10 }
 0x193   : > { %v7936_v33 = vmax.f32 %v6484_v31, 0.0 }
 0x195   : > { %v824_v38 = vpop.f32.mrf.mxu2  ;;  %v851_v39 = vpack.c.bf16 %v7936_v33, %v7937_v32 }
 0x196   : > { %v6501_v41 = vadd.f32 %v824_v38, %v741_v10  ;;  %v6534_v10 = vperm.slane %v520_v57, 1 }
 0x197   : > { %915 = vmatpush.bf16.msrb.mxu3 %v851_v39 }
 0x198   : > { %v7933_v47 = vmax.f32 %v6501_v41, 0.0  ;;  %5115 = vmatmul.msk.bf16.gmra.mxu3 %vm883_vm11, %v5907_v6 }
 0x19a   : > { %v852_v51 = vpack.c.bf16 %v7933_v47, %v7934_v46 }
 0x19b   : > { %916 = vmatpush.bf16.msrb.mxu3 %v848_v48 }
 0x19c   : > { %934 = vmatpush.bf16.msrb.mxu0 %v852_v51 }
 0x1a0   : > { %935 = vmatpush.bf16.msrb.mxu0 %v849_v54 }
 0x1a3   : > { %5118 = vmatmul.msk.bf16.vlgmr.msrb.gmra.mxu0 %vm883_vm11, %v5906_v23 }
 0x1a8   : > { %5116 = vmatmul.msk.bf16.vlgmr.msrb.gmra.mxu3 %vm883_vm11, %v5906_v23 }
 0x1b3   : > { %5119 = vmatmul.msk.bf16.gmra.mxu0 %vm883_vm11, %v5907_v6 }
 0x1b8   : > { %5117 = vmatmul.msk.bf16.gmra.mxu3 %vm883_vm11, %v5907_v6 }
 0x20b   : > { %v899_v55 = vpop.f32.mrf.mxu3 }
 0x20c   : > { %v900_v4 = vadd.f32 %v899_v55, %v856_v56  ;;  %v871_v55 = vpop.permute.xlu1 %870 }
 0x20e   : > { %v947_v22 = vmax.f32 %v900_v4, 0.0 }
 0x210   : > { %v959_v6 = vmul.f32 %v947_v22, %v6536_v20 }
 0x213   : > { %v901_v42 = vpop.f32.mrf.mxu3 }
 0x214   : > { %v902_v38 = vadd.f32 %v901_v42, %v861_v8 }
 0x216   : > { %v950_v57 = vmax.f32 %v902_v38, 0.0 }
 0x218   : > { %v962_v42 = vmul.f32 %v950_v57, %v6536_v20 }
 0x21b   : > { %v904_v53 = vpop.f32.mrf.mxu3 }
 0x220   : > { %v937_v58 = vpop.f32.mrf.mxu0 }
 0x221   : > { %v938_v60 = vadd.f32 %v937_v58, %v856_v56 }
 0x223   : > { %v949_v61 = vmax.f32 %v938_v60, 0.0  ;;  %v906_v62 = vpop.f32.mrf.mxu3 }
 0x225   : > { %v961_v43 = vmul.f32 %v949_v61, %v6529_v59 }
 0x227   : > { %v972_v63 = vpack.c.bf16 %v961_v43, %v961_v43 }
 0x228   : > { %v939_v0 = vpop.f32.mrf.mxu0 }
 0x229   : > { %v940_v7 = vadd.f32 %v939_v0, %v861_v8  ;;  %989 = vrot.lane.b32.xlu1 %v972_v63, %s6213_s24 }
 0x22b   : > { %v952_v1 = vmax.f32 %v940_v7, 0.0  ;;  %v918_v2 = vpop.f32.mrf.mxu3 }
 0x22c   : > { %v919_v3 = vadd.f32 %v918_v2, %v856_v56 }
 0x22d   : > { %v964_v5 = vmul.f32 %v952_v1, %v6529_v59 }
 0x22e   : > { %v948_v11 = vmax.f32 %v919_v3, 0.0  ;;  %v907_v3 = vadd.f32 %v906_v62, %v871_v55 }
 0x22f   : > { %v974_v15 = vpack.c.bf16 %v964_v5, %v964_v5 }
 0x230   : > { %v942_v19 = vpop.f32.mrf.mxu0  ;;  %v960_v24 = vmul.f32 %v948_v11, %v6534_v10 }
 0x231   : > { %v943_v23 = vadd.f32 %v942_v19, %v866_v45  ;;  %993 = vrot.lane.b32.xlu2 %v974_v15, %s6213_s24  ;;  %v956_v15 = vmax.f32 %v907_v3, 0.0 }
 0x232   : > { %v971_v54 = vpack.c.bf16 %v960_v24, %v959_v6 }
 0x233   : > { %v955_v25 = vmax.f32 %v943_v23, 0.0  ;;  %v920_v26 = vpop.f32.mrf.mxu3 }
 0x234   : > { %v921_v28 = vadd.f32 %v920_v26, %v861_v8  ;;  %v905_v8 = vadd.f32 %v904_v53, %v866_v45  ;;  %v968_v53 = vmul.f32 %v956_v15, %v6536_v20 }
 0x235   : > { %v967_v39 = vmul.f32 %v955_v25, %v6529_v59 }
 0x236   : > { %v951_v51 = vmax.f32 %v921_v28, 0.0  ;;  %v953_v4 = vmax.f32 %v905_v8, 0.0 }
 0x237   : > { %v976_v48 = vpack.c.bf16 %v967_v39, %v967_v39 }
 0x238   : > { %v944_v56 = vpop.f32.mrf.mxu0  ;;  %v963_v60 = vmul.f32 %v951_v51, %v6534_v10  ;;  %v965_v22 = vmul.f32 %v953_v4, %v6536_v20 }
 0x239   : > { %v945_v58 = vadd.f32 %v944_v56, %v871_v55  ;;  %997 = vrot.lane.b32.xlu0 %v976_v48, %s6213_s24  ;;  %987 = vrot.lane.b32.xlu2 %v971_v54, %s6213_s24 }
 0x23a   : > { %v973_v2 = vpack.c.bf16 %v963_v60, %v962_v42 }
 0x23b   : > { %v958_v61 = vmax.f32 %v945_v58, 0.0  ;;  %v923_v43 = vpop.f32.mrf.mxu3 }
 0x23c   : > { %v924_v63 = vadd.f32 %v923_v43, %v866_v45 }
 0x23d   : > { %v970_v0 = vmul.f32 %v958_v61, %v6529_v59 }
 0x23e   : > { %v954_v7 = vmax.f32 %v924_v63, 0.0 }
 0x23f   : > { %v978_v1 = vpack.c.bf16 %v970_v0, %v970_v0 }
 0x240   : > { %v966_v5 = vmul.f32 %v954_v7, %v6534_v10 }
 0x241   : > { %1001 = vrot.lane.b32.xlu1 %v978_v1, %s6213_s24  ;;  %991 = vrot.lane.b32.xlu0 %v973_v2, %s6213_s24 }
 0x242   : > { %v975_v45 = vpack.c.bf16 %v966_v5, %v965_v22 }
 0x243   : > { %v925_v11 = vpop.f32.mrf.mxu3 }
 0x244   : > { %v926_v19 = vadd.f32 %v925_v11, %v871_v55 }
 0x246   : > { %v957_v23 = vmax.f32 %v926_v19, 0.0 }
 0x248   : > { %v969_v24 = vmul.f32 %v957_v23, %v6534_v10 }
 0x249   : > { %995 = vrot.lane.b32.xlu1 %v975_v45, %s6213_s24 }
 0x24a   : > { %v977_v62 = vpack.c.bf16 %v969_v24, %v968_v53 }
 0x24c   : > { %999 = vrot.lane.b32.xlu2 %v977_v62, %s6213_s24 }
 0x28b   : > { %v994_v25 = vpop.permute.xlu2 %993 }
 0x293   : > { %v988_v26 = vpop.permute.xlu2 %987 }
 0x294   : > { %v1003_v6 = vrot.slane %v988_v26, 4 }
 0x296   : > { %v1008_v38 = vsel %vm1007_vm0, %v1003_v6, %v988_v26 }
 0x297   : > { %1027 = vst.msk [vmem:[#allocation2] sm:$0xff] %vm6563_vm10, %v1008_v38 }
 0x29b   : > { %v990_v39 = vpop.permute.xlu1 %989 }
 0x29c   : > { %v1009_v48 = vsel %vm1007_vm0, %v1003_v6, %v990_v39 }
 0x29d   : > { %1029 = vst.msk [vmem:[#allocation2 + $0x8] sm:$0xf] %vm1028_vm12, %v1009_v48 }
 0x29e   : > { %v6572_v50 = vld [vmem:[#allocation2] sm:$0xff] }
 0x29f   : > { %1212 = vrot.lane.b32.xlu1 %v6572_v50, %s7942_s22  ;;  %1147 = vrot.lane.b32.xlu0 %v6572_v50, %s7940_s28  ;;  %1056 = vst [vmem:[#allocation3] sm:$0xff] %v6572_v50 }
 0x2a4   : > { %v1049_v51 = vld [vmem:[#allocation2 + $0x8] sm:$0xf] }
 0x2a5   : > { %v1197_v54 = vld [vmem:[#allocation2 + $0x8] sm:$0xf]  ;;  %1058 = vst.msk [vmem:[#allocation3 + $0x8] sm:$0xf] %vm1057_vm13, %v1049_v51 }
 0x2a6   : > { %1214 = vrot.lane.b32.xlu2 %v1197_v54, %s7942_s22  ;;  %v1000_v55 = vpop.permute.xlu2 %999  ;;  %v1132_v56 = vld [vmem:[#allocation2 + $0x8] sm:$0xf] }
 0x2a7   : > { %v1006_v57 = vrot.slane %v1000_v55, 4  ;;  %1149 = vrot.lane.b32.xlu1 %v1132_v56, %s7940_s28  ;;  %1081 = vrot.lane.b32.xlu0 %v6572_v50, %s7938_s27  ;;  %v1457_v61 = vld [vmem:[#allocation2 + $0x8] sm:$0xf] }
 0x2a8   : > { %v1066_v43 = vld [vmem:[#allocation2 + $0x8] sm:$0xf] }
 0x2a9   : > { %v1014_v58 = vsel %vm1007_vm0, %v1006_v57, %v1000_v55  ;;  %v1327_v3 = vld [vmem:[#allocation2 + $0x8] sm:$0xf] }
 0x2aa   : > { %1034 = vst.msk [vmem:[#allocation2 + $0x24] sm:$0xff] %vm6563_vm10, %v1014_v58  ;;  %v1262_v15 = vld [vmem:[#allocation2 + $0x8] sm:$0xf] }
 0x2ab   : > { %v998_v60 = vpop.permute.xlu0 %997  ;;  %v1392_v23 = vld [vmem:[#allocation2 + $0x8] sm:$0xf] }
 0x2ae   : > { %1474 = vrot.lane.b32.xlu2 %v1457_v61, %s7928_s23 }
 0x2af   : > { %1083 = vrot.lane.b32.xlu1 %v1066_v43, %s7938_s27  ;;  %1407 = vrot.lane.b32.xlu0 %v6572_v50, %s7926_s21 }
 0x2b1   : > { %v6591_v63 = vld [vmem:[#allocation2 + $0x24] sm:$0xff] }
 0x2b2   : > { %1063 = vst [vmem:[#allocation3 + $0x24] sm:$0xff] %v6591_v63 }
 0x2b3   : > { %v1002_v42 = vpop.permute.xlu1 %1001  ;;  %v992_v8 = vpop.permute.xlu0 %991 }
 0x2b4   : > { %v1015_v0 = vsel %vm1007_vm0, %v1006_v57, %v1002_v42  ;;  %v1004_v7 = vrot.slane %v992_v8, 4 }
 0x2b5   : > { %1035 = vst.msk [vmem:[#allocation2 + $0x2c] sm:$0xf] %vm1028_vm12, %v1015_v0 }
 0x2b6   : > { %1342 = vrot.lane.b32.xlu2 %v6572_v50, %s7924_s20  ;;  %v1010_v1 = vsel %vm1007_vm0, %v1004_v7, %v992_v8  ;;  %v1011_v2 = vsel %vm1007_vm0, %v1004_v7, %v994_v25 }
 0x2b7   : > { %1030 = vst.msk [vmem:[#allocation2 + $0xc] sm:$0xff] %vm6563_vm10, %v1010_v1  ;;  %1472 = vrot.lane.b32.xlu1 %v6572_v50, %s7928_s23  ;;  %1344 = vrot.lane.b32.xlu0 %v1327_v3, %s7924_s20 }
 0x2b8   : > { %1031 = vst.msk [vmem:[#allocation2 + $0x14] sm:$0xf] %vm1028_vm12, %v1011_v2 }
 0x2bb   : > { %v996_v4 = vpop.permute.xlu1 %995 }
 0x2bc   : > { %v1055_v5 = vld [vmem:[#allocation2 + $0x2c] sm:$0xf]  ;;  %v1005_v11 = vrot.slane %v996_v4, 4 }
 0x2bd   : > { %1064 = vst.msk [vmem:[#allocation3 + $0x2c] sm:$0xf] %vm1057_vm13, %v1055_v5  ;;  %v1203_v8 = vld [vmem:[#allocation2 + $0x2c] sm:$0xf] }
 0x2be   : > { %1279 = vrot.lane.b32.xlu2 %v1262_v15, %s7920_s17  ;;  %v1012_v19 = vsel %vm1007_vm0, %v1005_v11, %v996_v4  ;;  %v1013_v22 = vsel %vm1007_vm0, %v1005_v11, %v998_v60  ;;  %v6610_v45 = vld [vmem:[#allocation2 + $0xc] sm:$0xff] }
 0x2bf   : > { %1032 = vst.msk [vmem:[#allocation2 + $0x18] sm:$0xff] %vm6563_vm10, %v1012_v19  ;;  %1409 = vrot.lane.b32.xlu1 %v1392_v23, %s7926_s21  ;;  %1216 = vrot.lane.b32.xlu0 %v6610_v45, %s7942_s22  ;;  %v1051_v53 = vld [vmem:[#allocation2 + $0x14] sm:$0xf]  ;;  %v1138_v5 = vld [vmem:[#allocation2 + $0x2c] sm:$0xf] }
 0x2c0   : > { %1033 = vst.msk [vmem:[#allocation2 + $0x20] sm:$0xf] %vm1028_vm12, %v1013_v22  ;;  %v1134_v24 = vld [vmem:[#allocation2 + $0x14] sm:$0xf]  ;;  %v1072_v15 = vld [vmem:[#allocation2 + $0x2c] sm:$0xf] }
 0x2c1   : > { %1059 = vst [vmem:[#allocation3 + $0xc] sm:$0xff] %v6610_v45  ;;  %v1199_v26 = vld [vmem:[#allocation2 + $0x14] sm:$0xf] }
 0x2c2   : > { %1060 = vst.msk [vmem:[#allocation3 + $0x14] sm:$0xf] %vm1057_vm13, %v1051_v53  ;;  %v1068_v6 = vld [vmem:[#allocation2 + $0x14] sm:$0xf] }
 0x2c3   : > { %v1459_v38 = vld [vmem:[#allocation2 + $0x14] sm:$0xf] }
 0x2c4   : > { %v1329_v39 = vld [vmem:[#allocation2 + $0x14] sm:$0xf] }
 0x2c5   : > { %v1394_v48 = vld [vmem:[#allocation2 + $0x14] sm:$0xf] }
 0x2c6   : > { %1151 = vrot.lane.b32.xlu2 %v6610_v45, %s7940_s28  ;;  %v6622_v62 = vld [vmem:[#allocation2 + $0x18] sm:$0xff]  ;;  %v1264_v43 = vld [vmem:[#allocation2 + $0x14] sm:$0xf] }
 0x2c7   : > { %1277 = vrot.lane.b32.xlu1 %v6572_v50, %s7920_s17  ;;  %1153 = vrot.lane.b32.xlu0 %v1134_v24, %s7940_s28  ;;  %1061 = vst [vmem:[#allocation3 + $0x18] sm:$0xff] %v6622_v62  ;;  %v1053_v25 = vld [vmem:[#allocation2 + $0x20] sm:$0xf] }
 0x2c8   : > { %1062 = vst.msk [vmem:[#allocation3 + $0x20] sm:$0xf] %vm1057_vm13, %v1053_v25  ;;  %v1201_v51 = vld [vmem:[#allocation2 + $0x20] sm:$0xf] }
 0x2c9   : > { %v1070_v54 = vld [vmem:[#allocation2 + $0x20] sm:$0xf] }
 0x2ca   : > { %v1136_v55 = vld [vmem:[#allocation2 + $0x20] sm:$0xf] }
 0x2cb   : > { %v1461_v56 = vld [vmem:[#allocation2 + $0x20] sm:$0xf] }
 0x2cc   : > { %v1266_v57 = vld [vmem:[#allocation2 + $0x20] sm:$0xf] }
 0x2cd   : > { %v1396_v58 = vld [vmem:[#allocation2 + $0x20] sm:$0xf] }
 0x2ce   : > { %1085 = vrot.lane.b32.xlu2 %v6610_v45, %s7938_s27  ;;  %v1331_v61 = vld [vmem:[#allocation2 + $0x20] sm:$0xf] }
 0x2cf   : > { %1218 = vrot.lane.b32.xlu1 %v1199_v26, %s7942_s22  ;;  %1087 = vrot.lane.b32.xlu0 %v1068_v6, %s7938_s27 }
 0x2d6   : > { %1411 = vrot.lane.b32.xlu2 %v6610_v45, %s7926_s21 }
 0x2d7   : > { %1478 = vrot.lane.b32.xlu1 %v1459_v38, %s7928_s23  ;;  %1476 = vrot.lane.b32.xlu0 %v6610_v45, %s7928_s23 }
 0x2de   : > { %1348 = vrot.lane.b32.xlu2 %v1329_v39, %s7924_s20 }
 0x2df   : > { %1346 = vrot.lane.b32.xlu1 %v6610_v45, %s7924_s20  ;;  %1413 = vrot.lane.b32.xlu0 %v1394_v48, %s7926_s21 }
 0x2e6   : > { %1155 = vrot.lane.b32.xlu2 %v6622_v62, %s7940_s28 }
 0x2e7   : > { %1222 = vrot.lane.b32.xlu1 %v1201_v51, %s7942_s22  ;;  %1220 = vrot.lane.b32.xlu0 %v6622_v62, %s7942_s22 }
 0x2ee   : > { %1091 = vrot.lane.b32.xlu2 %v1070_v54, %s7938_s27 }
 0x2ef   : > { %1089 = vrot.lane.b32.xlu1 %v6622_v62, %s7938_s27  ;;  %1157 = vrot.lane.b32.xlu0 %v1136_v55, %s7940_s28  ;;  %v1463_v55 = vld [vmem:[#allocation2 + $0x2c] sm:$0xf] }
 0x2f6   : > { %1480 = vrot.lane.b32.xlu2 %v6622_v62, %s7928_s23 }
 0x2f7   : > { %1350 = vrot.lane.b32.xlu1 %v6622_v62, %s7924_s20  ;;  %1482 = vrot.lane.b32.xlu0 %v1461_v56, %s7928_s23 }
 0x2fe   : > { %1415 = vrot.lane.b32.xlu2 %v6622_v62, %s7926_s21 }
 0x2ff   : > { %1287 = vrot.lane.b32.xlu1 %v1266_v57, %s7920_s17  ;;  %1417 = vrot.lane.b32.xlu0 %v1396_v58, %s7926_s21 }
 0x300   : > { %v1215_v60 = vpop.permute.xlu2 %1214 }
 0x301   : > { %1254 = vst.msk [vmem:[#allocation3 + $0x98] sm:$0xf] %vm1057_vm13, %v1215_v60  ;;  %v1229_v2 = vrot.slane %v1215_v60, 4 }
 0x306   : > { %1352 = vrot.lane.b32.xlu2 %v1331_v61, %s7924_s20 }
 0x307   : > { %1283 = vrot.lane.b32.xlu1 %v1264_v43, %s7920_s17  ;;  %1285 = vrot.lane.b32.xlu0 %v6622_v62, %s7920_s17 }
 0x308   : > { %v1475_v42 = vpop.permute.xlu2 %1474 }
 0x309   : > { %1514 = vst.msk [vmem:[#allocation3 + $0x158] sm:$0xf] %vm1057_vm13, %v1475_v42  ;;  %v1489_v61 = vrot.slane %v1475_v42, 4 }
 0x30e   : > { %1224 = vrot.lane.b32.xlu2 %v6591_v63, %s7942_s22 }
 0x30f   : > { %1226 = vrot.lane.b32.xlu0 %v1203_v8, %s7942_s22  ;;  %1159 = vrot.lane.b32.xlu1 %v6591_v63, %s7940_s28 }
 0x310   : > { %v1343_v0 = vpop.permute.xlu2 %1342 }
 0x311   : > { %v1213_v7 = vpop.permute.xlu1 %1212  ;;  %v1148_v1 = vpop.permute.xlu0 %1147  ;;  %v1358_v43 = vrot.slane %v1343_v0, 4 }
 0x312   : > { %v1228_v3 = vrot.slane %v1213_v7, 4  ;;  %v1163_v53 = vrot.slane %v1148_v1, 4 }
 0x314   : > { %v1236_v4 = vsel %vm693_vm6, %v1228_v3, %v1229_v2  ;;  %v1398_v3 = vld [vmem:[#allocation2 + $0x2c] sm:$0xf] }
 0x315   : > { %v1238_v11 = vsel %vm595_vm8, %v1213_v7, %v1236_v4 }
 0x316   : > { %1161 = vrot.lane.b32.xlu2 %v1138_v5, %s7940_s28  ;;  %1253 = vst [vmem:[#allocation3 + $0x90] sm:$0xff] %v1238_v11  ;;  %v1333_v11 = vld [vmem:[#allocation2 + $0x2c] sm:$0xf] }
 0x317   : > { %1281 = vrot.lane.b32.xlu0 %v6610_v45, %s7920_s17  ;;  %1095 = vrot.lane.b32.xlu1 %v1072_v15, %s7938_s27 }
 0x318   : > { %v6677_v19 = vpop.permute.xlu2 %1279 }
 0x319   : > { %1319 = vst.msk [vmem:[#allocation3 + $0xc8] sm:$0xf] %vm1057_vm13, %v6677_v19  ;;  %v1150_v22 = vpop.permute.xlu1 %1149  ;;  %v1082_v23 = vpop.permute.xlu0 %1081 }
 0x31a   : > { %v1164_v24 = vrot.slane %v1150_v22, 4  ;;  %1189 = vst.msk [vmem:[#allocation3 + $0x68] sm:$0xf] %vm1057_vm13, %v1150_v22  ;;  %v1097_v48 = vrot.slane %v1082_v23, 4 }
 0x31c   : > { %v1171_v25 = vsel %vm693_vm6, %v1163_v53, %v1164_v24 }
 0x31d   : > { %v1173_v26 = vsel %vm576_vm9, %v1148_v1, %v1171_v25 }
 0x31e   : > { %1545 = vrot.lane.b32.xlu2 %v6622_v62, %s7922_s26  ;;  %1188 = vst [vmem:[#allocation3 + $0x60] sm:$0xff] %v1173_v26  ;;  %v1526_v62 = vld [vmem:[#allocation2 + $0x20] sm:$0xf] }
 0x31f   : > { %1484 = vrot.lane.b32.xlu1 %v6591_v63, %s7928_s23  ;;  %1093 = vrot.lane.b32.xlu0 %v6591_v63, %s7938_s27 }
 0x320   : > { %v1152_v6 = vpop.permute.xlu2 %1151 }
 0x321   : > { %v1084_v38 = vpop.permute.xlu1 %1083  ;;  %v1408_v39 = vpop.permute.xlu0 %1407 }
 0x322   : > { %v1098_v51 = vrot.slane %v1084_v38, 4  ;;  %1124 = vst.msk [vmem:[#allocation3 + $0x38] sm:$0xf] %vm1057_vm13, %v1084_v38  ;;  %v1294_v38 = vrot.slane %v6677_v19, 4 }
 0x324   : > { %v1106_v54 = vsel %vm693_vm6, %v1097_v48, %v1098_v51 }
 0x325   : > { %v1108_v56 = vsel %vm558_vm7, %v1082_v23, %v1106_v54  ;;  %v1423_v23 = vrot.slane %v1408_v39, 4 }
 0x326   : > { %1486 = vrot.lane.b32.xlu2 %v1463_v55, %s7928_s23  ;;  %1123 = vst [vmem:[#allocation3 + $0x30] sm:$0xff] %v1108_v56  ;;  %v1528_v56 = vld [vmem:[#allocation2 + $0x2c] sm:$0xf]  ;;  %s7955_s23 = smov 92  }
 0x327   : > { %1419 = vrot.lane.b32.xlu1 %v6591_v63, %s7926_s21  ;;  %1547 = vrot.lane.b32.xlu0 %v1526_v62, %s7922_s26 }
 0x328   : > { %v6697_v57 = vpop.permute.xlu2 %1085 }
 0x329   : > { %v1473_v58 = vpop.permute.xlu1 %1472  ;;  %v1345_v60 = vpop.permute.xlu0 %1344 }
 0x32a   : > { %v1488_v8 = vrot.slane %v1473_v58, 4  ;;  %v1359_v7 = vrot.slane %v1345_v60, 4  ;;  %1384 = vst.msk [vmem:[#allocation3 + $0xf8] sm:$0xf] %vm1057_vm13, %v1345_v60  ;;  %v1268_v60 = vld [vmem:[#allocation2 + $0x2c] sm:$0xf] }
 0x32c   : > { %v1496_v1 = vsel %vm693_vm6, %v1488_v8, %v1489_v61  ;;  %v1366_v2 = vsel %vm693_vm6, %v1358_v43, %v1359_v7  ;;  %v1099_v8 = vrot.slane %v6697_v57, 4 }
 0x32d   : > { %v1498_v4 = vsel %vm669_vm2, %v1473_v58, %v1496_v1  ;;  %v1368_v5 = vsel %vm632_vm4, %v1343_v0, %v1366_v2  ;;  %v1522_v58 = vld [vmem:[#allocation2 + $0x8] sm:$0xf] }
 0x32e   : > { %1421 = vrot.lane.b32.xlu2 %v1398_v3, %s7926_s21  ;;  %1513 = vst [vmem:[#allocation3 + $0x150] sm:$0xff] %v1498_v4  ;;  %v1046_v4 = vld [vmem:[%s7913_s9 + $0x10] sm:$0xff]  ;;  %s7954_s21 = smov 91  }
 0x32f   : > { %1383 = vst [vmem:[#allocation3 + $0xf0] sm:$0xff] %v1368_v5  ;;  %1356 = vrot.lane.b32.xlu1 %v1333_v11, %s7924_s20  ;;  %1537 = vrot.lane.b32.xlu0 %v6572_v50, %s7922_s26 }
 0x330   : > { %v6708_v42 = vpop.permute.xlu2 %1411 }
 0x331   : > { %v1410_v15 = vpop.permute.xlu1 %1409  ;;  %v1217_v22 = vpop.permute.xlu0 %1216 }
 0x332   : > { %v1424_v53 = vrot.slane %v1410_v15, 4  ;;  %1449 = vst.msk [vmem:[#allocation3 + $0x128] sm:$0xf] %vm1057_vm13, %v1410_v15  ;;  %v1230_v7 = vrot.slane %v1217_v22, 4  ;;  %v1524_v15 = vld [vmem:[#allocation2 + $0x14] sm:$0xf] }
 0x334   : > { %v1431_v0 = vsel %vm693_vm6, %v1423_v23, %v1424_v53 }
 0x335   : > { %v1433_v24 = vsel %vm650_vm3, %v1408_v39, %v1431_v0  ;;  %v1165_v39 = vrot.slane %v1152_v6, 4 }
 0x336   : > { %1289 = vrot.lane.b32.xlu2 %v6591_v63, %s7920_s17  ;;  %1448 = vst [vmem:[#allocation3 + $0x120] sm:$0xff] %v1433_v24 }
 0x337   : > { %1549 = vrot.lane.b32.xlu1 %v6591_v63, %s7922_s26  ;;  %1354 = vrot.lane.b32.xlu0 %v6591_v63, %s7924_s20  ;;  %s7959_s20 = smov 110  }
 0x338   : > { %v6719_v50 = vpop.permute.xlu2 %1348 }
 0x339   : > { %1386 = vst.msk [vmem:[#allocation3 + $0x104] sm:$0xf] %vm1057_vm13, %v6719_v50  ;;  %v1278_v25 = vpop.permute.xlu1 %1277  ;;  %v1154_v26 = vpop.permute.xlu0 %1153 }
 0x33a   : > { %v1293_v48 = vrot.slane %v1278_v25, 4  ;;  %v1166_v51 = vrot.slane %v1154_v26, 4  ;;  %1191 = vst.msk [vmem:[#allocation3 + $0x74] sm:$0xf] %vm1057_vm13, %v1154_v26  ;;  %v1044_v26 = vld [vmem:[%s7913_s9] sm:$0xff] }
 0x33c   : > { %v1301_v54 = vsel %vm693_vm6, %v1293_v48, %v1294_v38  ;;  %v1174_v55 = vsel %vm693_vm6, %v1165_v39, %v1166_v51  ;;  %v1425_v48 = vrot.slane %v6708_v42, 4 }
 0x33d   : > { %v1303_v63 = vsel %vm613_vm1, %v1278_v25, %v1301_v54  ;;  %v1175_v62 = vsel %vm576_vm9, %v1152_v6, %v1174_v55  ;;  %v1045_v25 = vld [vmem:[%s7913_s9 + $0x8] sm:$0xff]  ;;  %v1361_v55 = vrot.slane %v6719_v50, 4  ;;  %v2192_v50 = vld [vmem:[%s7915_s11 + $0x18] sm:$0xff] }
 0x33e   : > { %1551 = vrot.lane.b32.xlu2 %v1528_v56, %s7922_s26  ;;  %1318 = vst [vmem:[#allocation3 + $0xc0] sm:$0xff] %v1303_v63 }
 0x33f   : > { %1190 = vst [vmem:[#allocation3 + $0x6c] sm:$0xff] %v1175_v62  ;;  %1539 = vrot.lane.b32.xlu1 %v1522_v58, %s7922_s26  ;;  %1291 = vrot.lane.b32.xlu0 %v1268_v60, %s7920_s17  ;;  %v2191_v62 = vld [vmem:[%s7915_s11 + $0x10] sm:$0xff] }
 0x340   : > { %v6732_v19 = vpop.permute.xlu2 %1155 }
 0x341   : > { %v1219_v61 = vpop.permute.xlu1 %1218  ;;  %v1088_v43 = vpop.permute.xlu0 %1087 }
 0x342   : > { %v1231_v1 = vrot.slane %v1219_v61, 4  ;;  %1256 = vst.msk [vmem:[#allocation3 + $0xa4] sm:$0xf] %vm1057_vm13, %v1219_v61  ;;  %v1100_v6 = vrot.slane %v1088_v43, 4  ;;  %v2189_v61 = vld [vmem:[%s7915_s11] sm:$0xff] }
 0x343   : > { %1126 = vst.msk [vmem:[#allocation3 + $0x44] sm:$0xf] %vm1057_vm13, %v1088_v43 }
 0x344   : > { %v1239_v2 = vsel %vm693_vm6, %v1230_v7, %v1231_v1  ;;  %v1109_v3 = vsel %vm693_vm6, %v1099_v8, %v1100_v6 }
 0x345   : > { %v1240_v5 = vsel %vm595_vm8, %v1217_v22, %v1239_v2  ;;  %v1110_v11 = vsel %vm558_vm7, %v6697_v57, %v1109_v3 }
 0x346   : > { %1541 = vrot.lane.b32.xlu2 %v6610_v45, %s7922_s26  ;;  %1255 = vst [vmem:[#allocation3 + $0x9c] sm:$0xff] %v1240_v5  ;;  %v1047_v45 = vld [vmem:[%s7913_s9 + $0x18] sm:$0xff] }
 0x347   : > { %1125 = vst [vmem:[#allocation3 + $0x3c] sm:$0xff] %v1110_v11  ;;  %1670 = vperm.xlu1 %6159, %v1046_v4   ;;  %1543 = vrot.lane.b32.xlu0 %v1524_v15, %s7922_s26  ;;  %v2190_v4 = vld [vmem:[%s7915_s11 + $0x8] sm:$0xff]  ;;  %v5386_v11 = vld [vmem:[%s7911_s7 + $0x30] sm:$0xff]  ;;  %s7956_s26 = smov 108  }
 0x348   : > { %v6748_v23 = vpop.permute.xlu2 %1091 }
 0x349   : > { %1128 = vst.msk [vmem:[#allocation3 + $0x50] sm:$0xf] %vm1057_vm13, %v6748_v23  ;;  %v1479_v53 = vpop.permute.xlu1 %1478  ;;  %v1477_v0 = vpop.permute.xlu0 %1476 }
 0x34a   : > { %v1491_v22 = vrot.slane %v1479_v53, 4  ;;  %1516 = vst.msk [vmem:[#allocation3 + $0x164] sm:$0xf] %vm1057_vm13, %v1479_v53  ;;  %v1490_v57 = vrot.slane %v1477_v0, 4 }
 0x34c   : > { %v1499_v24 = vsel %vm693_vm6, %v1490_v57, %v1491_v22 }
 0x34d   : > { %v1500_v38 = vsel %vm669_vm2, %v1477_v0, %v1499_v24  ;;  %v1167_v0 = vrot.slane %v6732_v19, 4 }
 0x34e   : > { %1675 = vperm.xlu2 %6160, %v1047_v45   ;;  %1515 = vst [vmem:[#allocation3 + $0x15c] sm:$0xff] %v1500_v38  ;;  %v1102_v45 = vrot.slane %v6748_v23, 4 }
 0x34f   : > { %1665 = vperm.xlu1 %6159, %v1045_v25   ;;  %1660 = vperm.xlu0 %6161, %v1044_v26   ;;  %v5384_v26 = vld [vmem:[%s7911_s7 + $0x20] sm:$0xff] }
 0x350   : > { %v6764_v39 = vpop.permute.xlu2 %1480 }
 0x351   : > { %v1347_v51 = vpop.permute.xlu1 %1346  ;;  %v1414_v54 = vpop.permute.xlu0 %1413 }
 0x352   : > { %v1360_v56 = vrot.slane %v1347_v51, 4  ;;  %v1426_v63 = vrot.slane %v1414_v54, 4  ;;  %1451 = vst.msk [vmem:[#allocation3 + $0x134] sm:$0xf] %vm1057_vm13, %v1414_v54 }
 0x354   : > { %v1369_v58 = vsel %vm693_vm6, %v1360_v56, %v1361_v55  ;;  %v1434_v60 = vsel %vm693_vm6, %v1425_v48, %v1426_v63 }
 0x355   : > { %v1370_v43 = vsel %vm632_vm4, %v1347_v51, %v1369_v58  ;;  %v1435_v8 = vsel %vm650_vm3, %v6708_v42, %v1434_v60  ;;  %v5387_v42 = vld [vmem:[%s7911_s7 + $0x38] sm:$0xff]  ;;  %v5385_v51 = vld [vmem:[%s7911_s7 + $0x28] sm:$0xff] }
 0x356   : > { %2211 = vperm.xlu2 %6160, %v2191_v62   ;;  %1385 = vst [vmem:[#allocation3 + $0xfc] sm:$0xff] %v1370_v43  ;;  %v1492_v62 = vrot.slane %v6764_v39, 4 }
 0x357   : > { %1450 = vst [vmem:[#allocation3 + $0x12c] sm:$0xff] %v1435_v8  ;;  %2201 = vperm.xlu1 %6159, %v2189_v61   ;;  %2216 = vperm.xlu0 %6161, %v2192_v50  }
 0x358   : > { %v1416_v7 = vpop.permute.xlu2 %1415 }
 0x359   : > { %v1223_v1 = vpop.permute.xlu1 %1222  ;;  %v1221_v6 = vpop.permute.xlu0 %1220 }
 0x35a   : > { %v1233_v2 = vrot.slane %v1223_v1, 4  ;;  %1258 = vst.msk [vmem:[#allocation3 + $0xb0] sm:$0xf] %vm1057_vm13, %v1223_v1  ;;  %v1232_v3 = vrot.slane %v1221_v6, 4 }
 0x35c   : > { %v1241_v5 = vsel %vm693_vm6, %v1232_v3, %v1233_v2  ;;  %v1427_v3 = vrot.slane %v1416_v7, 4 }
 0x35d   : > { %v1242_v15 = vsel %vm595_vm8, %v1221_v6, %v1241_v5 }
 0x35e   : > { %2206 = vperm.xlu2 %6160, %v2190_v4   ;;  %1257 = vst [vmem:[#allocation3 + $0xa8] sm:$0xff] %v1242_v15 }
 0x35f   : > { %2349 = vperm.xlu1 %6159, %v5387_v42   ;;  %2344 = vperm.xlu0 %6161, %v5386_v11  }
 0x360   : > { %v1353_v53 = vpop.permute.xlu2 %1352 }
 0x361   : > { %1388 = vst.msk [vmem:[#allocation3 + $0x110] sm:$0xf] %vm1057_vm13, %v1353_v53  ;;  %v1090_v22 = vpop.permute.xlu1 %1089  ;;  %v1158_v57 = vpop.permute.xlu0 %1157  ;;  %v1363_v58 = vrot.slane %v1353_v53, 4 }
 0x362   : > { %v1101_v24 = vrot.slane %v1090_v22, 4  ;;  %v1168_v25 = vrot.slane %v1158_v57, 4  ;;  %1193 = vst.msk [vmem:[#allocation3 + $0x80] sm:$0xf] %vm1057_vm13, %v1158_v57 }
 0x364   : > { %v1111_v38 = vsel %vm693_vm6, %v1101_v24, %v1102_v45  ;;  %v1176_v48 = vsel %vm693_vm6, %v1167_v0, %v1168_v25 }
 0x365   : > { %v1112_v54 = vsel %vm558_vm7, %v1090_v22, %v1111_v38  ;;  %v1177_v23 = vsel %vm576_vm9, %v6732_v19, %v1176_v48 }
 0x366   : > { %2334 = vperm.xlu2 %6160, %v5384_v26   ;;  %1127 = vst [vmem:[#allocation3 + $0x48] sm:$0xff] %v1112_v54 }
 0x367   : > { %1192 = vst [vmem:[#allocation3 + $0x78] sm:$0xff] %v1177_v23  ;;  %2339 = vperm.xlu0 %6161, %v5385_v51  }
 0x368   : > { %v1225_v55 = vpop.permute.xlu2 %1224 }
 0x369   : > { %v1351_v56 = vpop.permute.xlu1 %1350  ;;  %v1483_v63 = vpop.permute.xlu0 %1482 }
 0x36a   : > { %v1362_v60 = vrot.slane %v1351_v56, 4  ;;  %v1493_v61 = vrot.slane %v1483_v63, 4  ;;  %1518 = vst.msk [vmem:[#allocation3 + $0x170] sm:$0xf] %vm1057_vm13, %v1483_v63 }
 0x36c   : > { %v1371_v50 = vsel %vm693_vm6, %v1362_v60, %v1363_v58  ;;  %v1501_v43 = vsel %vm693_vm6, %v1492_v62, %v1493_v61 }
 0x36d   : > { %v1372_v19 = vsel %vm632_vm4, %v1351_v56, %v1371_v50  ;;  %v1502_v8 = vsel %vm669_vm2, %v6764_v39, %v1501_v43  ;;  %v5230_v43 = vld [vmem:[#allocation3 + $0xa8] sm:$0xf] }
 0x36e   : > { %1387 = vst [vmem:[#allocation3 + $0x108] sm:$0xff] %v1372_v19 }
 0x36f   : > { %1517 = vst [vmem:[#allocation3 + $0x168] sm:$0xff] %v1502_v8  ;;  %v5935_v8 = vld [vmem:[#allocation3 + $0xac] sm:$0xf] }
 0x370   : > { %v1162_v1 = vpop.permute.xlu2 %1161 }
 0x371   : > { %1195 = vst.msk [vmem:[#allocation3 + $0x8c] sm:$0xf] %vm1057_vm13, %v1162_v1  ;;  %v1288_v6 = vpop.permute.xlu1 %1287  ;;  %v1418_v2 = vpop.permute.xlu0 %1417  ;;  %v1170_v26 = vrot.slane %v1162_v1, 4 }
 0x372   : > { %1323 = vst.msk [vmem:[#allocation3 + $0xe0] sm:$0xf] %vm1057_vm13, %v1288_v6  ;;  %v1428_v4 = vrot.slane %v1418_v2, 4  ;;  %v1298_v53 = vrot.slane %v1288_v6, 4 }
 0x373   : > { %1453 = vst.msk [vmem:[#allocation3 + $0x140] sm:$0xf] %vm1057_vm13, %v1418_v2 }
 0x374   : > { %v1436_v5 = vsel %vm693_vm6, %v1427_v3, %v1428_v4  ;;  %v5933_v3 = vld [vmem:[#allocation3 + $0x98] sm:$0xf0]  ;;  %v5220_v4 = vld [vmem:[#allocation3 + $0x9c] sm:$0xf0] }
 0x375   : > { %v1437_v42 = vsel %vm650_vm3, %v1416_v7, %v1436_v5  ;;  %v1234_v7 = vrot.slane %v1225_v55, 4 }
 0x376   : > { %1452 = vst [vmem:[#allocation3 + $0x138] sm:$0xff] %v1437_v42  ;;  %v5218_v42 = vld [vmem:[#allocation3 + $0x90] sm:$0xf] }
 0x378   : > { %v6822_v11 = vpop.permute.xlu2 %1545 }
 0x379   : > { %v1284_v39 = vpop.permute.xlu1 %1283  ;;  %v1286_v15 = vpop.permute.xlu0 %1285 }
 0x37a   : > { %1321 = vst.msk [vmem:[#allocation3 + $0xd4] sm:$0xf] %vm1057_vm13, %v1284_v39  ;;  %v1297_v0 = vrot.slane %v1286_v15, 4  ;;  %v1296_v60 = vrot.slane %v1284_v39, 4  ;;  %v5932_v39 = vld [vmem:[#allocation3 + $0x94] sm:$0xf] }
 0x37c   : > { %v1306_v22 = vsel %vm693_vm6, %v1297_v0, %v1298_v53  ;;  %v5219_v0 = vor.u32 %v5933_v3, %v5218_v42 }
 0x37d   : > { %v1307_v57 = vsel %vm613_vm1, %v1286_v15, %v1306_v22  ;;  %v5223_v22 = vor.u32 %v5932_v39, %v5220_v4 }
 0x37e   : > { %1322 = vst [vmem:[#allocation3 + $0xd8] sm:$0xff] %v1307_v57 }
 0x380   : > { %v1487_v45 = vpop.permute.xlu2 %1486 }
 0x381   : > { %1520 = vst.msk [vmem:[#allocation3 + $0x17c] sm:$0xf] %vm1057_vm13, %v1487_v45  ;;  %v1227_v24 = vpop.permute.xlu0 %1226  ;;  %v1160_v25 = vpop.permute.xlu1 %1159  ;;  %v1495_v57 = vrot.slane %v1487_v45, 4 }
 0x382   : > { %v1235_v38 = vrot.slane %v1227_v24, 4  ;;  %1260 = vst.msk [vmem:[#allocation3 + $0xbc] sm:$0xf] %vm1057_vm13, %v1227_v24  ;;  %v1169_v48 = vrot.slane %v1160_v25, 4 }
 0x384   : > { %v1243_v51 = vsel %vm693_vm6, %v1234_v7, %v1235_v38  ;;  %v1178_v54 = vsel %vm693_vm6, %v1169_v48, %v1170_v26 }
 0x385   : > { %v1244_v23 = vsel %vm595_vm8, %v1225_v55, %v1243_v51  ;;  %v1179_v56 = vsel %vm576_vm9, %v1160_v25, %v1178_v54 }
 0x386   : > { %1259 = vst [vmem:[#allocation3 + $0xb4] sm:$0xff] %v1244_v23 }
 0x387   : > { %1194 = vst [vmem:[#allocation3 + $0x84] sm:$0xff] %v1179_v56  ;;  %v5206_v56 = vld [vmem:[#allocation3 + $0x78] sm:$0xf] }
 0x388   : > { %v6833_v63 = vpop.permute.xlu2 %1421 }
 0x389   : > { %1455 = vst.msk [vmem:[#allocation3 + $0x14c] sm:$0xf] %vm1057_vm13, %v6833_v63  ;;  %v1282_v62 = vpop.permute.xlu0 %1281  ;;  %v1096_v58 = vpop.permute.xlu1 %1095  ;;  %v1430_v3 = vrot.slane %v6833_v63, 4 }
 0x38a   : > { %v1295_v61 = vrot.slane %v1282_v62, 4  ;;  %1130 = vst.msk [vmem:[#allocation3 + $0x5c] sm:$0xf] %vm1057_vm13, %v1096_v58  ;;  %v1104_v24 = vrot.slane %v1096_v58, 4  ;;  %v5927_v58 = vld [vmem:[#allocation3 + $0x68] sm:$0xf0] }
 0x38c   : > { %v1304_v50 = vsel %vm693_vm6, %v1295_v61, %v1296_v60  ;;  %v5196_v61 = vld [vmem:[#allocation3 + $0x6c] sm:$0xf0] }
 0x38d   : > { %v1305_v55 = vsel %vm613_vm1, %v1282_v62, %v1304_v50  ;;  %v5936_v19 = vld [vmem:[#allocation3 + $0xb0] sm:$0xf0]  ;;  %v5232_v1 = vld [vmem:[#allocation3 + $0xb4] sm:$0xf0]  ;;  %v5929_v62 = vld [vmem:[#allocation3 + $0x7c] sm:$0xf] }
 0x38e   : > { %1320 = vst [vmem:[#allocation3 + $0xcc] sm:$0xff] %v1305_v55  ;;  %v5231_v6 = vor.u32 %v5936_v19, %v5230_v43  ;;  %v5235_v2 = vor.u32 %v5935_v8, %v5232_v1  ;;  %v5930_v26 = vld [vmem:[#allocation3 + $0x80] sm:$0xf0]  ;;  %v5208_v38 = vld [vmem:[#allocation3 + $0x84] sm:$0xf0] }
 0x38f   : > { %v5207_v60 = vor.u32 %v5930_v26, %v5206_v56  ;;  %v5211_v45 = vor.u32 %v5929_v62, %v5208_v38  ;;  %v5194_v43 = vld [vmem:[#allocation3 + $0x60] sm:$0xf]  ;;  %v5926_v55 = vld [vmem:[#allocation3 + $0x64] sm:$0xf] }
 0x390   : > { %v6840_v5 = vpop.permute.xlu2 %1289  ;;  %2002 = vmatpush.bf16.msrb.mxu1 %v5231_v6  ;;  %2059 = vmatpush.bf16.msra.mxu0 %v5235_v2  ;;  %v5195_v1 = vor.u32 %v5927_v58, %v5194_v43  ;;  %v5199_v6 = vor.u32 %v5926_v55, %v5196_v61  ;;  %v1557_v2 = vrot.slane %v6822_v11, 4  ;;  %v5920_v58 = vld [vmem:[#allocation3 + $0x34] sm:$0xf]  ;;  %v5158_v55 = vld [vmem:[#allocation3 + $0x18] sm:$0xf] }
 0x391   : > { %v1485_v15 = vpop.permute.xlu1 %1484  ;;  %v1094_v53 = vpop.permute.xlu0 %1093 }
 0x392   : > { %v1494_v25 = vrot.slane %v1485_v15, 4  ;;  %v1103_v7 = vrot.slane %v1094_v53, 4 }
 0x394   : > { %v1503_v48 = vsel %vm693_vm6, %v1494_v25, %v1495_v57  ;;  %v1113_v51 = vsel %vm693_vm6, %v1103_v7, %v1104_v24  ;;  %2003 = vmatpush.bf16.msrb.mxu1 %v5219_v0  ;;  %2060 = vmatpush.bf16.msra.mxu0 %v5223_v22  ;;  %v5326_v57 = vld [vmem:[#allocation3 + $0x168] sm:$0xf]  ;;  %v5923_v25 = vld [vmem:[#allocation3 + $0x4c] sm:$0xf] }
 0x395   : > { %v1504_v54 = vsel %vm669_vm2, %v1485_v15, %v1503_v48  ;;  %v1114_v23 = vsel %vm558_vm7, %v1094_v53, %v1113_v51  ;;  %v5182_v53 = vld [vmem:[#allocation3 + $0x48] sm:$0xf]  ;;  %v5957_v51 = vld [vmem:[#allocation3 + $0x158] sm:$0xf0] }
 0x396   : > { %1519 = vst [vmem:[#allocation3 + $0x174] sm:$0xff] %v1504_v54  ;;  %v5921_v54 = vld [vmem:[#allocation3 + $0x38] sm:$0xf0] }
 0x397   : > { %1129 = vst [vmem:[#allocation3 + $0x54] sm:$0xff] %v1114_v23  ;;  %v5172_v23 = vld [vmem:[#allocation3 + $0x3c] sm:$0xf0] }
 0x398   : > { %v6846_v50 = vpop.permute.xlu2 %1551  ;;  %2004 = vmatpush.bf16.msrb.mxu1 %v5207_v60  ;;  %2061 = vmatpush.bf16.msra.mxu0 %v5211_v45  ;;  %v5170_v60 = vld [vmem:[#allocation3 + $0x30] sm:$0xf]  ;;  %v5175_v43 = vor.u32 %v5920_v58, %v5172_v23 }
 0x399   : > { %1585 = vst.msk [vmem:[#allocation3 + $0x1ac] sm:$0xf] %vm1057_vm13, %v6846_v50  ;;  %v1420_v19 = vpop.permute.xlu1 %1419  ;;  %v1548_v8 = vpop.permute.xlu0 %1547  ;;  %v5171_v61 = vor.u32 %v5921_v54, %v5170_v60  ;;  %v5334_v60 = vld [vmem:[#allocation3 + $0x170] sm:$0xf] }
 0x39a   : > { %v1429_v4 = vrot.slane %v1420_v19, 4  ;;  %v1558_v42 = vrot.slane %v1548_v8, 4  ;;  %1583 = vst.msk [vmem:[#allocation3 + $0x1a0] sm:$0xf] %vm1057_vm13, %v1548_v8  ;;  %v5302_v8 = vld [vmem:[#allocation3 + $0x138] sm:$0xf] }
 0x39c   : > { %v1438_v39 = vsel %vm693_vm6, %v1429_v4, %v1430_v3  ;;  %v1566_v15 = vsel %vm693_vm6, %v1557_v2, %v1558_v42  ;;  %2005 = vmatpush.bf16.msrb.mxu1 %v5195_v1  ;;  %2062 = vmatpush.bf16.msra.mxu0 %v5199_v6  ;;  %v5918_v6 = vld [vmem:[#allocation3 + $0x20] sm:$0xf0]  ;;  %v5160_v3 = vld [vmem:[#allocation3 + $0x24] sm:$0xf0]  ;;  %v5951_v4 = vld [vmem:[#allocation3 + $0x128] sm:$0xf0] }
 0x39d   : > { %v1439_v0 = vsel %vm650_vm3, %v1420_v19, %v1438_v39  ;;  %v1567_v22 = vsel %vm687_vm5, %v6822_v11, %v1566_v15  ;;  %v5960_v24 = vld [vmem:[#allocation3 + $0x170] sm:$0xf0]  ;;  %v5314_v11 = vld [vmem:[#allocation3 + $0x150] sm:$0xf]  ;;  %v5917_v19 = vld [vmem:[#allocation3 + $0x1c] sm:$0xf]  ;;  %v5159_v42 = vor.u32 %v5918_v6, %v5158_v55 }
 0x39e   : > { %1454 = vst [vmem:[#allocation3 + $0x144] sm:$0xff] %v1439_v0  ;;  %v5924_v63 = vld [vmem:[#allocation3 + $0x50] sm:$0xf0]  ;;  %v5327_v7 = vor.u32 %v5960_v24, %v5326_v57  ;;  %v5184_v26 = vld [vmem:[#allocation3 + $0x54] sm:$0xf0]  ;;  %v5315_v45 = vor.u32 %v5957_v51, %v5314_v11  ;;  %v5163_v39 = vor.u32 %v5917_v19, %v5160_v3  ;;  %v1560_v51 = vrot.slane %v6846_v50, 4 }
 0x39f   : > { %1582 = vst [vmem:[#allocation3 + $0x198] sm:$0xff] %v1567_v22  ;;  %v5183_v38 = vor.u32 %v5924_v63, %v5182_v53  ;;  %v5187_v48 = vor.u32 %v5923_v25, %v5184_v26  ;;  %v5915_v15 = vld [vmem:[#allocation3 + $0x8] sm:$0xf0]  ;;  %v5146_v53 = vld [vmem:[#allocation3] sm:$0xf] }
 0x3a0   : > { %2021 = vmatpush.bf16.msrb.mxu2 %v5327_v7  ;;  %v5290_v0 = vld [vmem:[#allocation3 + $0x120] sm:$0xf]  ;;  %v5914_v22 = vld [vmem:[#allocation3 + $0x4] sm:$0xf]  ;;  %v5148_v57 = vld [vmem:[#allocation3 + $0xc] sm:$0xf0] }
 0x3a1   : > { %2006 = vmatpush.bf16.msrb.mxu1 %v5183_v38  ;;  %2063 = vmatpush.bf16.msra.mxu0 %v5187_v48  ;;  %v1357_v56 = vpop.permute.xlu1 %1356  ;;  %v6858_v62 = vpop.permute.xlu0 %1537  ;;  %v5961_v24 = vld [vmem:[#allocation3 + $0x178] sm:$0xf0]  ;;  %v5291_v7 = vor.u32 %v5951_v4, %v5290_v0  ;;  %v5328_v26 = vld [vmem:[#allocation3 + $0x174] sm:$0xf0]  ;;  %v5122_v38 = vld [vmem:[%s7912_s8] sm:$0xf]  ;;  %v5151_v58 = vor.u32 %v5914_v22, %v5148_v57 }
 0x3a2   : > { %1390 = vst.msk [vmem:[#allocation3 + $0x11c] sm:$0xf] %vm1057_vm13, %v1357_v56  ;;  %v5909_v48 = vld [vmem:[%s7912_s8 + $0x8] sm:$0xf0]  ;;  %v1365_v54 = vrot.slane %v1357_v56, 4  ;;  %v1299_v57 = vrot.slane %v6840_v5, 4 }
 0x3a3   : > { %v5316_v56 = vld [vmem:[#allocation3 + $0x15c] sm:$0xf0]  ;;  %v5956_v3 = vld [vmem:[#allocation3 + $0x154] sm:$0xf]  ;;  %v5322_v4 = vld [vmem:[#allocation3 + $0x158] sm:$0xf] }
 0x3a4   : > { %2022 = vmatpush.bf16.msrb.mxu2 %v5315_v45  ;;  %v5147_v45 = vor.u32 %v5915_v15, %v5146_v53  ;;  %v5955_v22 = vld [vmem:[#allocation3 + $0x148] sm:$0xf0] }
 0x3a5   : > { %2007 = vmatpush.bf16.msrb.mxu1 %v5171_v61  ;;  %2064 = vmatpush.bf16.msra.mxu0 %v5175_v43  ;;  %v5954_v1 = vld [vmem:[#allocation3 + $0x140] sm:$0xf0]  ;;  %v5959_v61 = vld [vmem:[#allocation3 + $0x16c] sm:$0xf]  ;;  %v5335_v43 = vor.u32 %v5961_v24, %v5334_v60  ;;  %v5304_v0 = vld [vmem:[#allocation3 + $0x144] sm:$0xf0] }
 0x3a6   : > { %v5303_v2 = vor.u32 %v5954_v1, %v5302_v8  ;;  %v5331_v8 = vor.u32 %v5959_v61, %v5328_v26  ;;  %v6870_v1 = vor.u32 %v5909_v48, %v5122_v38  ;;  %v1553_v24 = vrot.slane %v6858_v62, 4  ;;  %v5310_v26 = vld [vmem:[#allocation3 + $0x140] sm:$0xf]  ;;  %v5292_v61 = vld [vmem:[#allocation3 + $0x12c] sm:$0xf0] }
 0x3a8   : > { %2023 = vmatpush.bf16.msrb.mxu2 %v5303_v2  ;;  %v5958_v2 = vld [vmem:[#allocation3 + $0x160] sm:$0xf0] }
 0x3a9   : > { %2008 = vmatpush.bf16.msrb.mxu1 %v5159_v42  ;;  %2065 = vmatpush.bf16.msra.mxu0 %v5163_v39  ;;  %v1550_v25 = vpop.permute.xlu1 %1549  ;;  %v1355_v63 = vpop.permute.xlu0 %1354  ;;  %v5319_v42 = vor.u32 %v5956_v3, %v5316_v56  ;;  %v5323_v39 = vor.u32 %v5958_v2, %v5322_v4  ;;  %v5298_v56 = vld [vmem:[#allocation3 + $0x128] sm:$0xf]  ;;  %v5945_v3 = vld [vmem:[#allocation3 + $0xf8] sm:$0xf0] }
 0x3aa   : > { %v1559_v23 = vrot.slane %v1550_v25, 4  ;;  %v1364_v11 = vrot.slane %v1355_v63, 4 }
 0x3ac   : > { %v1568_v55 = vsel %vm693_vm6, %v1559_v23, %v1560_v51  ;;  %v1373_v19 = vsel %vm693_vm6, %v1364_v11, %v1365_v54  ;;  %2024 = vmatpush.bf16.msrb.mxu2 %v5291_v7  ;;  %v5953_v7 = vld [vmem:[#allocation3 + $0x13c] sm:$0xf]  ;;  %v5311_v54 = vor.u32 %v5955_v22, %v5310_v26  ;;  %v5952_v23 = vld [vmem:[#allocation3 + $0x130] sm:$0xf0]  ;;  %v5266_v22 = vld [vmem:[#allocation3 + $0xf0] sm:$0xf] }
 0x3ad   : > { %v1569_v6 = vsel %vm687_vm5, %v1550_v25, %v1568_v55  ;;  %v1374_v50 = vsel %vm632_vm4, %v1355_v63, %v1373_v19  ;;  %2009 = vmatpush.bf16.msrb.mxu1 %v5147_v45  ;;  %2066 = vmatpush.bf16.msra.mxu0 %v5151_v58  ;;  %v5307_v51 = vor.u32 %v5953_v7, %v5304_v0  ;;  %v5350_v45 = vld [vmem:[#allocation3 + $0x198] sm:$0xf] }
 0x3ae   : > { %1584 = vst [vmem:[#allocation3 + $0x1a4] sm:$0xff] %v1569_v6 }
 0x3af   : > { %1389 = vst [vmem:[#allocation3 + $0x114] sm:$0xff] %v1374_v50  ;;  %v5950_v50 = vld [vmem:[#allocation3 + $0x124] sm:$0xf] }
 0x3b0   : > { %2010 = vmatmul.bf16.vlgmr.msrb.gmra.mxu1 %v6870_v1  ;;  %2067 = vmatmul.bf16.vlgmr.msra.gmra.mxu0 %v6870_v1  ;;  %v5295_v2 = vor.u32 %v5950_v50, %v5292_v61 }
 0x3b1   : > { %2078 = vmatpush.bf16.msra.mxu1 %v5331_v8  ;;  %2135 = vmatpush.bf16.msrb.mxu0 %v5335_v43  ;;  %v1540_v15 = vpop.permute.xlu1 %1539  ;;  %v1292_v53 = vpop.permute.xlu0 %1291  ;;  %v5278_v43 = vld [vmem:[#allocation3 + $0x108] sm:$0xf] }
 0x3b2   : > { %v1554_v25 = vrot.slane %v1540_v15, 4  ;;  %1579 = vst.msk [vmem:[#allocation3 + $0x188] sm:$0xf] %vm1057_vm13, %v1540_v15  ;;  %v1300_v63 = vrot.slane %v1292_v53, 4  ;;  %v1542_v8 = vpop.permute.xlu2 %1541  ;;  %v5912_v15 = vld [vmem:[%s7912_s8 + $0x20] sm:$0xf0] }
 0x3b3   : > { %1325 = vst.msk [vmem:[#allocation3 + $0xec] sm:$0xf] %vm1057_vm13, %v1292_v53  ;;  %v1555_v53 = vrot.slane %v1542_v8, 4 }
 0x3b4   : > { %v1561_v38 = vsel %vm693_vm6, %v1553_v24, %v1554_v25  ;;  %v1308_v48 = vsel %vm693_vm6, %v1299_v57, %v1300_v63  ;;  %v5267_v57 = vor.u32 %v5945_v3, %v5266_v22  ;;  %v5947_v24 = vld [vmem:[#allocation3 + $0x10c] sm:$0xf]  ;;  %v5286_v25 = vld [vmem:[#allocation3 + $0x110] sm:$0xf] }
 0x3b5   : > { %2079 = vmatpush.bf16.msra.mxu1 %v5319_v42  ;;  %2136 = vmatpush.bf16.msrb.mxu0 %v5323_v39  ;;  %v1563_v11 = vsel %vm687_vm5, %v6858_v62, %v1561_v38  ;;  %v1309_v60 = vsel %vm613_vm1, %v6840_v5, %v1308_v48  ;;  %v5966_v58 = vld [vmem:[#allocation3 + $0x1a0] sm:$0xf0]  ;;  %v5299_v62 = vor.u32 %v5952_v23, %v5298_v56  ;;  %v5134_v5 = vld [vmem:[%s7912_s8 + $0x18] sm:$0xf]  ;;  %v5949_v39 = vld [vmem:[#allocation3 + $0x118] sm:$0xf0] }
 0x3b6   : > { %1578 = vst [vmem:[#allocation3 + $0x180] sm:$0xff] %v1563_v11  ;;  %v5948_v55 = vld [vmem:[#allocation3 + $0x110] sm:$0xf0]  ;;  %v5351_v19 = vor.u32 %v5966_v58, %v5350_v45  ;;  %v5280_v42 = vld [vmem:[#allocation3 + $0x114] sm:$0xf0]  ;;  %v5287_v26 = vor.u32 %v5949_v39, %v5286_v25  ;;  %v6894_v38 = vor.u32 %v5912_v15, %v5134_v5 }
 0x3b7   : > { %1324 = vst [vmem:[#allocation3 + $0xe4] sm:$0xff] %v1309_v60  ;;  %v5279_v6 = vor.u32 %v5948_v55, %v5278_v43  ;;  %v5283_v7 = vor.u32 %v5947_v24, %v5280_v42  ;;  %v5254_v23 = vld [vmem:[#allocation3 + $0xd8] sm:$0xf]  ;;  %v5944_v45 = vld [vmem:[#allocation3 + $0xf4] sm:$0xf] }
 0x3b8   : > { %2046 = vmatpush.bf16.msra.mxu3 %v5351_v19  ;;  %v5274_v58 = vld [vmem:[#allocation3 + $0xf8] sm:$0xf]  ;;  %v5242_v55 = vld [vmem:[#allocation3 + $0xc0] sm:$0xf]  ;;  %v5939_v19 = vld [vmem:[#allocation3 + $0xc8] sm:$0xf0] }
 0x3b9   : > { %2080 = vmatpush.bf16.msra.mxu1 %v5307_v51  ;;  %2137 = vmatpush.bf16.msrb.mxu0 %v5311_v54  ;;  %v1544_v4 = vpop.permute.xlu0 %1543  ;;  %v5268_v51 = vld [vmem:[#allocation3 + $0xfc] sm:$0xf0]  ;;  %v5946_v54 = vld [vmem:[#allocation3 + $0x100] sm:$0xf0]  ;;  %v5352_v50 = vld [vmem:[#allocation3 + $0x1a4] sm:$0xf0]  ;;  %v5243_v5 = vor.u32 %v5939_v19, %v5242_v55 }
 0x3ba   : > { %2025 = vmatpush.bf16.msrb.mxu2 %v5279_v6  ;;  %v1556_v0 = vrot.slane %v1544_v4, 4  ;;  %1581 = vst.msk [vmem:[#allocation3 + $0x194] sm:$0xf] %vm1057_vm13, %v1544_v4  ;;  %v5271_v61 = vor.u32 %v5944_v45, %v5268_v51  ;;  %v5275_v43 = vor.u32 %v5946_v54, %v5274_v58  ;;  %v5124_v56 = vld [vmem:[%s7912_s8 + $0xc] sm:$0xf0] }
 0x3bb   : > { %v5943_v3 = vld [vmem:[#allocation3 + $0xe8] sm:$0xf0]  ;;  %v5965_v4 = vld [vmem:[#allocation3 + $0x19c] sm:$0xf]  ;;  %v5244_v42 = vld [vmem:[#allocation3 + $0xcc] sm:$0xf0] }
 0x3bc   : > { %v1564_v63 = vsel %vm693_vm6, %v1555_v53, %v1556_v0  ;;  %v5937_v39 = vld [vmem:[#allocation3 + $0xb8] sm:$0xf0]  ;;  %v5355_v53 = vor.u32 %v5965_v4, %v5352_v50  ;;  %v5238_v54 = vld [vmem:[#allocation3 + $0xb0] sm:$0xf]  ;;  %v5934_v19 = vld [vmem:[#allocation3 + $0xa0] sm:$0xf0] }
 0x3bd   : > { %2081 = vmatpush.bf16.msra.mxu1 %v5295_v2  ;;  %2138 = vmatpush.bf16.msrb.mxu0 %v5299_v62  ;;  %v1565_v48 = vsel %vm687_vm5, %v1542_v8, %v1564_v63  ;;  %v5908_v8 = vld [vmem:[%s7912_s8 + $0x4] sm:$0xf]  ;;  %v5941_v2 = vld [vmem:[#allocation3 + $0xdc] sm:$0xf]  ;;  %v5262_v62 = vld [vmem:[#allocation3 + $0xe0] sm:$0xf]  ;;  %v5239_v45 = vor.u32 %v5937_v39, %v5238_v54 }
 0x3be   : > { %2026 = vmatpush.bf16.msrb.mxu2 %v5267_v57  ;;  %1580 = vst [vmem:[#allocation3 + $0x18c] sm:$0xff] %v1565_v48  ;;  %v5942_v11 = vld [vmem:[#allocation3 + $0xe0] sm:$0xf0]  ;;  %v5256_v6 = vld [vmem:[#allocation3 + $0xe4] sm:$0xf0]  ;;  %v5127_v0 = vor.u32 %v5908_v8, %v5124_v56  ;;  %v5263_v25 = vor.u32 %v5943_v3, %v5262_v62 }
 0x3bf   : > { %v5255_v60 = vor.u32 %v5942_v11, %v5254_v23  ;;  %v5259_v15 = vor.u32 %v5941_v2, %v5256_v6  ;;  %v5338_v22 = vld [vmem:[#allocation3 + $0x180] sm:$0xf]  ;;  %v5130_v57 = vld [vmem:[%s7912_s8 + $0x8] sm:$0xf]  ;;  %v5910_v24 = vld [vmem:[%s7912_s8 + $0x10] sm:$0xf0] }
 0x3c0   : > { %2015 = vmatmul.bf16.gmra.mxu1 %v6894_v38  ;;  %2072 = vmatmul.bf16.gmra.mxu0 %v6894_v38  ;;  %v5940_v23 = vld [vmem:[#allocation3 + $0xd0] sm:$0xf0]  ;;  %v5358_v11 = vld [vmem:[#allocation3 + $0x1a0] sm:$0xf]  ;;  %v5131_v55 = vor.u32 %v5910_v24, %v5130_v57  ;;  %v5226_v50 = vld [vmem:[#allocation3 + $0x98] sm:$0xf] }
 0x3c1   : > { %2082 = vmatpush.bf16.msra.mxu1 %v5283_v7  ;;  %2139 = vmatpush.bf16.msrb.mxu0 %v5287_v26  ;;  %v5962_v7 = vld [vmem:[#allocation3 + $0x184] sm:$0xf]  ;;  %v5964_v56 = vld [vmem:[#allocation3 + $0x190] sm:$0xf0]  ;;  %v5227_v2 = vor.u32 %v5934_v19, %v5226_v50  ;;  %v5346_v62 = vld [vmem:[#allocation3 + $0x188] sm:$0xf] }
 0x3c2   : > { %2027 = vmatpush.bf16.msrb.mxu2 %v5255_v60  ;;  %v5938_v60 = vld [vmem:[#allocation3 + $0xc4] sm:$0xf]  ;;  %v5931_v3 = vld [vmem:[#allocation3 + $0x88] sm:$0xf0]  ;;  %v5214_v4 = vld [vmem:[#allocation3 + $0x80] sm:$0xf] }
 0x3c3   : > { %v5247_v58 = vor.u32 %v5938_v60, %v5244_v42  ;;  %v5215_v42 = vor.u32 %v5931_v3, %v5214_v4  ;;  %v5928_v39 = vld [vmem:[#allocation3 + $0x70] sm:$0xf0]  ;;  %v5178_v54 = vld [vmem:[#allocation3 + $0x38] sm:$0xf]  ;;  %v5919_v60 = vld [vmem:[#allocation3 + $0x28] sm:$0xf0] }
 0x3c5   : > { %2083 = vmatpush.bf16.msra.mxu1 %v5271_v61  ;;  %2140 = vmatpush.bf16.msrb.mxu0 %v5275_v43  ;;  %v5963_v63 = vld [vmem:[#allocation3 + $0x188] sm:$0xf0]  ;;  %v5340_v26 = vld [vmem:[#allocation3 + $0x18c] sm:$0xf0]  ;;  %v5250_v61 = vld [vmem:[#allocation3 + $0xc8] sm:$0xf] }
 0x3c6   : > { %2028 = vmatpush.bf16.msrb.mxu2 %v5243_v5  ;;  %v5339_v48 = vor.u32 %v5963_v63, %v5338_v22  ;;  %v5343_v51 = vor.u32 %v5962_v7, %v5340_v26  ;;  %v5967_v43 = vld [vmem:[#allocation3 + $0x1a8] sm:$0xf0]  ;;  %v5251_v8 = vor.u32 %v5940_v23, %v5250_v61  ;;  %v5347_v5 = vor.u32 %v5964_v56, %v5346_v62  ;;  %v5202_v22 = vld [vmem:[#allocation3 + $0x68] sm:$0xf]  ;;  %v5190_v7 = vld [vmem:[#allocation3 + $0x50] sm:$0xf] }
 0x3c7   : > { %v5359_v6 = vor.u32 %v5967_v43, %v5358_v11  ;;  %v5203_v57 = vor.u32 %v5928_v39, %v5202_v22  ;;  %v5142_v63 = vld [vmem:[%s7912_s8 + $0x20] sm:$0xf]  ;;  %v5166_v11 = vld [vmem:[#allocation3 + $0x20] sm:$0xf] }
 0x3c8   : > { %2047 = vmatpush.bf16.msra.mxu3 %v5339_v48  ;;  %v5154_v61 = vld [vmem:[#allocation3 + $0x8] sm:$0xf] }
 0x3c9   : > { %2084 = vmatpush.bf16.msra.mxu1 %v5259_v15  ;;  %2141 = vmatpush.bf16.msrb.mxu0 %v5263_v25  ;;  %v5911_v15 = vld [vmem:[%s7912_s8 + $0x1c] sm:$0xf]  ;;  %v5925_v25 = vld [vmem:[#allocation3 + $0x58] sm:$0xf0] }
 0x3ca   : > { %2103 = vmatpush.bf16.msra.mxu2 %v5355_v53  ;;  %v5136_v53 = vld [vmem:[%s7912_s8 + $0x24] sm:$0xf0]  ;;  %v5191_v26 = vor.u32 %v5925_v25, %v5190_v7 }
 0x3cb   : > { %2029 = vmatmul.bf16.vlgmr.msrb.gmra.mxu2 %v5127_v0  ;;  %5360 = vmatmul.msk.bf16.vlgmr.msra.gmra.mxu3 %vm883_vm11, %v5131_v55  ;;  %v5139_v24 = vor.u32 %v5911_v15, %v5136_v53 }
 0x3cc   : > { %2116 = vmatpush.bf16.msrb.mxu3 %v5239_v45  ;;  %v5167_v45 = vor.u32 %v5919_v60, %v5166_v11 }
 0x3cd   : > { %2085 = vmatpush.bf16.msra.mxu1 %v5247_v58  ;;  %2142 = vmatpush.bf16.msrb.mxu0 %v5251_v8  ;;  %v5916_v58 = vld [vmem:[#allocation3 + $0x10] sm:$0xf0] }
 0x3ce   : > { %2104 = vmatpush.bf16.msra.mxu2 %v5343_v51  ;;  %v5922_v51 = vld [vmem:[#allocation3 + $0x40] sm:$0xf0]  ;;  %v5155_v43 = vor.u32 %v5916_v58, %v5154_v61 }
 0x3cf   : > { %v5179_v23 = vor.u32 %v5922_v51, %v5178_v54 }
 0x3d0   : > { %2117 = vmatpush.bf16.msrb.mxu3 %v5227_v2  ;;  %2086 = vmatmul.bf16.vlgmr.msra.gmra.mxu1 %v5127_v0 }
 0x3d1   : > { %2160 = vmatpush.bf16.msrb.mxu1 %v5359_v6  ;;  %2143 = vmatmul.bf16.vlgmr.msrb.gmra.mxu0 %v5127_v0  ;;  %v5913_v0 = vld [vmem:[%s7912_s8 + $0x28] sm:$0xf0] }
 0x3d2   : > { %v5143_v48 = vor.u32 %v5913_v0, %v5142_v63 }
 0x3d4   : > { %2118 = vmatpush.bf16.msrb.mxu3 %v5215_v42 }
 0x3d5   : > { %2161 = vmatpush.bf16.msrb.mxu1 %v5347_v5 }
 0x3d8   : > { %2119 = vmatpush.bf16.msrb.mxu3 %v5203_v57  ;;  %v6931_v57 = vpop.permute.xlu2 %1675 }
 0x3db   : > { %2034 = vmatmul.bf16.gmra.mxu2 %v5139_v24  ;;  %5361 = vmatmul.msk.bf16.gmra.mxu3 %vm883_vm11, %v5143_v48 }
 0x3dc   : > { %2120 = vmatpush.bf16.msrb.mxu3 %v5191_v26 }
 0x3e0   : > { %2121 = vmatpush.bf16.msrb.mxu3 %v5179_v23  ;;  %2091 = vmatmul.bf16.gmra.mxu1 %v5139_v24 }
 0x3e1   : > { %2148 = vmatmul.bf16.gmra.mxu0 %v5139_v24 }
 0x3e4   : > { %2122 = vmatpush.bf16.msrb.mxu3 %v5167_v45 }
 0x3e8   : > { %2123 = vmatpush.bf16.msrb.mxu3 %v5155_v43 }
 0x3eb   : > { %5362 = vmatmul.msk.bf16.vlgmr.msra.gmra.mxu2 %vm883_vm11, %v5131_v55  ;;  %2124 = vmatmul.bf16.vlgmr.msrb.gmra.mxu3 %v6870_v1 }
 0x3f0   : > { %5364 = vmatmul.msk.bf16.vlgmr.msrb.gmra.mxu1 %vm883_vm11, %v5131_v55  ;;  %v1671_v55 = vpop.permute.xlu1 %1670 }
 0x3f8   : > { %v1666_v25 = vpop.permute.xlu1 %1665 }
 0x3fb   : > { %5363 = vmatmul.msk.bf16.gmra.mxu2 %vm883_vm11, %v5143_v48  ;;  %2129 = vmatmul.bf16.gmra.mxu3 %v6894_v38 }
 0x400   : > { %5365 = vmatmul.msk.bf16.gmra.mxu1 %vm883_vm11, %v5143_v48  ;;  %v1661_v48 = vpop.permute.xlu0 %1660 }
 0x42d   : > { %v2011_v19 = vpop.f32.mrf.mxu1  ;;  %v2068_v50 = vpop.f32.mrf.mxu0 }
 0x42e   : > { %v2012_v54 = vadd.f32 %v2011_v19, %v1661_v48  ;;  %v5968_v19 = vld [vmem:[%s7914_s10] sm:$0xff] }
 0x435   : > { %v2013_v8 = vpop.f32.mrf.mxu1  ;;  %v2070_v62 = vpop.f32.mrf.mxu0 }
 0x436   : > { %v2014_v0 = vadd.f32 %v2013_v8, %v1666_v25 }
 0x43d   : > { %v2016_v6 = vpop.f32.mrf.mxu1  ;;  %v2073_v1 = vpop.f32.mrf.mxu0 }
 0x43e   : > { %v2017_v24 = vadd.f32 %v2016_v6, %v1671_v55 }
 0x445   : > { %v2018_v56 = vpop.f32.mrf.mxu1  ;;  %v2075_v38 = vpop.f32.mrf.mxu0 }
 0x446   : > { %v2019_v7 = vadd.f32 %v2018_v56, %v6931_v57 }
 0x44d   : > { %v2087_v3 = vpop.f32.mrf.mxu1 }
 0x44e   : > { %v2030_v2 = vpop.f32.mrf.mxu2  ;;  %v2049_v5 = vpop.f32.mrf.mxu3 }
 0x44f   : > { %v2031_v58 = vadd.f32 %v2030_v2, %v2012_v54  ;;  %v2144_v52 = vpop.f32.mrf.mxu0  ;;  %v2069_v54 = vadd.f32 %v2068_v50, %v1661_v48 }
 0x451   : > { %v2050_v49 = vadd.f32 %v2049_v5, %v2031_v58 }
 0x453   : > { %v2173_v56 = vmax.f32 %v2050_v49, 0.0  ;;  %v2071_v49 = vadd.f32 %v2070_v62, %v1666_v25 }
 0x455   : > { %v2089_v42 = vpop.f32.mrf.mxu1 }
 0x456   : > { %v2032_v4 = vpop.f32.mrf.mxu2  ;;  %v2051_v39 = vpop.f32.mrf.mxu3 }
 0x457   : > { %v2033_v23 = vadd.f32 %v2032_v4, %v2014_v0  ;;  %v2146_v4 = vpop.f32.mrf.mxu0  ;;  %v2074_v0 = vadd.f32 %v2073_v1, %v1671_v55 }
 0x459   : > { %v2052_v61 = vadd.f32 %v2051_v39, %v2033_v23  ;;  %v5969_v23 = vld [vmem:[%s7914_s10 + $0x8] sm:$0xff] }
 0x45b   : > { %v2176_v46 = vmax.f32 %v2052_v61, 0.0  ;;  %v2088_v61 = vadd.f32 %v2087_v3, %v2069_v54 }
 0x45d   : > { %v2092_v53 = vpop.f32.mrf.mxu1 }
 0x45e   : > { %v2035_v15 = vpop.f32.mrf.mxu2  ;;  %v2054_v22 = vpop.f32.mrf.mxu3 }
 0x45f   : > { %v2036_v26 = vadd.f32 %v2035_v15, %v2017_v24  ;;  %v2193_v24 = vpack.c.bf16 %v2176_v46, %v2173_v56  ;;  %v2093_v46 = vadd.f32 %v2092_v53, %v2074_v0 }
 0x461   : > { %v2055_v11 = vadd.f32 %v2054_v22, %v2036_v26  ;;  %v2076_v26 = vadd.f32 %v2075_v38, %v6931_v57 }
 0x463   : > { %v2179_v36 = vmax.f32 %v2055_v11, 0.0  ;;  %v2090_v11 = vadd.f32 %v2089_v42, %v2071_v49 }
 0x465   : > { %v2094_v51 = vpop.f32.mrf.mxu1 }
 0x466   : > { %v2037_v63 = vpop.f32.mrf.mxu2  ;;  %v2056_v45 = vpop.f32.mrf.mxu3 }
 0x467   : > { %v2038_v60 = vadd.f32 %v2037_v63, %v2019_v7  ;;  %v2149_v63 = vpop.f32.mrf.mxu0 }
 0x469   : > { %v2057_v43 = vadd.f32 %v2056_v45, %v2038_v60  ;;  %v2095_v60 = vadd.f32 %v2094_v51, %v2076_v26 }
 0x46b   : > { %v2182_v6 = vmax.f32 %v2057_v43, 0.0 }
 0x46d   : > { %v2196_v8 = vpack.c.bf16 %v2182_v6, %v2179_v36  ;;  %v2163_v37 = vpop.f32.mrf.mxu1 }
 0x46e   : > { %v2106_v47 = vpop.f32.mrf.mxu2  ;;  %v2125_v15 = vpop.f32.mrf.mxu3 }
 0x46f   : > { %2241 = vmatpush.bf16.msrb.mxu2 %v2196_v8  ;;  %v2107_v56 = vadd.f32 %v2106_v47, %v2088_v61  ;;  %v2126_v62 = vadd.f32 %v2125_v15, %v1661_v48  ;;  %v2151_v0 = vpop.f32.mrf.mxu0 }
 0x471   : > { %v2174_v3 = vmax.f32 %v2107_v56, 0.0 }
 0x473   : > { %2242 = vmatpush.bf16.msrb.mxu2 %v2193_v24 }
 0x475   : > { %v2165_v5 = vpop.f32.mrf.mxu1 }
 0x476   : > { %v2108_v2 = vpop.f32.mrf.mxu2  ;;  %5374 = vmatmul.msk.bf16.vlgmr.msrb.gmra.mxu2 %vm883_vm11, %v5968_v19  ;;  %v2127_v39 = vpop.f32.mrf.mxu3 }
 0x477   : > { %v2109_v6 = vadd.f32 %v2108_v2, %v2090_v11  ;;  %v2128_v8 = vadd.f32 %v2127_v39, %v1666_v25  ;;  %v2217_v11 = vpop.permute.xlu0 %2216 }
 0x479   : > { %v2177_v33 = vmax.f32 %v2109_v6, 0.0  ;;  %v2147_v32 = vadd.f32 %v2146_v4, %v2128_v8 }
 0x47b   : > { %v2166_v47 = vadd.f32 %v2165_v5, %v2147_v32 }
 0x47d   : > { %v2168_v7 = vpop.f32.mrf.mxu1  ;;  %v2178_v49 = vmax.f32 %v2166_v47, 0.0 }
 0x47e   : > { %v2111_v22 = vpop.f32.mrf.mxu2  ;;  %v2130_v36 = vpop.f32.mrf.mxu3 }
 0x47f   : > { %v2112_v45 = vadd.f32 %v2111_v22, %v2093_v46  ;;  %v2131_v58 = vadd.f32 %v2130_v36, %v1671_v55  ;;  %v2145_v22 = vadd.f32 %v2144_v52, %v2126_v62  ;;  %v2194_v36 = vpack.c.bf16 %v2177_v33, %v2174_v3  ;;  %v2202_v46 = vpop.permute.xlu1 %2201 }
 0x481   : > { %v2180_v38 = vmax.f32 %v2112_v45, 0.0  ;;  %v2150_v53 = vadd.f32 %v2149_v63, %v2131_v58  ;;  %v2164_v48 = vadd.f32 %v2163_v37, %v2145_v22  ;;  %v2212_v37 = vpop.permute.xlu2 %2211 }
 0x483   : > { %v2169_v2 = vadd.f32 %v2168_v7, %v2150_v53  ;;  %v2175_v4 = vmax.f32 %v2164_v48, 0.0 }
 0x485   : > { %v2170_v55 = vpop.f32.mrf.mxu1  ;;  %v2181_v15 = vmax.f32 %v2169_v2, 0.0 }
 0x486   : > { %v2113_v43 = vpop.f32.mrf.mxu2  ;;  %5375 = vmatmul.msk.bf16.gmra.mxu2 %vm883_vm11, %v5969_v23  ;;  %v2132_v24 = vpop.f32.mrf.mxu3 }
 0x487   : > { %v2114_v1 = vadd.f32 %v2113_v43, %v2095_v60  ;;  %v2133_v51 = vadd.f32 %v2132_v24, %v6931_v57  ;;  %v2195_v57 = vpack.c.bf16 %v2178_v49, %v2175_v4 }
 0x489   : > { %v2183_v50 = vmax.f32 %v2114_v1, 0.0  ;;  %v2152_v25 = vadd.f32 %v2151_v0, %v2133_v51  ;;  %v2207_v7 = vpop.permute.xlu2 %2206 }
 0x48b   : > { %v2197_v42 = vpack.c.bf16 %v2183_v50, %v2180_v38  ;;  %v2171_v39 = vadd.f32 %v2170_v55, %v2152_v25 }
 0x48d   : > { %2260 = vmatpush.bf16.msra.mxu3 %v2197_v42  ;;  %v2184_v63 = vmax.f32 %v2171_v39, 0.0  ;;  %v5971_v42 = vld [vmem:[%s7910_s6 + $0x18] sm:$0xff] }
 0x48f   : > { %v2198_v26 = vpack.c.bf16 %v2184_v63, %v2181_v15  ;;  %v7946_v63 = vmax.f32 %v6478_v27, 0.0  ;;  %v7950_v27 = vmax.f32 %v6501_v41, 0.0 }
 0x491   : > { %2261 = vmatpush.bf16.msra.mxu3 %v2194_v36  ;;  %2279 = vmatpush.bf16.msra.mxu0 %v2198_v26  ;;  %v7947_v26 = vmax.f32 %v6484_v31, 0.0  ;;  %v7951_v31 = vmax.f32 %v6480_v29, 0.0 }
 0x494   : > { %5376 = vmatmul.msk.bf16.vlgmr.msra.gmra.mxu3 %vm883_vm11, %v5968_v19 }
 0x495   : > { %2280 = vmatpush.bf16.msra.mxu0 %v2195_v57 }
 0x498   : > { %5378 = vmatmul.msk.bf16.vlgmr.msra.gmra.mxu0 %vm883_vm11, %v5968_v19 }
 0x4a4   : > { %5377 = vmatmul.msk.bf16.gmra.mxu3 %vm883_vm11, %v5969_v23 }
 0x4a8   : > { %5379 = vmatmul.msk.bf16.gmra.mxu0 %vm883_vm11, %v5969_v23 }
 0x4f9   : > { %v2244_v32 = vpop.f32.mrf.mxu2 }
 0x4fa   : > { %v2245_v45 = vadd.f32 %v2244_v32, %v2202_v46 }
 0x4fc   : > { %v2292_v8 = vmax.f32 %v2245_v45, 0.0 }
 0x4fe   : > { %v6964_v53 = vadd.f32 %v2292_v8, %v827_v21 }
 0x501   : > { %v2246_v33 = vpop.f32.mrf.mxu2 }
 0x502   : > { %v2247_v54 = vadd.f32 %v2246_v33, %v2207_v7  ;;  %v7948_v33 = vmax.f32 %v6482_v30, 0.0 }
 0x504   : > { %v2295_v43 = vmax.f32 %v2247_v54, 0.0 }
 0x506   : > { %v6958_v62 = vadd.f32 %v2295_v43, %v830_v18 }
 0x508   : > { %v2326_v9 = vpack.c.bf16 %v6958_v62, %v6964_v53 }
 0x509   : > { %v2249_v52 = vpop.f32.mrf.mxu2 }
 0x50a   : > { %v2250_v5 = vadd.f32 %v2249_v52, %v2212_v37  ;;  %v7949_v52 = vmax.f32 %v6488_v34, 0.0 }
 0x50c   : > { %v2298_v58 = vmax.f32 %v2250_v5, 0.0 }
 0x50e   : > { %v6950_v23 = vadd.f32 %v2298_v58, %v833_v14  ;;  %v2335_v58 = vpop.permute.xlu2 %2334 }
 0x511   : > { %v2251_v60 = vpop.f32.mrf.mxu2 }
 0x512   : > { %v2252_v61 = vadd.f32 %v2251_v60, %v2217_v11  ;;  %v7953_v60 = vmax.f32 %v6503_v44, 0.0  ;;  %v2345_v44 = vpop.permute.xlu0 %2344 }
 0x514   : > { %v2301_v6 = vmax.f32 %v2252_v61, 0.0 }
 0x515   : > { %v2282_v56 = vpop.f32.mrf.mxu0 }
 0x516   : > { %v6954_v1 = vadd.f32 %v2301_v6, %v836_v16  ;;  %v2283_v22 = vadd.f32 %v2282_v56, %v2202_v46 }
 0x517   : > { %v2263_v19 = vpop.f32.mrf.mxu3 }
 0x518   : > { %v2329_v38 = vpack.c.bf16 %v6954_v1, %v6950_v23  ;;  %v2264_v21 = vadd.f32 %v2263_v19, %v2202_v46  ;;  %v2294_v32 = vmax.f32 %v2283_v22, 0.0 }
 0x51a   : > { %2374 = vmatpush.bf16.msra.mxu1 %v2329_v38  ;;  %v2293_v48 = vmax.f32 %v2264_v21, 0.0  ;;  %v7010_v45 = vadd.f32 %v2294_v32, %v7953_v60 }
 0x51c   : > { %v7000_v54 = vadd.f32 %v2293_v48, %v7951_v31 }
 0x51d   : > { %v2284_v12 = vpop.f32.mrf.mxu0 }
 0x51e   : > { %2375 = vmatpush.bf16.msra.mxu1 %v2326_v9  ;;  %v2285_v51 = vadd.f32 %v2284_v12, %v2207_v7  ;;  %v2340_v9 = vpop.permute.xlu0 %2339 }
 0x51f   : > { %v2265_v14 = vpop.f32.mrf.mxu3 }
 0x520   : > { %v2266_v24 = vadd.f32 %v2265_v14, %v2207_v7  ;;  %v2297_v15 = vmax.f32 %v2285_v51, 0.0 }
 0x521   : > { %5396 = vmatmul.msk.bf16.vlgmr.msra.gmra.mxu1 %vm883_vm11, %v5970_v13 }
 0x522   : > { %v2296_v25 = vmax.f32 %v2266_v24, 0.0 }
 0x525   : > { %v2287_v18 = vpop.f32.mrf.mxu0 }
 0x526   : > { %v2288_v17 = vadd.f32 %v2287_v18, %v2212_v37 }
 0x527   : > { %v2268_v16 = vpop.f32.mrf.mxu3 }
 0x528   : > { %v2269_v50 = vadd.f32 %v2268_v16, %v2212_v37  ;;  %v2300_v47 = vmax.f32 %v2288_v17, 0.0  ;;  %v6986_v37 = vadd.f32 %v2296_v25, %v7948_v33 }
 0x52a   : > { %v2299_v55 = vmax.f32 %v2269_v50, 0.0  ;;  %v6990_v5 = vadd.f32 %v2300_v47, %v7949_v52  ;;  %v2327_v41 = vpack.c.bf16 %v6986_v37, %v7000_v54 }
 0x52c   : > { %v6978_v49 = vadd.f32 %v2299_v55, %v7946_v63  ;;  %v2350_v63 = vpop.permute.xlu1 %2349 }
 0x52d   : > { %v2289_v2 = vpop.f32.mrf.mxu0 }
 0x52e   : > { %v2290_v36 = vadd.f32 %v2289_v2, %v2217_v11 }
 0x52f   : > { %v2270_v0 = vpop.f32.mrf.mxu3 }
 0x530   : > { %v2271_v3 = vadd.f32 %v2270_v0, %v2217_v11  ;;  %v2303_v57 = vmax.f32 %v2290_v36, 0.0  ;;  %v7952_v11 = vmax.f32 %v6499_v40, 0.0 }
 0x531   : > { %5397 = vmatmul.msk.bf16.gmra.mxu1 %vm883_vm11, %v5971_v42 }
 0x532   : > { %v2302_v39 = vmax.f32 %v2271_v3, 0.0  ;;  %v6996_v46 = vadd.f32 %v2303_v57, %v7950_v27  ;;  %v7004_v30 = vadd.f32 %v2297_v15, %v7952_v11 }
 0x534   : > { %v6982_v4 = vadd.f32 %v2302_v39, %v7947_v26  ;;  %v2331_v34 = vpack.c.bf16 %v6996_v46, %v6990_v5  ;;  %v2328_v29 = vpack.c.bf16 %v7004_v30, %v7010_v45 }
 0x536   : > { %v2330_v7 = vpack.c.bf16 %v6982_v4, %v6978_v49  ;;  %2412 = vmatpush.bf16.msrb.mxu3 %v2331_v34 }
 0x538   : > { %2393 = vmatpush.bf16.msra.mxu2 %v2330_v7 }
 0x53a   : > { %2413 = vmatpush.bf16.msrb.mxu3 %v2328_v29 }
 0x53c   : > { %2394 = vmatpush.bf16.msra.mxu2 %v2327_v41 }
 0x53d   : > { %5400 = vmatmul.msk.bf16.vlgmr.msrb.gmra.mxu3 %vm883_vm11, %v5970_v13 }
 0x53f   : > { %5398 = vmatmul.msk.bf16.vlgmr.msra.gmra.mxu2 %vm883_vm11, %v5970_v13 }
 0x54d   : > { %5401 = vmatmul.msk.bf16.gmra.mxu3 %vm883_vm11, %v5971_v42 }
 0x54f   : > { %5399 = vmatmul.msk.bf16.gmra.mxu2 %vm883_vm11, %v5971_v42 }
 0x59e   : > { %v2377_v40 = vpop.f32.mrf.mxu1 }
 0x59f   : > { %v2378_v61 = vadd.f32 %v2377_v40, %v2335_v58 }
 0x5a1   : > { %v2425_v19 = vmax.f32 %v2378_v61, 0.0 }
 0x5a3   : > { %v2437_v14 = vmul.f32 %v2425_v19, %v6536_v20 }
 0x5a6   : > { %v2379_v43 = vpop.f32.mrf.mxu1 }
 0x5a7   : > { %v2380_v12 = vadd.f32 %v2379_v43, %v2340_v9 }
 0x5a9   : > { %v2428_v24 = vmax.f32 %v2380_v12, 0.0 }
 0x5ab   : > { %v2440_v42 = vmul.f32 %v2428_v24, %v6536_v20 }
 0x5ae   : > { %v2382_v18 = vpop.f32.mrf.mxu1 }
 0x5af   : > { %v2383_v51 = vadd.f32 %v2382_v18, %v2345_v44 }
 0x5b1   : > { %v2431_v2 = vmax.f32 %v2383_v51, 0.0 }
 0x5b3   : > { %v2443_v26 = vmul.f32 %v2431_v2, %v6536_v20 }
 0x5b6   : > { %v2384_v47 = vpop.f32.mrf.mxu1 }
 0x5b7   : > { %v2385_v57 = vadd.f32 %v2384_v47, %v2350_v63 }
 0x5b9   : > { %v2434_v11 = vmax.f32 %v2385_v57, 0.0 }
 0x5bb   : > { %v2446_v61 = vmul.f32 %v2434_v11, %v6536_v20 }
 0x5c0   : > { %v2415_v56 = vpop.f32.mrf.mxu3 }
 0x5c1   : > { %v2416_v36 = vadd.f32 %v2415_v56, %v2335_v58 }
 0x5c2   : > { %v2396_v6 = vpop.f32.mrf.mxu2 }
 0x5c3   : > { %v2397_v8 = vadd.f32 %v2396_v6, %v2335_v58  ;;  %v2427_v52 = vmax.f32 %v2416_v36, 0.0 }
 0x5c5   : > { %v2426_v38 = vmax.f32 %v2397_v8, 0.0  ;;  %v2439_v29 = vmul.f32 %v2427_v52, %v6529_v59 }
 0x5c7   : > { %v2438_v13 = vmul.f32 %v2426_v38, %v6534_v10  ;;  %v2450_v6 = vpack.c.bf16 %v2439_v29, %v2439_v29 }
 0x5c8   : > { %v2417_v21 = vpop.f32.mrf.mxu3 }
 0x5c9   : > { %v2449_v16 = vpack.c.bf16 %v2438_v13, %v2437_v14  ;;  %v2418_v40 = vadd.f32 %v2417_v21, %v2340_v9 }
 0x5ca   : > { %v2398_v50 = vpop.f32.mrf.mxu2 }
 0x5cb   : > { %v2399_v17 = vadd.f32 %v2398_v50, %v2340_v9  ;;  %2465 = vrot.lane.b32.xlu2 %v2449_v16, %s6213_s24  ;;  %v2430_v19 = vmax.f32 %v2418_v40, 0.0 }
 0x5cd   : > { %v2429_v0 = vmax.f32 %v2399_v17, 0.0  ;;  %v2442_v38 = vmul.f32 %v2430_v19, %v6529_v59 }
 0x5cf   : > { %v2441_v55 = vmul.f32 %v2429_v0, %v6534_v10  ;;  %v2452_v14 = vpack.c.bf16 %v2442_v38, %v2442_v38 }
 0x5d0   : > { %v2420_v39 = vpop.f32.mrf.mxu3 }
 0x5d1   : > { %v2451_v3 = vpack.c.bf16 %v2441_v55, %v2440_v42  ;;  %v2421_v15 = vadd.f32 %v2420_v39, %v2345_v44 }
 0x5d2   : > { %v2401_v22 = vpop.f32.mrf.mxu2 }
 0x5d3   : > { %v2402_v25 = vadd.f32 %v2401_v22, %v2345_v44  ;;  %2469 = vrot.lane.b32.xlu0 %v2451_v3, %s6213_s24  ;;  %v2433_v33 = vmax.f32 %v2421_v15, 0.0 }
 0x5d5   : > { %v2432_v48 = vmax.f32 %v2402_v25, 0.0  ;;  %v2445_v7 = vmul.f32 %v2433_v33, %v6529_v59 }
 0x5d7   : > { %v2444_v32 = vmul.f32 %v2432_v48, %v6534_v10  ;;  %v2454_v34 = vpack.c.bf16 %v2445_v7, %v2445_v7 }
 0x5d8   : > { %v2422_v41 = vpop.f32.mrf.mxu3 }
 0x5d9   : > { %v2453_v27 = vpack.c.bf16 %v2444_v32, %v2443_v26  ;;  %v2423_v58 = vadd.f32 %v2422_v41, %v2350_v63 }
 0x5da   : > { %v2403_v31 = vpop.f32.mrf.mxu2 }
 0x5db   : > { %v2404_v60 = vadd.f32 %v2403_v31, %v2350_v63  ;;  %2473 = vrot.lane.b32.xlu1 %v2453_v27, %s6213_s24  ;;  %2475 = vrot.lane.b32.xlu0 %v2454_v34, %s6213_s24  ;;  %v2436_v8 = vmax.f32 %v2423_v58, 0.0 }
 0x5dd   : > { %v2435_v44 = vmax.f32 %v2404_v60, 0.0  ;;  %v2448_v9 = vmul.f32 %v2436_v8, %v6529_v59 }
 0x5df   : > { %v2447_v43 = vmul.f32 %v2435_v44, %v6534_v10  ;;  %v2456_v12 = vpack.c.bf16 %v2448_v9, %v2448_v9 }
 0x5e1   : > { %v2455_v56 = vpack.c.bf16 %v2447_v43, %v2446_v61 }
 0x5e3   : > { %2467 = vrot.lane.b32.xlu1 %v2450_v6, %s6213_s24  ;;  %2477 = vrot.lane.b32.xlu2 %v2455_v56, %s6213_s24 }
 0x5eb   : > { %2479 = vrot.lane.b32.xlu1 %v2456_v12, %s6213_s24  ;;  %2471 = vrot.lane.b32.xlu2 %v2452_v14, %s6213_s24 }
 0x625   : > { %v2466_v13 = vpop.permute.xlu2 %2465 }
 0x626   : > { %v2481_v16 = vrot.slane %v2466_v13, 4 }
 0x628   : > { %v2485_v18 = vsel %vm1007_vm0, %v2481_v16, %v2466_v13 }
 0x629   : > { %2501 = vst.msk [vmem:[#allocation2] sm:$0xff] %vm6563_vm10, %v2485_v18 }
 0x630   : > { %v7043_v50 = vld [vmem:[#allocation2] sm:$0xff] }
 0x631   : > { %2683 = vrot.lane.b32.xlu1 %v7043_v50, %s7942_s22  ;;  %2619 = vrot.lane.b32.xlu0 %v7043_v50, %s7940_s28  ;;  %2531 = vst [vmem:[#allocation3] sm:$0xff] %v7043_v50 }
 0x632   : > { %2555 = vrot.lane.b32.xlu2 %v7043_v50, %s7938_s27 }
 0x639   : > { %2939 = vrot.lane.b32.xlu1 %v7043_v50, %s7954_s21  ;;  %2875 = vrot.lane.b32.xlu0 %v7043_v50, %s7955_s23 }
 0x63d   : > { %v2478_v24 = vpop.permute.xlu2 %2477 }
 0x63e   : > { %v2484_v17 = vrot.slane %v2478_v24, 4 }
 0x640   : > { %v2491_v21 = vsel %vm1007_vm0, %v2484_v17, %v2478_v24 }
 0x641   : > { %2507 = vst.msk [vmem:[#allocation2 + $0x24] sm:$0xff] %vm6563_vm10, %v2491_v21 }
 0x645   : > { %v2470_v0 = vpop.permute.xlu0 %2469  ;;  %v2472_v51 = vpop.permute.xlu2 %2471 }
 0x646   : > { %v2482_v42 = vrot.slane %v2470_v0, 4 }
 0x648   : > { %v2487_v55 = vsel %vm1007_vm0, %v2482_v42, %v2470_v0  ;;  %v2488_v3 = vsel %vm1007_vm0, %v2482_v42, %v2472_v51  ;;  %v7061_v22 = vld [vmem:[#allocation2 + $0x24] sm:$0xff] }
 0x649   : > { %2503 = vst.msk [vmem:[#allocation2 + $0xc] sm:$0xff] %vm6563_vm10, %v2487_v55 }
 0x64a   : > { %2504 = vst.msk [vmem:[#allocation2 + $0x14] sm:$0xf] %vm1028_vm12, %v2488_v3 }
 0x64b   : > { %2537 = vst [vmem:[#allocation3 + $0x24] sm:$0xff] %v7061_v22 }
 0x64d   : > { %v2474_v2 = vpop.permute.xlu1 %2473  ;;  %v2476_v47 = vpop.permute.xlu0 %2475 }
 0x64e   : > { %v2483_v25 = vrot.slane %v2474_v2, 4 }
 0x650   : > { %v2489_v39 = vsel %vm1007_vm0, %v2483_v25, %v2474_v2  ;;  %v2490_v36 = vsel %vm1007_vm0, %v2483_v25, %v2476_v47  ;;  %v7069_v48 = vld [vmem:[#allocation2 + $0xc] sm:$0xff] }
 0x651   : > { %2505 = vst.msk [vmem:[#allocation2 + $0x18] sm:$0xff] %vm6563_vm10, %v2489_v39  ;;  %2559 = vrot.lane.b32.xlu1 %v7069_v48, %s7938_s27  ;;  %2687 = vrot.lane.b32.xlu0 %v7069_v48, %s7942_s22  ;;  %v2526_v63 = vld [vmem:[#allocation2 + $0x14] sm:$0xf] }
 0x652   : > { %2506 = vst.msk [vmem:[#allocation2 + $0x20] sm:$0xf] %vm1028_vm12, %v2490_v36  ;;  %2623 = vrot.lane.b32.xlu2 %v7069_v48, %s7940_s28  ;;  %v2670_v29 = vld [vmem:[#allocation2 + $0x14] sm:$0xf] }
 0x653   : > { %2533 = vst [vmem:[#allocation3 + $0xc] sm:$0xff] %v7069_v48  ;;  %v2606_v40 = vld [vmem:[#allocation2 + $0x14] sm:$0xf] }
 0x654   : > { %2534 = vst.msk [vmem:[#allocation3 + $0x14] sm:$0xf] %vm1057_vm13, %v2526_v63  ;;  %v2926_v44 = vld [vmem:[#allocation2 + $0x14] sm:$0xf] }
 0x655   : > { %v2468_v15 = vpop.permute.xlu1 %2467  ;;  %v2862_v58 = vld [vmem:[#allocation2 + $0x14] sm:$0xf] }
 0x656   : > { %v2486_v26 = vsel %vm1007_vm0, %v2481_v16, %v2468_v15  ;;  %v2542_v6 = vld [vmem:[#allocation2 + $0x14] sm:$0xf] }
 0x657   : > { %2502 = vst.msk [vmem:[#allocation2 + $0x8] sm:$0xf] %vm1028_vm12, %v2486_v26  ;;  %v2798_v3 = vld [vmem:[#allocation2 + $0x14] sm:$0xf] }
 0x658   : > { %v7084_v57 = vld [vmem:[#allocation2 + $0x18] sm:$0xff]  ;;  %v2990_v36 = vld [vmem:[#allocation2 + $0x14] sm:$0xf] }
 0x659   : > { %2563 = vrot.lane.b32.xlu1 %v7084_v57, %s7938_s27  ;;  %2943 = vrot.lane.b32.xlu0 %v7069_v48, %s7954_s21  ;;  %2535 = vst [vmem:[#allocation3 + $0x18] sm:$0xff] %v7084_v57  ;;  %v2528_v32 = vld [vmem:[#allocation2 + $0x20] sm:$0xf] }
 0x65a   : > { %2879 = vrot.lane.b32.xlu2 %v7069_v48, %s7955_s23  ;;  %2536 = vst.msk [vmem:[#allocation3 + $0x20] sm:$0xf] %vm1057_vm13, %v2528_v32  ;;  %v2672_v61 = vld [vmem:[#allocation2 + $0x20] sm:$0xf] }
 0x65b   : > { %v2608_v43 = vld [vmem:[#allocation2 + $0x20] sm:$0xf] }
 0x65c   : > { %v2928_v19 = vld [vmem:[#allocation2 + $0x20] sm:$0xf] }
 0x65d   : > { %v2480_v33 = vpop.permute.xlu1 %2479  ;;  %v2864_v8 = vld [vmem:[#allocation2 + $0x20] sm:$0xf] }
 0x65e   : > { %v2492_v52 = vsel %vm1007_vm0, %v2484_v17, %v2480_v33  ;;  %v2524_v7 = vld [vmem:[#allocation2 + $0x8] sm:$0xf]  ;;  %v2544_v56 = vld [vmem:[#allocation2 + $0x20] sm:$0xf] }
 0x65f   : > { %2508 = vst.msk [vmem:[#allocation2 + $0x2c] sm:$0xf] %vm1028_vm12, %v2492_v52  ;;  %v2604_v27 = vld [vmem:[#allocation2 + $0x8] sm:$0xf]  ;;  %v2800_v14 = vld [vmem:[#allocation2 + $0x20] sm:$0xf] }
 0x660   : > { %2532 = vst.msk [vmem:[#allocation3 + $0x8] sm:$0xf] %vm1057_vm13, %v2524_v7  ;;  %v2860_v11 = vld [vmem:[#allocation2 + $0x8] sm:$0xf]  ;;  %v2992_v16 = vld [vmem:[#allocation2 + $0x20] sm:$0xf] }
 0x661   : > { %2819 = vrot.lane.b32.xlu1 %v7084_v57, %s7956_s26  ;;  %2691 = vrot.lane.b32.xlu0 %v7084_v57, %s7942_s22  ;;  %v2540_v34 = vld [vmem:[#allocation2 + $0x8] sm:$0xf] }
 0x662   : > { %2627 = vrot.lane.b32.xlu2 %v7084_v57, %s7940_s28  ;;  %v2668_v60 = vld [vmem:[#allocation2 + $0x8] sm:$0xf] }
 0x663   : > { %v2924_v41 = vld [vmem:[#allocation2 + $0x8] sm:$0xf] }
 0x664   : > { %v2796_v0 = vld [vmem:[#allocation2 + $0x8] sm:$0xf] }
 0x665   : > { %v2988_v2 = vld [vmem:[#allocation2 + $0x8] sm:$0xf] }
 0x666   : > { %v2530_v31 = vld [vmem:[#allocation2 + $0x2c] sm:$0xf] }
 0x667   : > { %2538 = vst.msk [vmem:[#allocation3 + $0x2c] sm:$0xf] %vm1057_vm13, %v2530_v31  ;;  %v2674_v9 = vld [vmem:[#allocation2 + $0x2c] sm:$0xf] }
 0x668   : > { %v2546_v13 = vld [vmem:[#allocation2 + $0x2c] sm:$0xf] }
 0x669   : > { %2621 = vrot.lane.b32.xlu1 %v2604_v27, %s7940_s28  ;;  %2947 = vrot.lane.b32.xlu0 %v7084_v57, %s7954_s21  ;;  %v2610_v17 = vld [vmem:[#allocation2 + $0x2c] sm:$0xf] }
 0x66a   : > { %2883 = vrot.lane.b32.xlu2 %v7084_v57, %s7955_s23  ;;  %v2930_v15 = vld [vmem:[#allocation2 + $0x2c] sm:$0xf] }
 0x66b   : > { %v2802_v33 = vld [vmem:[#allocation2 + $0x2c] sm:$0xf] }
 0x66c   : > { %v2866_v52 = vld [vmem:[#allocation2 + $0x2c] sm:$0xf] }
 0x671   : > { %2877 = vrot.lane.b32.xlu1 %v2860_v11, %s7955_s23  ;;  %2557 = vrot.lane.b32.xlu0 %v2540_v34, %s7938_s27 }
 0x672   : > { %3011 = vrot.lane.b32.xlu2 %v7084_v57, %s7957_s30 }
 0x679   : > { %2631 = vrot.lane.b32.xlu1 %v7061_v22, %s7940_s28  ;;  %2567 = vrot.lane.b32.xlu0 %v7061_v22, %s7938_s27 }
 0x67a   : > { %2685 = vrot.lane.b32.xlu2 %v2668_v60, %s7942_s22 }
 0x681   : > { %2887 = vrot.lane.b32.xlu1 %v7061_v22, %s7955_s23  ;;  %2823 = vrot.lane.b32.xlu0 %v7061_v22, %s7956_s26 }
 0x682   : > { %2941 = vrot.lane.b32.xlu2 %v2924_v41, %s7954_s21  ;;  %v2736_v41 = vld [vmem:[#allocation2 + $0x20] sm:$0xf] }
 0x689   : > { %2689 = vrot.lane.b32.xlu1 %v2670_v29, %s7942_s22  ;;  %2625 = vrot.lane.b32.xlu0 %v2606_v40, %s7940_s28  ;;  %v2994_v29 = vld [vmem:[#allocation2 + $0x2c] sm:$0xf] }
 0x68a   : > { %2695 = vrot.lane.b32.xlu2 %v7061_v22, %s7942_s22 }
 0x68c   : > { %v7137_v38 = vpop.permute.xlu2 %2555 }
 0x691   : > { %2945 = vrot.lane.b32.xlu1 %v2926_v44, %s7954_s21  ;;  %2881 = vrot.lane.b32.xlu0 %v2862_v58, %s7955_s23 }
 0x692   : > { %2951 = vrot.lane.b32.xlu2 %v7061_v22, %s7954_s21 }
 0x699   : > { %2693 = vrot.lane.b32.xlu1 %v2672_v61, %s7942_s22  ;;  %2629 = vrot.lane.b32.xlu0 %v2608_v43, %s7940_s28 }
 0x69a   : > { %2561 = vrot.lane.b32.xlu2 %v2542_v6, %s7938_s27 }
 0x6a1   : > { %2949 = vrot.lane.b32.xlu1 %v2928_v19, %s7954_s21  ;;  %2885 = vrot.lane.b32.xlu0 %v2864_v8, %s7955_s23 }
 0x6a2   : > { %2565 = vrot.lane.b32.xlu2 %v2544_v56, %s7938_s27 }
 0x6a3   : > { %v2684_v18 = vpop.permute.xlu1 %2683  ;;  %v2620_v24 = vpop.permute.xlu0 %2619 }
 0x6a4   : > { %v2699_v31 = vrot.slane %v2684_v18, 4  ;;  %v2635_v58 = vrot.slane %v2620_v24, 4 }
 0x6a9   : > { %3015 = vrot.lane.b32.xlu1 %v7061_v22, %s7957_s30  ;;  %2697 = vrot.lane.b32.xlu0 %v2674_v9, %s7942_s22 }
 0x6aa   : > { %2821 = vrot.lane.b32.xlu2 %v2800_v14, %s7956_s26  ;;  %v2732_v14 = vld [vmem:[#allocation2 + $0x8] sm:$0xf] }
 0x6ab   : > { %v2940_v42 = vpop.permute.xlu1 %2939  ;;  %v7155_v51 = vpop.permute.xlu0 %2875 }
 0x6ac   : > { %v7143_v12 = vpop.permute.xlu2 %2623  ;;  %v2955_v6 = vrot.slane %v2940_v42, 4 }
 0x6b1   : > { %2569 = vrot.lane.b32.xlu1 %v2546_v13, %s7938_s27  ;;  %3013 = vrot.lane.b32.xlu0 %v2992_v16, %s7957_s30  ;;  %v2738_v13 = vld [vmem:[#allocation2 + $0x2c] sm:$0xf]  ;;  %s7960_s27 = smov 126  }
 0x6b2   : > { %2633 = vrot.lane.b32.xlu2 %v2610_v17, %s7940_s28  ;;  %v2571_v17 = vrot.slane %v7137_v38, 4 }
 0x6b4   : > { %v7148_v21 = vpop.permute.xlu2 %2879 }
 0x6b9   : > { %2813 = vrot.lane.b32.xlu1 %v2796_v0, %s7956_s26  ;;  %2811 = vrot.lane.b32.xlu0 %v7043_v50, %s7956_s26 }
 0x6ba   : > { %2815 = vrot.lane.b32.xlu2 %v7069_v48, %s7956_s26 }
 0x6bc   : > { %v7157_v55 = vpop.permute.xlu2 %2627 }
 0x6c1   : > { %3003 = vrot.lane.b32.xlu1 %v7043_v50, %s7957_s30  ;;  %2817 = vrot.lane.b32.xlu0 %v2798_v3, %s7956_s26 }
 0x6c2   : > { %3005 = vrot.lane.b32.xlu2 %v2988_v2, %s7957_s30 }
 0x6c3   : > { %v7163_v25 = vpop.permute.xlu1 %2559  ;;  %v7165_v47 = vpop.permute.xlu0 %2687 }
 0x6c4   : > { %v7167_v39 = vpop.permute.xlu2 %2883 }
 0x6c9   : > { %3009 = vrot.lane.b32.xlu1 %v2990_v36, %s7957_s30  ;;  %2953 = vrot.lane.b32.xlu0 %v2930_v15, %s7954_s21  ;;  %v5412_v36 = vld [vmem:[%s7913_s9 + $0x30] sm:$0xff] }
 0x6ca   : > { %2755 = vrot.lane.b32.xlu2 %v7084_v57, %s7958_s25 }
 0x6cb   : > { %v7173_v63 = vpop.permute.xlu1 %2563  ;;  %v7175_v26 = vpop.permute.xlu0 %2943 }
 0x6cc   : > { %v7177_v32 = vpop.permute.xlu2 %3011 }
 0x6d1   : > { %2825 = vrot.lane.b32.xlu1 %v2802_v33, %s7956_s26  ;;  %3007 = vrot.lane.b32.xlu0 %v7069_v48, %s7957_s30 }
 0x6d2   : > { %2889 = vrot.lane.b32.xlu2 %v2866_v52, %s7955_s23  ;;  %v2734_v52 = vld [vmem:[#allocation2 + $0x14] sm:$0xf] }
 0x6d3   : > { %v7183_v7 = vpop.permute.xlu1 %2819  ;;  %v7185_v27 = vpop.permute.xlu0 %2691 }
 0x6d4   : > { %v2686_v57 = vpop.permute.xlu2 %2685 }
 0x6d5   : > { %v2700_v11 = vrot.slane %v2686_v57, 4  ;;  %2724 = vst.msk [vmem:[#allocation3 + $0x98] sm:$0xf] %vm1057_vm13, %v2686_v57 }
 0x6d7   : > { %v2707_v34 = vsel %vm693_vm6, %v2699_v31, %v2700_v11 }
 0x6d8   : > { %v2708_v60 = vsel %vm595_vm8, %v2684_v18, %v2707_v34  ;;  %v5413_v34 = vld [vmem:[%s7913_s9 + $0x38] sm:$0xff] }
 0x6d9   : > { %2723 = vst [vmem:[#allocation3 + $0x90] sm:$0xff] %v2708_v60  ;;  %2759 = vrot.lane.b32.xlu1 %v7061_v22, %s7958_s25  ;;  %2757 = vrot.lane.b32.xlu0 %v2736_v41, %s7958_s25 }
 0x6da   : > { %3017 = vrot.lane.b32.xlu2 %v2994_v29, %s7957_s30  ;;  %v2573_v29 = vrot.slane %v7163_v25, 4 }
 0x6db   : > { %v2622_v40 = vpop.permute.xlu1 %2621  ;;  %v7194_v44 = vpop.permute.xlu0 %2947 }
 0x6dc   : > { %v2636_v61 = vrot.slane %v2622_v40, 4  ;;  %2660 = vst.msk [vmem:[#allocation3 + $0x68] sm:$0xf] %vm1057_vm13, %v2622_v40  ;;  %v2942_v43 = vpop.permute.xlu2 %2941 }
 0x6dd   : > { %v2956_v19 = vrot.slane %v2942_v43, 4  ;;  %2980 = vst.msk [vmem:[#allocation3 + $0x158] sm:$0xf] %vm1057_vm13, %v2942_v43 }
 0x6de   : > { %v2643_v8 = vsel %vm693_vm6, %v2635_v58, %v2636_v61  ;;  %v5664_v58 = vld [vmem:[%s7915_s11 + $0x20] sm:$0xff]  ;;  %v5667_v61 = vld [vmem:[%s7915_s11 + $0x38] sm:$0xff] }
 0x6df   : > { %v2644_v22 = vsel %vm576_vm9, %v2620_v24, %v2643_v8  ;;  %v2963_v56 = vsel %vm693_vm6, %v2955_v6, %v2956_v19  ;;  %v2891_v24 = vrot.slane %v7155_v51, 4  ;;  %v5666_v6 = vld [vmem:[%s7915_s11 + $0x30] sm:$0xff] }
 0x6e0   : > { %2659 = vst [vmem:[#allocation3 + $0x60] sm:$0xff] %v2644_v22  ;;  %v2964_v9 = vsel %vm669_vm2, %v2940_v42, %v2963_v56  ;;  %v2637_v56 = vrot.slane %v7143_v12, 4 }
 0x6e1   : > { %2979 = vst [vmem:[#allocation3 + $0x150] sm:$0xff] %v2964_v9  ;;  %2749 = vrot.lane.b32.xlu1 %v2732_v14, %s7958_s25  ;;  %2747 = vrot.lane.b32.xlu0 %v7043_v50, %s7958_s25  ;;  %v2701_v9 = vrot.slane %v7165_v47, 4 }
 0x6e2   : > { %2761 = vrot.lane.b32.xlu2 %v2738_v13, %s7958_s25 }
 0x6e3   : > { %v2878_v16 = vpop.permute.xlu1 %2877  ;;  %v2558_v18 = vpop.permute.xlu0 %2557 }
 0x6e4   : > { %v2892_v0 = vrot.slane %v2878_v16, 4  ;;  %2916 = vst.msk [vmem:[#allocation3 + $0x128] sm:$0xf] %vm1057_vm13, %v2878_v16  ;;  %v2572_v42 = vrot.slane %v2558_v18, 4  ;;  %v7209_v3 = vpop.permute.xlu2 %2695 }
 0x6e5   : > { %2596 = vst.msk [vmem:[#allocation3 + $0x38] sm:$0xf] %vm1057_vm13, %v2558_v18  ;;  %v2575_v18 = vrot.slane %v7173_v63, 4 }
 0x6e6   : > { %v2899_v2 = vsel %vm693_vm6, %v2891_v24, %v2892_v0  ;;  %v2579_v50 = vsel %vm693_vm6, %v2571_v17, %v2572_v42 }
 0x6e7   : > { %v2900_v15 = vsel %vm650_vm3, %v7155_v51, %v2899_v2  ;;  %v2580_v33 = vsel %vm558_vm7, %v7137_v38, %v2579_v50  ;;  %v5411_v51 = vld [vmem:[%s7913_s9 + $0x28] sm:$0xff]  ;;  %v5410_v38 = vld [vmem:[%s7913_s9 + $0x20] sm:$0xff] }
 0x6e8   : > { %2915 = vst [vmem:[#allocation3 + $0x120] sm:$0xff] %v2900_v15  ;;  %v5665_v50 = vld [vmem:[%s7915_s11 + $0x28] sm:$0xff] }
 0x6e9   : > { %2595 = vst [vmem:[#allocation3 + $0x30] sm:$0xff] %v2580_v33  ;;  %3135 = vperm.xlu1 %6159, %v5412_v36   ;;  %2753 = vrot.lane.b32.xlu0 %v2734_v52, %s7958_s25  ;;  %v2957_v52 = vrot.slane %v7175_v26, 4 }
 0x6ea   : > { %2751 = vrot.lane.b32.xlu2 %v7069_v48, %s7958_s25 }
 0x6eb   : > { %v7224_v57 = vpop.permute.xlu1 %2631  ;;  %v7226_v31 = vpop.permute.xlu0 %2567 }
 0x6ec   : > { %v7228_v11 = vpop.permute.xlu2 %2951 }
 0x6f1   : > { %3130 = vperm.xlu1 %6159, %v5411_v51   ;;  %3125 = vperm.xlu0 %6161, %v5410_v38  }
 0x6f2   : > { %3140 = vperm.xlu2 %6160, %v5413_v34   ;;  %v2831_v34 = vrot.slane %v7183_v7, 4 }
 0x6f3   : > { %v7239_v48 = vpop.permute.xlu1 %2887  ;;  %v7241_v60 = vpop.permute.xlu0 %2823 }
 0x6f4   : > { %v2562_v41 = vpop.permute.xlu2 %2561 }
 0x6f5   : > { %v2574_v40 = vrot.slane %v2562_v41, 4  ;;  %2598 = vst.msk [vmem:[#allocation3 + $0x44] sm:$0xf] %vm1057_vm13, %v2562_v41 }
 0x6f7   : > { %v2581_v43 = vsel %vm693_vm6, %v2573_v29, %v2574_v40 }
 0x6f8   : > { %v2582_v19 = vsel %vm558_vm7, %v7163_v25, %v2581_v43 }
 0x6f9   : > { %2597 = vst [vmem:[#allocation3 + $0x3c] sm:$0xff] %v2582_v19  ;;  %3668 = vperm.xlu1 %6159, %v5664_v58   ;;  %3683 = vperm.xlu0 %6161, %v5667_v61  }
 0x6fa   : > { %3678 = vperm.xlu2 %6160, %v5666_v6  }
 0x6fb   : > { %v2690_v8 = vpop.permute.xlu1 %2689  ;;  %v2626_v22 = vpop.permute.xlu0 %2625 }
 0x6fc   : > { %v2702_v14 = vrot.slane %v2690_v8, 4  ;;  %2726 = vst.msk [vmem:[#allocation3 + $0xa4] sm:$0xf] %vm1057_vm13, %v2690_v8  ;;  %v2638_v13 = vrot.slane %v2626_v22, 4  ;;  %v2566_v16 = vpop.permute.xlu2 %2565  ;;  %v2639_v8 = vrot.slane %v7157_v55, 4 }
 0x6fd   : > { %2662 = vst.msk [vmem:[#allocation3 + $0x74] sm:$0xf] %vm1057_vm13, %v2626_v22  ;;  %v2576_v25 = vrot.slane %v2566_v16, 4  ;;  %v2703_v22 = vrot.slane %v7185_v27, 4 }
 0x6fe   : > { %v2709_v17 = vsel %vm693_vm6, %v2701_v9, %v2702_v14  ;;  %v2645_v24 = vsel %vm693_vm6, %v2637_v56, %v2638_v13  ;;  %2600 = vst.msk [vmem:[#allocation3 + $0x50] sm:$0xf] %vm1057_vm13, %v2566_v16 }
 0x6ff   : > { %v2710_v0 = vsel %vm595_vm8, %v7165_v47, %v2709_v17  ;;  %v2646_v42 = vsel %vm576_vm9, %v7143_v12, %v2645_v24  ;;  %v2583_v2 = vsel %vm693_vm6, %v2575_v18, %v2576_v25  ;;  %v2893_v47 = vrot.slane %v7148_v21, 4 }
 0x700   : > { %2725 = vst [vmem:[#allocation3 + $0x9c] sm:$0xff] %v2710_v0  ;;  %v2584_v36 = vsel %vm558_vm7, %v7173_v63, %v2583_v2  ;;  %v2959_v2 = vrot.slane %v7194_v44, 4 }
 0x701   : > { %2661 = vst [vmem:[#allocation3 + $0x6c] sm:$0xff] %v2646_v42  ;;  %v2895_v42 = vrot.slane %v7167_v39, 4 }
 0x702   : > { %2599 = vst [vmem:[#allocation3 + $0x48] sm:$0xff] %v2584_v36  ;;  %3673 = vperm.xlu2 %6160, %v5665_v50  }
 0x703   : > { %v2946_v15 = vpop.permute.xlu1 %2945  ;;  %v2882_v33 = vpop.permute.xlu0 %2881 }
 0x704   : > { %v2958_v12 = vrot.slane %v2946_v15, 4  ;;  %2982 = vst.msk [vmem:[#allocation3 + $0x164] sm:$0xf] %vm1057_vm13, %v2946_v15  ;;  %v2894_v51 = vrot.slane %v2882_v33, 4  ;;  %v2822_v38 = vpop.permute.xlu2 %2821 }
 0x705   : > { %2918 = vst.msk [vmem:[#allocation3 + $0x134] sm:$0xf] %vm1057_vm13, %v2882_v33  ;;  %v2832_v41 = vrot.slane %v2822_v38, 4 }
 0x706   : > { %v2965_v63 = vsel %vm693_vm6, %v2957_v52, %v2958_v12  ;;  %v2901_v29 = vsel %vm693_vm6, %v2893_v47, %v2894_v51  ;;  %2856 = vst.msk [vmem:[#allocation3 + $0x110] sm:$0xf] %vm1057_vm13, %v2822_v38  ;;  %v2705_v12 = vrot.slane %v7209_v3, 4 }
 0x707   : > { %v2966_v40 = vsel %vm669_vm2, %v7175_v26, %v2965_v63  ;;  %v2902_v58 = vsel %vm650_vm3, %v7148_v21, %v2901_v29  ;;  %v2839_v61 = vsel %vm693_vm6, %v2831_v34, %v2832_v41  ;;  %v2641_v21 = vrot.slane %v7224_v57, 4 }
 0x708   : > { %2981 = vst [vmem:[#allocation3 + $0x15c] sm:$0xff] %v2966_v40  ;;  %v2840_v43 = vsel %vm632_vm4, %v7183_v7, %v2839_v61  ;;  %v3023_v63 = vrot.slane %v7177_v32, 4  ;;  %v2577_v29 = vrot.slane %v7226_v31, 4 }
 0x709   : > { %2917 = vst [vmem:[#allocation3 + $0x12c] sm:$0xff] %v2902_v58 }
 0x70a   : > { %2855 = vst [vmem:[#allocation3 + $0x108] sm:$0xff] %v2840_v43 }
 0x70b   : > { %v2694_v6 = vpop.permute.xlu1 %2693  ;;  %v2630_v19 = vpop.permute.xlu0 %2629 }
 0x70c   : > { %v2704_v56 = vrot.slane %v2694_v6, 4  ;;  %2728 = vst.msk [vmem:[#allocation3 + $0xb0] sm:$0xf] %vm1057_vm13, %v2694_v6  ;;  %v2640_v26 = vrot.slane %v2630_v19, 4  ;;  %v2634_v9 = vpop.permute.xlu2 %2633 }
 0x70d   : > { %2664 = vst.msk [vmem:[#allocation3 + $0x80] sm:$0xf] %vm1057_vm13, %v2630_v19  ;;  %v2642_v14 = vrot.slane %v2634_v9, 4 }
 0x70e   : > { %v2711_v7 = vsel %vm693_vm6, %v2703_v22, %v2704_v56  ;;  %v2647_v13 = vsel %vm693_vm6, %v2639_v8, %v2640_v26  ;;  %2666 = vst.msk [vmem:[#allocation3 + $0x8c] sm:$0xf] %vm1057_vm13, %v2634_v9 }
 0x70f   : > { %v2712_v16 = vsel %vm595_vm8, %v7185_v27, %v2711_v7  ;;  %v2648_v18 = vsel %vm576_vm9, %v7157_v55, %v2647_v13  ;;  %v2649_v25 = vsel %vm693_vm6, %v2641_v21, %v2642_v14  ;;  %v5997_v14 = vld [vmem:[#allocation3 + $0x98] sm:$0xf0]  ;;  %v5514_v7 = vld [vmem:[#allocation3 + $0x9c] sm:$0xf0]  ;;  %v5512_v13 = vld [vmem:[#allocation3 + $0x90] sm:$0xf] }
 0x710   : > { %2727 = vst [vmem:[#allocation3 + $0xa8] sm:$0xff] %v2712_v16  ;;  %v2650_v17 = vsel %vm576_vm9, %v7224_v57, %v2649_v25  ;;  %v5996_v25 = vld [vmem:[#allocation3 + $0x94] sm:$0xf] }
 0x711   : > { %2663 = vst [vmem:[#allocation3 + $0x78] sm:$0xff] %v2648_v18 }
 0x712   : > { %2665 = vst [vmem:[#allocation3 + $0x84] sm:$0xff] %v2650_v17 }
 0x713   : > { %v2950_v24 = vpop.permute.xlu1 %2949  ;;  %v2886_v0 = vpop.permute.xlu0 %2885 }
 0x714   : > { %v2960_v50 = vrot.slane %v2950_v24, 4  ;;  %2984 = vst.msk [vmem:[#allocation3 + $0x170] sm:$0xf] %vm1057_vm13, %v2950_v24  ;;  %v2896_v27 = vrot.slane %v2886_v0, 4  ;;  %v7308_v36 = vpop.permute.xlu2 %2815 }
 0x715   : > { %2920 = vst.msk [vmem:[#allocation3 + $0x140] sm:$0xf] %vm1057_vm13, %v2886_v0 }
 0x716   : > { %v2967_v55 = vsel %vm693_vm6, %v2959_v2, %v2960_v50  ;;  %v2903_v57 = vsel %vm693_vm6, %v2895_v42, %v2896_v27  ;;  %v5513_v42 = vor.u32 %v5997_v14, %v5512_v13  ;;  %v5517_v2 = vor.u32 %v5996_v25, %v5514_v7 }
 0x717   : > { %v2968_v15 = vsel %vm669_vm2, %v7194_v44, %v2967_v55  ;;  %v2904_v33 = vsel %vm650_vm3, %v7167_v39, %v2903_v57  ;;  %v5999_v56 = vld [vmem:[#allocation3 + $0xac] sm:$0xf]  ;;  %v2897_v27 = vrot.slane %v7239_v48, 4 }
 0x718   : > { %2983 = vst [vmem:[#allocation3 + $0x168] sm:$0xff] %v2968_v15  ;;  %v5500_v17 = vld [vmem:[#allocation3 + $0x78] sm:$0xf] }
 0x719   : > { %2919 = vst [vmem:[#allocation3 + $0x138] sm:$0xff] %v2904_v33  ;;  %v5994_v50 = vld [vmem:[#allocation3 + $0x80] sm:$0xf0]  ;;  %v5502_v57 = vld [vmem:[#allocation3 + $0x84] sm:$0xf0] }
 0x71b   : > { %v7317_v47 = vpop.permute.xlu1 %3015  ;;  %v2698_v52 = vpop.permute.xlu0 %2697 }
 0x71c   : > { %v2706_v51 = vrot.slane %v2698_v52, 4  ;;  %2730 = vst.msk [vmem:[#allocation3 + $0xbc] sm:$0xf] %vm1057_vm13, %v2698_v52  ;;  %v7321_v38 = vpop.permute.xlu2 %3005 }
 0x71d   : > { %3044 = vst.msk [vmem:[#allocation3 + $0x188] sm:$0xf] %vm1057_vm13, %v7321_v38 }
 0x71e   : > { %v2713_v44 = vsel %vm693_vm6, %v2705_v12, %v2706_v51  ;;  %v5501_v51 = vor.u32 %v5994_v50, %v5500_v17  ;;  %v2961_v50 = vrot.slane %v7228_v11, 4 }
 0x71f   : > { %v2714_v39 = vsel %vm595_vm8, %v7209_v3, %v2713_v44  ;;  %v5524_v3 = vld [vmem:[#allocation3 + $0xa8] sm:$0xf] }
 0x720   : > { %2729 = vst [vmem:[#allocation3 + $0xb4] sm:$0xff] %v2714_v39  ;;  %v5991_v39 = vld [vmem:[#allocation3 + $0x68] sm:$0xf0] }
 0x723   : > { %v2570_v34 = vpop.permute.xlu1 %2569  ;;  %v3014_v41 = vpop.permute.xlu0 %3013 }
 0x724   : > { %v2578_v40 = vrot.slane %v2570_v34, 4  ;;  %2602 = vst.msk [vmem:[#allocation3 + $0x5c] sm:$0xf] %vm1057_vm13, %v2570_v34  ;;  %v3024_v58 = vrot.slane %v3014_v41, 4  ;;  %v7331_v61 = vpop.permute.xlu2 %2755  ;;  %v5490_v34 = vld [vmem:[#allocation3 + $0x6c] sm:$0xf0] }
 0x725   : > { %3048 = vst.msk [vmem:[#allocation3 + $0x1a0] sm:$0xf] %vm1057_vm13, %v3014_v41  ;;  %v2829_v41 = vrot.slane %v7308_v36, 4 }
 0x726   : > { %v2585_v43 = vsel %vm693_vm6, %v2577_v29, %v2578_v40  ;;  %v3031_v6 = vsel %vm693_vm6, %v3023_v63, %v3024_v58  ;;  %v3020_v63 = vrot.slane %v7321_v38, 4  ;;  %v5488_v58 = vld [vmem:[#allocation3 + $0x60] sm:$0xf] }
 0x727   : > { %v2586_v19 = vsel %vm558_vm7, %v7226_v31, %v2585_v43  ;;  %v3032_v8 = vsel %vm687_vm5, %v7177_v32, %v3031_v6  ;;  %v6000_v22 = vld [vmem:[#allocation3 + $0xb0] sm:$0xf0]  ;;  %v5526_v26 = vld [vmem:[#allocation3 + $0xb4] sm:$0xf0]  ;;  %v5993_v31 = vld [vmem:[#allocation3 + $0x7c] sm:$0xf] }
 0x728   : > { %2601 = vst [vmem:[#allocation3 + $0x54] sm:$0xff] %v2586_v19  ;;  %v5525_v9 = vor.u32 %v6000_v22, %v5524_v3  ;;  %v5529_v21 = vor.u32 %v5999_v56, %v5526_v26  ;;  %v5505_v44 = vor.u32 %v5993_v31, %v5502_v57  ;;  %v5990_v43 = vld [vmem:[#allocation3 + $0x64] sm:$0xf]  ;;  %v5489_v19 = vor.u32 %v5991_v39, %v5488_v58 }
 0x729   : > { %3047 = vst [vmem:[#allocation3 + $0x198] sm:$0xff] %v3032_v8  ;;  %v5493_v8 = vor.u32 %v5990_v43, %v5490_v34  ;;  %v3025_v56 = vrot.slane %v7317_v47, 4  ;;  %v5440_v43 = vld [vmem:[#allocation3] sm:$0xf] }
 0x72a   : > { %3467 = vmatpush.bf16.msrb.mxu0 %v5525_v9  ;;  %3524 = vmatpush.bf16.msra.mxu3 %v5529_v21 }
 0x72b   : > { %v2814_v16 = vpop.permute.xlu1 %2813  ;;  %v2812_v18 = vpop.permute.xlu0 %2811 }
 0x72c   : > { %v2828_v24 = vrot.slane %v2814_v16, 4  ;;  %2852 = vst.msk [vmem:[#allocation3 + $0xf8] sm:$0xf] %vm1057_vm13, %v2814_v16  ;;  %v2827_v32 = vrot.slane %v2812_v18, 4  ;;  %v2890_v0 = vpop.permute.xlu2 %2889  ;;  %v5476_v16 = vld [vmem:[#allocation3 + $0x48] sm:$0xf] }
 0x72d   : > { %v2898_v55 = vrot.slane %v2890_v0, 4  ;;  %2922 = vst.msk [vmem:[#allocation3 + $0x14c] sm:$0xf] %vm1057_vm13, %v2890_v0 }
 0x72e   : > { %v2835_v15 = vsel %vm693_vm6, %v2827_v32, %v2828_v24  ;;  %3468 = vmatpush.bf16.msrb.mxu0 %v5513_v42  ;;  %3525 = vmatpush.bf16.msra.mxu3 %v5517_v2  ;;  %v5985_v24 = vld [vmem:[#allocation3 + $0x38] sm:$0xf0]  ;;  %v5466_v32 = vld [vmem:[#allocation3 + $0x3c] sm:$0xf0]  ;;  %v5464_v2 = vld [vmem:[#allocation3 + $0x30] sm:$0xf] }
 0x72f   : > { %v2836_v33 = vsel %vm632_vm4, %v2812_v18, %v2835_v15  ;;  %v2905_v52 = vsel %vm693_vm6, %v2897_v27, %v2898_v55  ;;  %v5988_v22 = vld [vmem:[#allocation3 + $0x50] sm:$0xf0]  ;;  %v5478_v9 = vld [vmem:[#allocation3 + $0x54] sm:$0xf0]  ;;  %v5987_v18 = vld [vmem:[#allocation3 + $0x4c] sm:$0xf] }
 0x730   : > { %2851 = vst [vmem:[#allocation3 + $0xf0] sm:$0xff] %v2836_v33  ;;  %v2906_v12 = vsel %vm650_vm3, %v7239_v48, %v2905_v52  ;;  %v5477_v17 = vor.u32 %v5988_v22, %v5476_v16  ;;  %v5481_v31 = vor.u32 %v5987_v18, %v5478_v9  ;;  %v5452_v15 = vld [vmem:[#allocation3 + $0x18] sm:$0xf]  ;;  %v5981_v33 = vld [vmem:[#allocation3 + $0x1c] sm:$0xf] }
 0x731   : > { %2921 = vst [vmem:[#allocation3 + $0x144] sm:$0xff] %v2906_v12  ;;  %v5978_v22 = vld [vmem:[#allocation3 + $0x4] sm:$0xf] }
 0x732   : > { %3469 = vmatpush.bf16.msrb.mxu0 %v5501_v51  ;;  %3526 = vmatpush.bf16.msra.mxu3 %v5505_v44  ;;  %v5982_v51 = vld [vmem:[#allocation3 + $0x20] sm:$0xf0]  ;;  %v5454_v44 = vld [vmem:[#allocation3 + $0x24] sm:$0xf0] }
 0x733   : > { %v3004_v29 = vpop.permute.xlu1 %3003  ;;  %v2818_v40 = vpop.permute.xlu0 %2817  ;;  %v5453_v39 = vor.u32 %v5982_v51, %v5452_v15  ;;  %v5457_v34 = vor.u32 %v5981_v33, %v5454_v44  ;;  %v6020_v15 = vld [vmem:[#allocation3 + $0x154] sm:$0xf] }
 0x734   : > { %v3019_v6 = vrot.slane %v3004_v29, 4  ;;  %v2830_v3 = vrot.slane %v2818_v40, 4  ;;  %2854 = vst.msk [vmem:[#allocation3 + $0x104] sm:$0xf] %vm1057_vm13, %v2818_v40  ;;  %v3018_v48 = vpop.permute.xlu2 %3017  ;;  %v5442_v40 = vld [vmem:[#allocation3 + $0xc] sm:$0xf0] }
 0x735   : > { %v3026_v26 = vrot.slane %v3018_v48, 4  ;;  %3050 = vst.msk [vmem:[#allocation3 + $0x1ac] sm:$0xf] %vm1057_vm13, %v3018_v48  ;;  %v6019_v33 = vld [vmem:[#allocation3 + $0x148] sm:$0xf0] }
 0x736   : > { %v3027_v38 = vsel %vm693_vm6, %v3019_v6, %v3020_v63  ;;  %v2837_v21 = vsel %vm693_vm6, %v2829_v41, %v2830_v3  ;;  %3470 = vmatpush.bf16.msrb.mxu0 %v5489_v19  ;;  %3527 = vmatpush.bf16.msra.mxu3 %v5493_v8  ;;  %v5979_v41 = vld [vmem:[#allocation3 + $0x8] sm:$0xf0]  ;;  %v5644_v63 = vld [vmem:[#allocation3 + $0x198] sm:$0xf]  ;;  %v2833_v3 = vrot.slane %v7241_v60, 4 }
 0x737   : > { %v3028_v14 = vsel %vm687_vm5, %v3004_v29, %v3027_v38  ;;  %v2838_v7 = vsel %vm632_vm4, %v7308_v36, %v2837_v21  ;;  %v3033_v13 = vsel %vm693_vm6, %v3025_v56, %v3026_v26  ;;  %v5984_v36 = vld [vmem:[#allocation3 + $0x34] sm:$0xf]  ;;  %v5416_v6 = vld [vmem:[%s7912_s8 + $0x30] sm:$0xf]  ;;  %v5628_v56 = vld [vmem:[#allocation3 + $0x170] sm:$0xf]  ;;  %v5441_v38 = vor.u32 %v5979_v41, %v5440_v43 }
 0x738   : > { %3043 = vst [vmem:[#allocation3 + $0x180] sm:$0xff] %v3028_v14  ;;  %v3034_v25 = vsel %vm687_vm5, %v7317_v47, %v3033_v13  ;;  %v5465_v47 = vor.u32 %v5985_v24, %v5464_v2  ;;  %v5469_v57 = vor.u32 %v5984_v36, %v5466_v32  ;;  %v5445_v21 = vor.u32 %v5978_v22, %v5442_v40  ;;  %v5598_v43 = vld [vmem:[#allocation3 + $0x144] sm:$0xf0] }
 0x739   : > { %2853 = vst [vmem:[#allocation3 + $0xfc] sm:$0xff] %v2838_v7 }
 0x73a   : > { %3049 = vst [vmem:[#allocation3 + $0x1a4] sm:$0xff] %v3034_v25  ;;  %3471 = vmatpush.bf16.msrb.mxu0 %v5477_v17  ;;  %3528 = vmatpush.bf16.msra.mxu3 %v5481_v31  ;;  %v5620_v25 = vld [vmem:[#allocation3 + $0x168] sm:$0xf]  ;;  %v5616_v17 = vld [vmem:[#allocation3 + $0x158] sm:$0xf] }
 0x73b   : > { %v3010_v0 = vpop.permute.xlu1 %3009  ;;  %v2954_v42 = vpop.permute.xlu0 %2953  ;;  %v6022_v31 = vld [vmem:[#allocation3 + $0x160] sm:$0xf0] }
 0x73c   : > { %3046 = vst.msk [vmem:[#allocation3 + $0x194] sm:$0xf] %vm1057_vm13, %v3010_v0  ;;  %v2962_v27 = vrot.slane %v2954_v42, 4  ;;  %v7363_v55 = vpop.permute.xlu2 %2761  ;;  %v3022_v48 = vrot.slane %v3010_v0, 4 }
 0x73d   : > { %2986 = vst.msk [vmem:[#allocation3 + $0x17c] sm:$0xf] %vm1057_vm13, %v2954_v42  ;;  %v6023_v42 = vld [vmem:[#allocation3 + $0x16c] sm:$0xf]  ;;  %v2770_v41 = vrot.slane %v7363_v55, 4 }
 0x73e   : > { %v2969_v52 = vsel %vm693_vm6, %v2961_v50, %v2962_v27  ;;  %2794 = vst.msk [vmem:[#allocation3 + $0xec] sm:$0xf] %vm1057_vm13, %v7363_v55  ;;  %3472 = vmatpush.bf16.msrb.mxu0 %v5465_v47  ;;  %3529 = vmatpush.bf16.msra.mxu3 %v5469_v57  ;;  %v6021_v27 = vld [vmem:[#allocation3 + $0x158] sm:$0xf0]  ;;  %v5610_v47 = vld [vmem:[#allocation3 + $0x15c] sm:$0xf0]  ;;  %v5617_v57 = vor.u32 %v6022_v31, %v5616_v17 }
 0x73f   : > { %v2970_v12 = vsel %vm669_vm2, %v7228_v11, %v2969_v52  ;;  %v5973_v11 = vld [vmem:[%s7912_s8 + $0x38] sm:$0xf0]  ;;  %v5613_v44 = vor.u32 %v6020_v15, %v5610_v47  ;;  %v5586_v17 = vld [vmem:[#allocation3 + $0x12c] sm:$0xf0] }
 0x740   : > { %2985 = vst [vmem:[#allocation3 + $0x174] sm:$0xff] %v2970_v12  ;;  %v7379_v13 = vor.u32 %v5973_v11, %v5416_v6  ;;  %v5998_v47 = vld [vmem:[#allocation3 + $0xa0] sm:$0xf0] }
 0x741   : > { %v6030_v29 = vld [vmem:[#allocation3 + $0x1a0] sm:$0xf0] }
 0x742   : > { %3473 = vmatpush.bf16.msrb.mxu0 %v5453_v39  ;;  %v5645_v58 = vor.u32 %v6030_v29, %v5644_v63  ;;  %3530 = vmatpush.bf16.msra.mxu3 %v5457_v34  ;;  %v5604_v39 = vld [vmem:[#allocation3 + $0x140] sm:$0xf]  ;;  %v2767_v34 = vrot.slane %v7331_v61, 4 }
 0x743   : > { %v2826_v19 = vpop.permute.xlu1 %2825  ;;  %v3008_v8 = vpop.permute.xlu0 %3007  ;;  %v5605_v40 = vor.u32 %v6019_v33, %v5604_v39  ;;  %v5580_v33 = vld [vmem:[#allocation3 + $0x110] sm:$0xf] }
 0x744   : > { %3511 = vmatpush.bf16.msrb.mxu2 %v5645_v58  ;;  %v2834_v26 = vrot.slane %v2826_v19, 4  ;;  %2858 = vst.msk [vmem:[#allocation3 + $0x11c] sm:$0xf] %vm1057_vm13, %v2826_v19  ;;  %v3021_v9 = vrot.slane %v3008_v8, 4  ;;  %v6025_v14 = vld [vmem:[#allocation3 + $0x178] sm:$0xf0] }
 0x745   : > { %v5629_v7 = vor.u32 %v6025_v14, %v5628_v56  ;;  %v6018_v58 = vld [vmem:[#allocation3 + $0x140] sm:$0xf0]  ;;  %v5592_v19 = vld [vmem:[#allocation3 + $0x128] sm:$0xf]  ;;  %v6001_v56 = vld [vmem:[#allocation3 + $0xb8] sm:$0xf0] }
 0x746   : > { %v2841_v16 = vsel %vm693_vm6, %v2833_v3, %v2834_v26  ;;  %v3029_v18 = vsel %vm693_vm6, %v3021_v9, %v3022_v48  ;;  %3474 = vmatpush.bf16.msrb.mxu0 %v5441_v38  ;;  %3531 = vmatpush.bf16.msra.mxu3 %v5445_v21  ;;  %v5596_v3 = vld [vmem:[#allocation3 + $0x138] sm:$0xf]  ;;  %v6017_v48 = vld [vmem:[#allocation3 + $0x13c] sm:$0xf]  ;;  %v5424_v26 = vld [vmem:[%s7912_s8 + $0x38] sm:$0xf] }
 0x747   : > { %v2842_v24 = vsel %vm632_vm4, %v7241_v60, %v2841_v16  ;;  %v3030_v32 = vsel %vm687_vm5, %v3008_v8, %v3029_v18  ;;  %v6024_v0 = vld [vmem:[#allocation3 + $0x170] sm:$0xf0]  ;;  %v5622_v2 = vld [vmem:[#allocation3 + $0x174] sm:$0xf0]  ;;  %v5608_v60 = vld [vmem:[#allocation3 + $0x150] sm:$0xf]  ;;  %v5597_v21 = vor.u32 %v6018_v58, %v5596_v3  ;;  %v5601_v16 = vor.u32 %v6017_v48, %v5598_v43 }
 0x748   : > { %2857 = vst [vmem:[#allocation3 + $0x114] sm:$0xff] %v2842_v24  ;;  %v5621_v36 = vor.u32 %v6024_v0, %v5620_v25  ;;  %v5625_v50 = vor.u32 %v6023_v42, %v5622_v2  ;;  %v5609_v51 = vor.u32 %v6021_v27, %v5608_v60  ;;  %v6016_v8 = vld [vmem:[#allocation3 + $0x130] sm:$0xf0]  ;;  %v5974_v9 = vld [vmem:[%s7912_s8 + $0x40] sm:$0xf0] }
 0x749   : > { %3045 = vst [vmem:[#allocation3 + $0x18c] sm:$0xff] %v3030_v32  ;;  %3475 = vmatmul.bf16.vlgmr.msrb.gmra.mxu0 %v7379_v13  ;;  %3532 = vmatmul.bf16.vlgmr.msra.gmra.mxu3 %v7379_v13  ;;  %v6015_v38 = vld [vmem:[#allocation3 + $0x128] sm:$0xf0]  ;;  %v5632_v14 = vld [vmem:[#allocation3 + $0x180] sm:$0xf]  ;;  %v7402_v24 = vor.u32 %v5974_v9, %v5424_v26 }
 0x74a   : > { %3600 = vmatpush.bf16.msrb.mxu3 %v5629_v7  ;;  %3486 = vmatpush.bf16.msrb.mxu1 %v5621_v36  ;;  %v5532_v25 = vld [vmem:[#allocation3 + $0xb0] sm:$0xf]  ;;  %v5976_v42 = vld [vmem:[%s7912_s8 + $0x50] sm:$0xf0]  ;;  %v6014_v27 = vld [vmem:[#allocation3 + $0x124] sm:$0xf] }
 0x74b   : > { %3543 = vmatpush.bf16.msra.mxu0 %v5625_v50  ;;  %v2760_v52 = vpop.permute.xlu1 %2759  ;;  %v2758_v12 = vpop.permute.xlu0 %2757  ;;  %v5533_v31 = vor.u32 %v6001_v56, %v5532_v25  ;;  %v6013_v32 = vld [vmem:[#allocation3 + $0x118] sm:$0xf0]  ;;  %v5428_v0 = vld [vmem:[%s7912_s8 + $0x48] sm:$0xf]  ;;  %v5584_v50 = vld [vmem:[#allocation3 + $0x120] sm:$0xf] }
 0x74c   : > { %v2769_v63 = vrot.slane %v2760_v52, 4  ;;  %v2768_v29 = vrot.slane %v2758_v12, 4  ;;  %2792 = vst.msk [vmem:[#allocation3 + $0xe0] sm:$0xf] %vm1057_vm13, %v2758_v12  ;;  %v5585_v15 = vor.u32 %v6015_v38, %v5584_v50  ;;  %v5520_v12 = vld [vmem:[#allocation3 + $0x98] sm:$0xf] }
 0x74d   : > { %v5572_v58 = vld [vmem:[#allocation3 + $0x108] sm:$0xf]  ;;  %v5508_v43 = vld [vmem:[#allocation3 + $0x80] sm:$0xf]  ;;  %v6011_v3 = vld [vmem:[#allocation3 + $0x10c] sm:$0xf] }
 0x74e   : > { %3601 = vmatpush.bf16.msrb.mxu3 %v5617_v57  ;;  %v2777_v6 = vsel %vm693_vm6, %v2769_v63, %v2770_v41  ;;  %v2775_v11 = vsel %vm693_vm6, %v2767_v34, %v2768_v29  ;;  %3487 = vmatpush.bf16.msrb.mxu1 %v5609_v51  ;;  %v5581_v51 = vor.u32 %v6013_v32, %v5580_v33  ;;  %v6010_v29 = vld [vmem:[#allocation3 + $0x100] sm:$0xf0]  ;;  %v5568_v48 = vld [vmem:[#allocation3 + $0xf8] sm:$0xf]  ;;  %v5562_v26 = vld [vmem:[#allocation3 + $0xfc] sm:$0xf0] }
 0x74f   : > { %3544 = vmatpush.bf16.msra.mxu0 %v5613_v44  ;;  %v2778_v22 = vsel %vm613_vm1, %v2760_v52, %v2777_v6  ;;  %v2776_v55 = vsel %vm613_vm1, %v7331_v61, %v2775_v11  ;;  %v5593_v61 = vor.u32 %v6016_v8, %v5592_v19  ;;  %v5589_v52 = vor.u32 %v6014_v27, %v5586_v17  ;;  %v6012_v39 = vld [vmem:[#allocation3 + $0x110] sm:$0xf0]  ;;  %v5574_v63 = vld [vmem:[#allocation3 + $0x114] sm:$0xf0]  ;;  %v5995_v6 = vld [vmem:[#allocation3 + $0x88] sm:$0xf0]  ;;  %v2752_v19 = vpop.permute.xlu2 %2751 }
 0x750   : > { %2793 = vst [vmem:[#allocation3 + $0xe4] sm:$0xff] %v2778_v22  ;;  %v6027_v7 = vld [vmem:[#allocation3 + $0x188] sm:$0xf0]  ;;  %v7411_v44 = vor.u32 %v5976_v42, %v5428_v0  ;;  %v5521_v41 = vor.u32 %v5998_v47, %v5520_v12  ;;  %v5573_v11 = vor.u32 %v6012_v39, %v5572_v58  ;;  %v5577_v8 = vor.u32 %v6011_v3, %v5574_v63  ;;  %v5484_v12 = vld [vmem:[#allocation3 + $0x50] sm:$0xf] }
 0x751   : > { %2791 = vst [vmem:[#allocation3 + $0xd8] sm:$0xff] %v2776_v55  ;;  %v5633_v18 = vor.u32 %v6027_v7, %v5632_v14  ;;  %v5569_v22 = vor.u32 %v6010_v29, %v5568_v48  ;;  %v6009_v55 = vld [vmem:[#allocation3 + $0xf8] sm:$0xf0]  ;;  %v5509_v56 = vor.u32 %v5995_v6, %v5508_v43  ;;  %v6008_v14 = vld [vmem:[#allocation3 + $0xf4] sm:$0xf] }
 0x752   : > { %3602 = vmatpush.bf16.msrb.mxu3 %v5605_v40  ;;  %3488 = vmatpush.bf16.msrb.mxu1 %v5597_v21  ;;  %v5560_v21 = vld [vmem:[#allocation3 + $0xf0] sm:$0xf]  ;;  %v5992_v7 = vld [vmem:[#allocation3 + $0x70] sm:$0xf0]  ;;  %v5565_v17 = vor.u32 %v6008_v14, %v5562_v26  ;;  %v5986_v63 = vld [vmem:[#allocation3 + $0x40] sm:$0xf0] }
 0x753   : > { %3545 = vmatpush.bf16.msra.mxu0 %v5601_v16  ;;  %3512 = vmatpush.bf16.msrb.mxu2 %v5633_v18  ;;  %v2750_v2 = vpop.permute.xlu1 %2749  ;;  %v2748_v36 = vpop.permute.xlu0 %2747  ;;  %v5556_v9 = vld [vmem:[#allocation3 + $0xe0] sm:$0xf]  ;;  %v2765_v16 = vrot.slane %v2752_v19, 4  ;;  %v5561_v25 = vor.u32 %v6009_v55, %v5560_v21  ;;  %v5418_v58 = vld [vmem:[%s7912_s8 + $0x3c] sm:$0xf0] }
 0x754   : > { %v2764_v57 = vrot.slane %v2750_v2, 4  ;;  %2788 = vst.msk [vmem:[#allocation3 + $0xc8] sm:$0xf] %vm1057_vm13, %v2750_v2  ;;  %v2763_v60 = vrot.slane %v2748_v36, 4  ;;  %v5472_v43 = vld [vmem:[#allocation3 + $0x38] sm:$0xf] }
 0x755   : > { %v5983_v6 = vld [vmem:[#allocation3 + $0x28] sm:$0xf0]  ;;  %v5646_v48 = vld [vmem:[#allocation3 + $0x1a4] sm:$0xf0]  ;;  %v5652_v21 = vld [vmem:[#allocation3 + $0x1a0] sm:$0xf] }
 0x756   : > { %3603 = vmatpush.bf16.msrb.mxu3 %v5593_v61  ;;  %v2771_v34 = vsel %vm693_vm6, %v2763_v60, %v2764_v57  ;;  %5654 = vmatmul.msk.bf16.vlgmr.msrb.gmra.mxu2 %vm883_vm11, %v7402_v24  ;;  %v6007_v61 = vld [vmem:[#allocation3 + $0xe8] sm:$0xf0]  ;;  %v5989_v57 = vld [vmem:[#allocation3 + $0x58] sm:$0xf0]  ;;  %v5436_v60 = vld [vmem:[%s7912_s8 + $0x50] sm:$0xf] }
 0x757   : > { %3581 = vmatpush.bf16.msra.mxu2 %v5533_v31  ;;  %3489 = vmatpush.bf16.msrb.mxu1 %v5585_v15  ;;  %v2772_v40 = vsel %vm613_vm1, %v2748_v36, %v2771_v34  ;;  %v5496_v31 = vld [vmem:[#allocation3 + $0x68] sm:$0xf]  ;;  %v5557_v32 = vor.u32 %v6007_v61, %v5556_v9  ;;  %v6006_v42 = vld [vmem:[#allocation3 + $0xe0] sm:$0xf0]  ;;  %v6028_v61 = vld [vmem:[#allocation3 + $0x190] sm:$0xf0] }
 0x758   : > { %3546 = vmatpush.bf16.msra.mxu0 %v5589_v52  ;;  %2787 = vst [vmem:[#allocation3 + $0xc0] sm:$0xff] %v2772_v40  ;;  %v5548_v0 = vld [vmem:[#allocation3 + $0xd8] sm:$0xf]  ;;  %v5497_v36 = vor.u32 %v5992_v7, %v5496_v31  ;;  %v6005_v50 = vld [vmem:[#allocation3 + $0xdc] sm:$0xf] }
 0x759   : > { %3480 = vmatmul.bf16.gmra.mxu0 %v7411_v44  ;;  %3537 = vmatmul.bf16.gmra.mxu3 %v7411_v44  ;;  %v5550_v27 = vld [vmem:[#allocation3 + $0xe4] sm:$0xf0]  ;;  %v5977_v15 = vld [vmem:[%s7912_s8 + $0x58] sm:$0xf0]  ;;  %v5549_v33 = vor.u32 %v6006_v42, %v5548_v0  ;;  %v5972_v40 = vld [vmem:[%s7912_s8 + $0x34] sm:$0xf] }
 0x75a   : > { %3604 = vmatpush.bf16.msrb.mxu3 %v5581_v51  ;;  %v5553_v52 = vor.u32 %v6005_v50, %v5550_v27  ;;  %v5485_v51 = vor.u32 %v5989_v57, %v5484_v12  ;;  %v5437_v39 = vor.u32 %v5977_v15, %v5436_v60  ;;  %v5460_v7 = vld [vmem:[#allocation3 + $0x20] sm:$0xf]  ;;  %v6026_v31 = vld [vmem:[#allocation3 + $0x184] sm:$0xf]  ;;  %v5980_v42 = vld [vmem:[#allocation3 + $0x10] sm:$0xf0] }
 0x75b   : > { %3582 = vmatpush.bf16.msra.mxu2 %v5521_v41  ;;  %3490 = vmatpush.bf16.msrb.mxu1 %v5573_v11  ;;  %v2754_v38 = vpop.permute.xlu0 %2753  ;;  %v5544_v34 = vld [vmem:[#allocation3 + $0xc8] sm:$0xf]  ;;  %v5473_v11 = vor.u32 %v5986_v63, %v5472_v43  ;;  %v5975_v50 = vld [vmem:[%s7912_s8 + $0x4c] sm:$0xf]  ;;  %v5430_v27 = vld [vmem:[%s7912_s8 + $0x54] sm:$0xf0] }
 0x75c   : > { %3547 = vmatpush.bf16.msra.mxu0 %v5577_v8  ;;  %v2766_v18 = vrot.slane %v2754_v38, 4  ;;  %2790 = vst.msk [vmem:[#allocation3 + $0xd4] sm:$0xf] %vm1057_vm13, %v2754_v38  ;;  %v6029_v38 = vld [vmem:[#allocation3 + $0x19c] sm:$0xf] }
 0x75d   : > { %v5649_v14 = vor.u32 %v6029_v38, %v5646_v48 }
 0x75e   : > { %3605 = vmatpush.bf16.msrb.mxu3 %v5569_v22  ;;  %v2773_v2 = vsel %vm693_vm6, %v2765_v16, %v2766_v18  ;;  %v5461_v18 = vor.u32 %v5983_v6, %v5460_v7 }
 0x75f   : > { %3583 = vmatpush.bf16.msra.mxu2 %v5509_v56  ;;  %3491 = vmatpush.bf16.msrb.mxu1 %v5561_v25  ;;  %v2774_v47 = vsel %vm613_vm1, %v2752_v19, %v2773_v2  ;;  %v5536_v3 = vld [vmem:[#allocation3 + $0xc0] sm:$0xf]  ;;  %v6031_v19 = vld [vmem:[#allocation3 + $0x1a8] sm:$0xf0]  ;;  %v6002_v22 = vld [vmem:[#allocation3 + $0xc4] sm:$0xf]  ;;  %v5421_v56 = vor.u32 %v5972_v40, %v5418_v58  ;;  %v3136_v58 = vpop.permute.xlu1 %3135 }
 0x760   : > { %3548 = vmatpush.bf16.msra.mxu0 %v5565_v17  ;;  %2789 = vst [vmem:[#allocation3 + $0xcc] sm:$0xff] %v2774_v47  ;;  %v5653_v16 = vor.u32 %v6031_v19, %v5652_v21  ;;  %v5634_v25 = vld [vmem:[#allocation3 + $0x18c] sm:$0xf0]  ;;  %v5448_v17 = vld [vmem:[#allocation3 + $0x8] sm:$0xf]  ;;  %v5433_v47 = vor.u32 %v5975_v50, %v5430_v27 }
 0x761   : > { %v5637_v0 = vor.u32 %v6026_v31, %v5634_v25 }
 0x762   : > { %3606 = vmatpush.bf16.msrb.mxu3 %v5557_v32  ;;  %v5640_v32 = vld [vmem:[#allocation3 + $0x188] sm:$0xf] }
 0x763   : > { %3584 = vmatpush.bf16.msra.mxu2 %v5497_v36  ;;  %3492 = vmatpush.bf16.msrb.mxu1 %v5549_v33  ;;  %v6004_v41 = vld [vmem:[#allocation3 + $0xd0] sm:$0xf0]  ;;  %v5641_v2 = vor.u32 %v6028_v61, %v5640_v32  ;;  %v5449_v36 = vor.u32 %v5980_v42, %v5448_v17 }
 0x764   : > { %3549 = vmatpush.bf16.msra.mxu0 %v5553_v52  ;;  %v5545_v29 = vor.u32 %v6004_v41, %v5544_v34 }
 0x766   : > { %5655 = vmatmul.msk.bf16.gmra.mxu2 %vm883_vm11, %v5437_v39  ;;  %3607 = vmatpush.bf16.msrb.mxu3 %v5545_v29 }
 0x767   : > { %3585 = vmatpush.bf16.msra.mxu2 %v5485_v51  ;;  %v6003_v8 = vld [vmem:[#allocation3 + $0xc8] sm:$0xf0]  ;;  %v5538_v55 = vld [vmem:[#allocation3 + $0xcc] sm:$0xf0]  ;;  %v3131_v48 = vpop.permute.xlu1 %3130 }
 0x768   : > { %v5537_v26 = vor.u32 %v6003_v8, %v5536_v3  ;;  %v5541_v9 = vor.u32 %v6002_v22, %v5538_v55  ;;  %v3141_v55 = vpop.permute.xlu2 %3140 }
 0x769   : > { %3608 = vmatmul.bf16.vlgmr.msrb.gmra.mxu3 %v5421_v56 }
 0x76a   : > { %3493 = vmatpush.bf16.msrb.mxu1 %v5537_v26  ;;  %3550 = vmatpush.bf16.msra.mxu0 %v5541_v9 }
 0x76b   : > { %3586 = vmatpush.bf16.msra.mxu2 %v5473_v11 }
 0x76d   : > { %3494 = vmatmul.bf16.vlgmr.msrb.gmra.mxu1 %v5421_v56  ;;  %3551 = vmatmul.bf16.vlgmr.msra.gmra.mxu0 %v5421_v56  ;;  %v3126_v56 = vpop.permute.xlu0 %3125 }
 0x76e   : > { %3568 = vmatpush.bf16.msra.mxu1 %v5649_v14  ;;  %3625 = vmatpush.bf16.msrb.mxu0 %v5653_v16 }
 0x76f   : > { %3587 = vmatpush.bf16.msra.mxu2 %v5461_v18 }
 0x772   : > { %3569 = vmatpush.bf16.msra.mxu1 %v5637_v0  ;;  %3626 = vmatpush.bf16.msrb.mxu0 %v5641_v2 }
 0x773   : > { %3588 = vmatpush.bf16.msra.mxu2 %v5449_v36 }
 0x776   : > { %3589 = vmatmul.bf16.vlgmr.msra.gmra.mxu2 %v7379_v13 }
 0x779   : > { %3613 = vmatmul.bf16.gmra.mxu3 %v5433_v47 }
 0x77d   : > { %3499 = vmatmul.bf16.gmra.mxu1 %v5433_v47  ;;  %3556 = vmatmul.bf16.gmra.mxu0 %v5433_v47 }
 0x786   : > { %3594 = vmatmul.bf16.gmra.mxu2 %v7411_v44 }
 0x78d   : > { %5656 = vmatmul.msk.bf16.vlgmr.msra.gmra.mxu1 %vm883_vm11, %v7402_v24  ;;  %5658 = vmatmul.msk.bf16.vlgmr.msrb.gmra.mxu0 %vm883_vm11, %v7402_v24 }
 0x79d   : > { %5657 = vmatmul.msk.bf16.gmra.mxu1 %vm883_vm11, %v5437_v39  ;;  %5659 = vmatmul.msk.bf16.gmra.mxu0 %vm883_vm11, %v5437_v39 }
 0x7c6   : > { %v3476_v57 = vpop.f32.mrf.mxu0 }
 0x7c7   : > { %v3477_v26 = vadd.f32 %v3476_v57, %v3126_v56 }
 0x7cc   : > { %v7449_v13 = vpop.f32.mrf.mxu3 }
 0x7ce   : > { %v3478_v60 = vpop.f32.mrf.mxu0 }
 0x7cf   : > { %v3479_v19 = vadd.f32 %v3478_v60, %v3131_v48  ;;  %v6032_v60 = vld [vmem:[%s7914_s10 + $0x10] sm:$0xff] }
 0x7d4   : > { %v3535_v51 = vpop.f32.mrf.mxu3 }
 0x7d6   : > { %v3481_v15 = vpop.f32.mrf.mxu0 }
 0x7d7   : > { %v3482_v3 = vadd.f32 %v3481_v15, %v3136_v58 }
 0x7d9   : > { %v3514_v33 = vpop.f32.mrf.mxu2 }
 0x7dc   : > { %v3538_v63 = vpop.f32.mrf.mxu3 }
 0x7de   : > { %v3483_v12 = vpop.f32.mrf.mxu0 }
 0x7df   : > { %v3484_v9 = vadd.f32 %v3483_v12, %v3141_v55 }
 0x7e1   : > { %v3516_v52 = vpop.f32.mrf.mxu2 }
 0x7e4   : > { %v3540_v43 = vpop.f32.mrf.mxu3 }
 0x7e9   : > { %v3519_v44 = vpop.f32.mrf.mxu2 }
 0x7ea   : > { %v3495_v34 = vpop.f32.mrf.mxu1  ;;  %v7451_v41 = vpop.f32.mrf.mxu0 }
 0x7eb   : > { %v3496_v7 = vadd.f32 %v3495_v34, %v3477_v26  ;;  %v3541_v26 = vadd.f32 %v3540_v43, %v3141_v55 }
 0x7ec   : > { %v3609_v22 = vpop.f32.mrf.mxu3 }
 0x7ed   : > { %v3515_v31 = vadd.f32 %v3514_v33, %v3496_v7 }
 0x7ef   : > { %v3638_v47 = vmax.f32 %v3515_v31, 0.0 }
 0x7f1   : > { %v3521_v29 = vpop.f32.mrf.mxu2 }
 0x7f2   : > { %v3497_v24 = vpop.f32.mrf.mxu1  ;;  %v3554_v40 = vpop.f32.mrf.mxu0 }
 0x7f3   : > { %v3498_v38 = vadd.f32 %v3497_v24, %v3479_v19 }
 0x7f4   : > { %v3611_v36 = vpop.f32.mrf.mxu3 }
 0x7f5   : > { %v3517_v25 = vadd.f32 %v3516_v52, %v3498_v38 }
 0x7f7   : > { %v3641_v42 = vmax.f32 %v3517_v25, 0.0 }
 0x7f9   : > { %v3590_v11 = vpop.f32.mrf.mxu2  ;;  %v3660_v57 = vpack.c.bf16 %v3641_v42, %v3638_v47 }
 0x7fa   : > { %v3500_v39 = vpop.f32.mrf.mxu1  ;;  %v3557_v6 = vpop.f32.mrf.mxu0 }
 0x7fb   : > { %v3501_v8 = vadd.f32 %v3500_v39, %v3482_v3  ;;  %v3539_v39 = vadd.f32 %v3538_v63, %v3136_v58 }
 0x7fc   : > { %v3614_v33 = vpop.f32.mrf.mxu3 }
 0x7fd   : > { %v3520_v16 = vadd.f32 %v3519_v44, %v3501_v8  ;;  %v3536_v8 = vadd.f32 %v3535_v51, %v3131_v48  ;;  %v3558_v7 = vadd.f32 %v3557_v6, %v3539_v39 }
 0x7ff   : > { %v3644_v32 = vmax.f32 %v3520_v16, 0.0  ;;  %v3555_v25 = vadd.f32 %v3554_v40, %v3536_v8 }
 0x801   : > { %v3592_v61 = vpop.f32.mrf.mxu2 }
 0x802   : > { %v3502_v21 = vpop.f32.mrf.mxu1  ;;  %v3559_v14 = vpop.f32.mrf.mxu0  ;;  %v3593_v3 = vadd.f32 %v3592_v61, %v3131_v48 }
 0x803   : > { %v3503_v18 = vadd.f32 %v3502_v21, %v3484_v9  ;;  %v3591_v9 = vadd.f32 %v3590_v11, %v3126_v56  ;;  %v6033_v21 = vld [vmem:[%s7914_s10 + $0x18] sm:$0xff] }
 0x804   : > { %v3616_v38 = vpop.f32.mrf.mxu3  ;;  %v3612_v31 = vadd.f32 %v3611_v36, %v3593_v3 }
 0x805   : > { %v3522_v17 = vadd.f32 %v3521_v29, %v3503_v18  ;;  %v3534_v18 = vadd.f32 %v7449_v13, %v3126_v56  ;;  %v3610_v51 = vadd.f32 %v3609_v22, %v3591_v9 }
 0x807   : > { %v3647_v0 = vmax.f32 %v3522_v17, 0.0  ;;  %v3560_v17 = vadd.f32 %v3559_v14, %v3541_v26 }
 0x809   : > { %v3663_v2 = vpack.c.bf16 %v3647_v0, %v3644_v32  ;;  %v3595_v15 = vpop.f32.mrf.mxu2 }
 0x80a   : > { %v3571_v50 = vpop.f32.mrf.mxu1  ;;  %v3628_v27 = vpop.f32.mrf.mxu0  ;;  %v3596_v24 = vadd.f32 %v3595_v15, %v3136_v58  ;;  %v3553_v58 = vadd.f32 %v7451_v41, %v3534_v18 }
 0x80b   : > { %3708 = vmatpush.bf16.msrb.mxu1 %v3663_v2  ;;  %v3629_v2 = vadd.f32 %v3628_v27, %v3610_v51  ;;  %v3679_v27 = vpop.permute.xlu2 %3678 }
 0x80c   : > { %v3615_v16 = vadd.f32 %v3614_v33, %v3596_v24  ;;  %v3572_v42 = vadd.f32 %v3571_v50, %v3553_v58 }
 0x80d   : > { %v3640_v22 = vmax.f32 %v3629_v2, 0.0  ;;  %v3684_v2 = vpop.permute.xlu0 %3683 }
 0x80e   : > { %v3639_v41 = vmax.f32 %v3572_v42, 0.0 }
 0x80f   : > { %3709 = vmatpush.bf16.msrb.mxu1 %v3660_v57 }
 0x811   : > { %v3597_v44 = vpop.f32.mrf.mxu2 }
 0x812   : > { %v3573_v52 = vpop.f32.mrf.mxu1  ;;  %v3630_v12 = vpop.f32.mrf.mxu0  ;;  %5676 = vmatmul.msk.bf16.vlgmr.msrb.gmra.mxu1 %vm883_vm11, %v6032_v60  ;;  %v3598_v19 = vadd.f32 %v3597_v44, %v3141_v55 }
 0x813   : > { %v3574_v48 = vadd.f32 %v3573_v52, %v3555_v25  ;;  %v3631_v55 = vadd.f32 %v3630_v12, %v3612_v31  ;;  %v3669_v52 = vpop.permute.xlu1 %3668 }
 0x814   : > { %v3617_v32 = vadd.f32 %v3616_v38, %v3598_v19  ;;  %v3674_v19 = vpop.permute.xlu2 %3673 }
 0x815   : > { %v3642_v36 = vmax.f32 %v3574_v48, 0.0  ;;  %v3643_v47 = vmax.f32 %v3631_v55, 0.0 }
 0x817   : > { %v3661_v33 = vpack.c.bf16 %v3642_v36, %v3639_v41  ;;  %v3662_v44 = vpack.c.bf16 %v3643_v47, %v3640_v22 }
 0x81a   : > { %v3576_v34 = vpop.f32.mrf.mxu1  ;;  %v3633_v29 = vpop.f32.mrf.mxu0 }
 0x81b   : > { %v3577_v0 = vadd.f32 %v3576_v34, %v3558_v7  ;;  %v3634_v63 = vadd.f32 %v3633_v29, %v3615_v16 }
 0x81d   : > { %v3645_v13 = vmax.f32 %v3577_v0, 0.0  ;;  %v3646_v40 = vmax.f32 %v3634_v63, 0.0 }
 0x822   : > { %v3578_v43 = vpop.f32.mrf.mxu1  ;;  %v3635_v11 = vpop.f32.mrf.mxu0  ;;  %5677 = vmatmul.msk.bf16.gmra.mxu1 %vm883_vm11, %v6033_v21 }
 0x823   : > { %v3579_v61 = vadd.f32 %v3578_v43, %v3560_v17  ;;  %v3636_v6 = vadd.f32 %v3635_v11, %v3617_v32 }
 0x825   : > { %v3648_v56 = vmax.f32 %v3579_v61, 0.0  ;;  %v3649_v14 = vmax.f32 %v3636_v6, 0.0 }
 0x827   : > { %v3664_v57 = vpack.c.bf16 %v3648_v56, %v3645_v13  ;;  %v3665_v15 = vpack.c.bf16 %v3649_v14, %v3646_v40 }
 0x829   : > { %3727 = vmatpush.bf16.msrb.mxu2 %v3664_v57  ;;  %3746 = vmatpush.bf16.msra.mxu3 %v3665_v15 }
 0x82d   : > { %3728 = vmatpush.bf16.msrb.mxu2 %v3661_v33  ;;  %3747 = vmatpush.bf16.msra.mxu3 %v3662_v44 }
 0x830   : > { %5678 = vmatmul.msk.bf16.vlgmr.msrb.gmra.mxu2 %vm883_vm11, %v6032_v60  ;;  %5680 = vmatmul.msk.bf16.vlgmr.msra.gmra.mxu3 %vm883_vm11, %v6032_v60 }
 0x840   : > { %5679 = vmatmul.msk.bf16.gmra.mxu2 %vm883_vm11, %v6033_v21  ;;  %5681 = vmatmul.msk.bf16.gmra.mxu3 %vm883_vm11, %v6033_v21 }
 0x88f   : > { %v3711_v50 = vpop.f32.mrf.mxu1 }
 0x890   : > { %v3712_v12 = vadd.f32 %v3711_v50, %v3669_v52 }
 0x892   : > { %v3759_v29 = vmax.f32 %v3712_v12, 0.0 }
 0x894   : > { %v3771_v8 = vadd.f32 %v3759_v29, %v6964_v53 }
 0x896   : > { %v3783_v7 = vmul.f32 %v3771_v8, %v6536_v20 }
 0x897   : > { %v3713_v34 = vpop.f32.mrf.mxu1 }
 0x898   : > { %v3714_v26 = vadd.f32 %v3713_v34, %v3674_v19 }
 0x89a   : > { %v3762_v21 = vmax.f32 %v3714_v26, 0.0 }
 0x89c   : > { %v3774_v32 = vadd.f32 %v3762_v21, %v6958_v62 }
 0x89e   : > { %v3786_v58 = vmul.f32 %v3774_v32, %v6536_v20 }
 0x89f   : > { %v3716_v38 = vpop.f32.mrf.mxu1 }
 0x8a0   : > { %v3717_v0 = vadd.f32 %v3716_v38, %v3679_v27 }
 0x8a7   : > { %v3718_v51 = vpop.f32.mrf.mxu1 }
 0x8a8   : > { %v3719_v13 = vadd.f32 %v3718_v51, %v3684_v2 }
 0x8aa   : > { %v3768_v57 = vmax.f32 %v3719_v13, 0.0 }
 0x8b3   : > { %v3730_v24 = vpop.f32.mrf.mxu2  ;;  %v3749_v39 = vpop.f32.mrf.mxu3 }
 0x8b4   : > { %v3731_v3 = vadd.f32 %v3730_v24, %v3669_v52  ;;  %v3750_v11 = vadd.f32 %v3749_v39, %v3669_v52 }
 0x8b6   : > { %v3760_v9 = vmax.f32 %v3731_v3, 0.0 }
 0x8b8   : > { %v3772_v60 = vadd.f32 %v3760_v9, %v7000_v54  ;;  %v3765_v54 = vmax.f32 %v3717_v0, 0.0 }
 0x8ba   : > { %v3784_v16 = vmul.f32 %v3772_v60, %v6534_v10  ;;  %v3777_v62 = vadd.f32 %v3765_v54, %v6950_v23 }
 0x8bb   : > { %v3732_v18 = vpop.f32.mrf.mxu2  ;;  %v3751_v25 = vpop.f32.mrf.mxu3 }
 0x8bc   : > { %v3795_v17 = vpack.c.bf16 %v3784_v16, %v3783_v7  ;;  %v3733_v31 = vadd.f32 %v3732_v18, %v3674_v19  ;;  %v3789_v47 = vmul.f32 %v3777_v62, %v6536_v20  ;;  %v3752_v23 = vadd.f32 %v3751_v25, %v3674_v19 }
 0x8be   : > { %v3763_v63 = vmax.f32 %v3733_v31, 0.0  ;;  %3811 = vrot.lane.b32.xlu1 %v3795_v17, %s6213_s24  ;;  %v3764_v29 = vmax.f32 %v3752_v23, 0.0 }
 0x8c0   : > { %v3775_v53 = vadd.f32 %v3763_v63, %v6986_v37  ;;  %v3761_v37 = vmax.f32 %v3750_v11, 0.0  ;;  %v3776_v8 = vadd.f32 %v3764_v29, %v7004_v30 }
 0x8c2   : > { %v3787_v43 = vmul.f32 %v3775_v53, %v6534_v10  ;;  %v3773_v22 = vadd.f32 %v3761_v37, %v7010_v45  ;;  %v3788_v9 = vmul.f32 %v3776_v8, %v6529_v59 }
 0x8c3   : > { %v3735_v48 = vpop.f32.mrf.mxu2  ;;  %v3754_v55 = vpop.f32.mrf.mxu3 }
 0x8c4   : > { %v3797_v61 = vpack.c.bf16 %v3787_v43, %v3786_v58  ;;  %v3736_v6 = vadd.f32 %v3735_v48, %v3679_v27  ;;  %v3755_v42 = vadd.f32 %v3754_v55, %v3679_v27 }
 0x8c6   : > { %v3766_v40 = vmax.f32 %v3736_v6, 0.0  ;;  %v3767_v56 = vmax.f32 %v3755_v42, 0.0  ;;  %3815 = vrot.lane.b32.xlu2 %v3797_v61, %s6213_s24 }
 0x8c8   : > { %v3778_v14 = vadd.f32 %v3766_v40, %v6978_v49  ;;  %v3779_v36 = vadd.f32 %v3767_v56, %v6990_v5  ;;  %v3780_v49 = vadd.f32 %v3768_v57, %v6954_v1  ;;  %v3785_v5 = vmul.f32 %v3773_v22, %v6529_v59 }
 0x8ca   : > { %v3790_v15 = vmul.f32 %v3778_v14, %v6534_v10  ;;  %v3791_v41 = vmul.f32 %v3779_v36, %v6529_v59  ;;  %v3792_v39 = vmul.f32 %v3780_v49, %v6536_v20  ;;  %v3796_v19 = vpack.c.bf16 %v3785_v5, %v3785_v5 }
 0x8cb   : > { %v3737_v33 = vpop.f32.mrf.mxu2  ;;  %v3756_v44 = vpop.f32.mrf.mxu3 }
 0x8cc   : > { %v3799_v50 = vpack.c.bf16 %v3790_v15, %v3789_v47  ;;  %v3800_v27 = vpack.c.bf16 %v3791_v41, %v3791_v41  ;;  %v3738_v52 = vadd.f32 %v3737_v33, %v3684_v2  ;;  %v3757_v12 = vadd.f32 %v3756_v44, %v3684_v2 }
 0x8ce   : > { %v3769_v34 = vmax.f32 %v3738_v52, 0.0  ;;  %3819 = vrot.lane.b32.xlu0 %v3799_v50, %s6213_s24  ;;  %3821 = vrot.lane.b32.xlu2 %v3800_v27, %s6213_s24  ;;  %v3770_v45 = vmax.f32 %v3757_v12, 0.0 }
 0x8d0   : > { %v3781_v24 = vadd.f32 %v3769_v34, %v6982_v4  ;;  %v3782_v1 = vadd.f32 %v3770_v45, %v6996_v46  ;;  %v3798_v4 = vpack.c.bf16 %v3788_v9, %v3788_v9 }
 0x8d2   : > { %v3793_v3 = vmul.f32 %v3781_v24, %v6534_v10  ;;  %v3794_v38 = vmul.f32 %v3782_v1, %v6529_v59 }
 0x8d4   : > { %v3801_v26 = vpack.c.bf16 %v3793_v3, %v3792_v39  ;;  %v3802_v60 = vpack.c.bf16 %v3794_v38, %v3794_v38 }
 0x8d6   : > { %3823 = vrot.lane.b32.xlu1 %v3801_v26, %s6213_s24  ;;  %3813 = vrot.lane.b32.xlu0 %v3796_v19, %s6213_s24 }
 0x8de   : > { %3825 = vrot.lane.b32.xlu0 %v3802_v60, %s6213_s24  ;;  %3817 = vrot.lane.b32.xlu1 %v3798_v4, %s6213_s24 }
 0x920   : > { %v3816_v10 = vpop.permute.xlu2 %3815 }
 0x921   : > { %v3828_v20 = vrot.slane %v3816_v10, 4 }
 0x923   : > { %v3833_v30 = vsel %vm1007_vm0, %v3828_v20, %v3816_v10 }
 0x924   : > { %3849 = vst.msk [vmem:[#allocation2 + $0xc] sm:$0xff] %vm6563_vm10, %v3833_v30 }
 0x928   : > { %v3822_v17 = vpop.permute.xlu2 %3821 }
 0x92b   : > { %v7502_v46 = vld [vmem:[#allocation2 + $0xc] sm:$0xff] }
 0x92c   : > { %3868 = vst [vmem:[#allocation3 + $0xc] sm:$0xff] %v7502_v46 }
 0x930   : > { %v3812_v7 = vpop.permute.xlu1 %3811 }
 0x931   : > { %v3827_v21 = vrot.slane %v3812_v7, 4 }
 0x933   : > { %v3831_v59 = vsel %vm1007_vm0, %v3827_v21, %v3812_v7 }
 0x934   : > { %3847 = vst.msk [vmem:[#allocation2] sm:$0xff] %vm6563_vm10, %v3831_v59 }
 0x93b   : > { %v7508_v16 = vld [vmem:[#allocation2] sm:$0xff] }
 0x93c   : > { %4274 = vrot.lane.b32.xlu0 %v7508_v16, %s7954_s21  ;;  %4018 = vrot.lane.b32.xlu1 %v7508_v16, %s7959_s20  ;;  %3866 = vst [vmem:[#allocation3] sm:$0xff] %v7508_v16 }
 0x93d   : > { %3954 = vrot.lane.b32.xlu2 %v7508_v16, %s7960_s27 }
 0x940   : > { %v3820_v18 = vpop.permute.xlu0 %3819 }
 0x941   : > { %v3829_v25 = vrot.slane %v3820_v18, 4 }
 0x943   : > { %v3835_v31 = vsel %vm1007_vm0, %v3829_v25, %v3820_v18  ;;  %v3836_v32 = vsel %vm1007_vm0, %v3829_v25, %v3822_v17 }
 0x944   : > { %3851 = vst.msk [vmem:[#allocation2 + $0x18] sm:$0xff] %vm6563_vm10, %v3835_v31  ;;  %4210 = vrot.lane.b32.xlu0 %v7508_v16, %s7955_s23  ;;  %4146 = vrot.lane.b32.xlu1 %v7508_v16, %s7956_s26 }
 0x945   : > { %3852 = vst.msk [vmem:[#allocation2 + $0x20] sm:$0xf] %vm1028_vm12, %v3836_v32  ;;  %4082 = vrot.lane.b32.xlu2 %v7508_v16, %s7958_s25 }
 0x948   : > { %v3824_v0 = vpop.permute.xlu1 %3823  ;;  %v3814_v63 = vpop.permute.xlu0 %3813 }
 0x949   : > { %v3830_v53 = vrot.slane %v3824_v0, 4  ;;  %v3832_v58 = vsel %vm1007_vm0, %v3827_v21, %v3814_v63 }
 0x94a   : > { %3848 = vst.msk [vmem:[#allocation2 + $0x8] sm:$0xf] %vm1028_vm12, %v3832_v58 }
 0x94b   : > { %v3837_v54 = vsel %vm1007_vm0, %v3830_v53, %v3824_v0  ;;  %v7537_v51 = vld [vmem:[#allocation2 + $0x18] sm:$0xff] }
 0x94c   : > { %3853 = vst.msk [vmem:[#allocation2 + $0x24] sm:$0xff] %vm6563_vm10, %v3837_v54  ;;  %3890 = vrot.lane.b32.xlu0 %v7508_v16, %s7961_s29  ;;  %3958 = vrot.lane.b32.xlu1 %v7502_v46, %s7960_s27  ;;  %v3863_v43 = vld [vmem:[#allocation2 + $0x20] sm:$0xf] }
 0x94d   : > { %4278 = vrot.lane.b32.xlu2 %v7502_v46, %s7954_s21  ;;  %3870 = vst [vmem:[#allocation3 + $0x18] sm:$0xff] %v7537_v51  ;;  %v4263_v52 = vld [vmem:[#allocation2 + $0x20] sm:$0xf] }
 0x94e   : > { %3871 = vst.msk [vmem:[#allocation3 + $0x20] sm:$0xf] %vm1057_vm13, %v3863_v43  ;;  %v3943_v12 = vld [vmem:[#allocation2 + $0x20] sm:$0xf] }
 0x94f   : > { %v4199_v49 = vld [vmem:[#allocation2 + $0x20] sm:$0xf] }
 0x950   : > { %v3826_v11 = vpop.permute.xlu0 %3825  ;;  %v3818_v48 = vpop.permute.xlu1 %3817  ;;  %v4007_v24 = vld [vmem:[#allocation2 + $0x20] sm:$0xf] }
 0x951   : > { %v3838_v28 = vsel %vm1007_vm0, %v3830_v53, %v3826_v11  ;;  %v3834_v55 = vsel %vm1007_vm0, %v3828_v20, %v3818_v48  ;;  %v3859_v6 = vld [vmem:[#allocation2 + $0x8] sm:$0xf]  ;;  %v4071_v45 = vld [vmem:[#allocation2 + $0x20] sm:$0xf] }
 0x952   : > { %3854 = vst.msk [vmem:[#allocation2 + $0x2c] sm:$0xf] %vm1028_vm12, %v3838_v28  ;;  %v3939_v62 = vld [vmem:[#allocation2 + $0x8] sm:$0xf]  ;;  %v3879_v39 = vld [vmem:[#allocation2 + $0x20] sm:$0xf] }
 0x953   : > { %3850 = vst.msk [vmem:[#allocation2 + $0x14] sm:$0xf] %vm1028_vm12, %v3834_v55  ;;  %v7547_v61 = vld [vmem:[#allocation2 + $0x24] sm:$0xff]  ;;  %v4135_v26 = vld [vmem:[#allocation2 + $0x20] sm:$0xf]  ;;  %v3857_v28 = vld [vmem:[%s7917_s13] sm:$0xff] }
 0x954   : > { %4022 = vrot.lane.b32.xlu0 %v7502_v46, %s7959_s20  ;;  %4086 = vrot.lane.b32.xlu1 %v7502_v46, %s7958_s25  ;;  %3872 = vst [vmem:[#allocation3 + $0x24] sm:$0xff] %v7547_v61  ;;  %v4259_v13 = vld [vmem:[#allocation2 + $0x8] sm:$0xf]  ;;  %v4327_v63 = vld [vmem:[#allocation2 + $0x20] sm:$0xf] }
 0x955   : > { %4214 = vrot.lane.b32.xlu2 %v7502_v46, %s7955_s23  ;;  %3867 = vst.msk [vmem:[#allocation3 + $0x8] sm:$0xf] %vm1057_vm13, %v3859_v6  ;;  %v4067_v40 = vld [vmem:[#allocation2 + $0x8] sm:$0xf] }
 0x956   : > { %v4195_v56 = vld [vmem:[#allocation2 + $0x8] sm:$0xf] }
 0x957   : > { %v4003_v37 = vld [vmem:[#allocation2 + $0x8] sm:$0xf] }
 0x958   : > { %v3875_v36 = vld [vmem:[#allocation2 + $0x8] sm:$0xf] }
 0x959   : > { %v3865_v42 = vld [vmem:[#allocation2 + $0x2c] sm:$0xf]  ;;  %v4131_v47 = vld [vmem:[#allocation2 + $0x8] sm:$0xf] }
 0x95a   : > { %v3861_v2 = vld [vmem:[#allocation2 + $0x14] sm:$0xf]  ;;  %3873 = vst.msk [vmem:[#allocation3 + $0x2c] sm:$0xf] %vm1057_vm13, %v3865_v42  ;;  %v4201_v1 = vld [vmem:[#allocation2 + $0x2c] sm:$0xf] }
 0x95b   : > { %3869 = vst.msk [vmem:[#allocation3 + $0x14] sm:$0xf] %vm1057_vm13, %v3861_v2  ;;  %v4261_v14 = vld [vmem:[#allocation2 + $0x14] sm:$0xf]  ;;  %v4265_v9 = vld [vmem:[#allocation2 + $0x2c] sm:$0xf] }
 0x95c   : > { %4150 = vrot.lane.b32.xlu0 %v7502_v46, %s7956_s26  ;;  %4218 = vrot.lane.b32.xlu1 %v7537_v51, %s7955_s23  ;;  %v4197_v15 = vld [vmem:[#allocation2 + $0x14] sm:$0xf]  ;;  %v3945_v10 = vld [vmem:[#allocation2 + $0x2c] sm:$0xf] }
 0x95d   : > { %3894 = vrot.lane.b32.xlu2 %v7502_v46, %s7961_s29  ;;  %v4005_v41 = vld [vmem:[#allocation2 + $0x14] sm:$0xf]  ;;  %v4009_v20 = vld [vmem:[#allocation2 + $0x2c] sm:$0xf] }
 0x95e   : > { %v3941_v22 = vld [vmem:[#allocation2 + $0x14] sm:$0xf]  ;;  %v4073_v59 = vld [vmem:[#allocation2 + $0x2c] sm:$0xf] }
 0x95f   : > { %v3877_v33 = vld [vmem:[#allocation2 + $0x14] sm:$0xf]  ;;  %v3881_v18 = vld [vmem:[#allocation2 + $0x2c] sm:$0xf] }
 0x960   : > { %v4133_v44 = vld [vmem:[#allocation2 + $0x14] sm:$0xf]  ;;  %v4137_v25 = vld [vmem:[#allocation2 + $0x2c] sm:$0xf] }
 0x961   : > { %v4069_v50 = vld [vmem:[#allocation2 + $0x14] sm:$0xf]  ;;  %v4329_v0 = vld [vmem:[#allocation2 + $0x2c] sm:$0xf] }
 0x962   : > { %v4325_v55 = vld [vmem:[#allocation2 + $0x14] sm:$0xf] }
 0x964   : > { %3962 = vrot.lane.b32.xlu0 %v7537_v51, %s7960_s27  ;;  %3898 = vrot.lane.b32.xlu1 %v7537_v51, %s7961_s29 }
 0x965   : > { %4282 = vrot.lane.b32.xlu2 %v7537_v51, %s7954_s21 }
 0x96c   : > { %4090 = vrot.lane.b32.xlu0 %v7537_v51, %s7958_s25  ;;  %4286 = vrot.lane.b32.xlu1 %v7547_v61, %s7954_s21 }
 0x96d   : > { %4026 = vrot.lane.b32.xlu2 %v7537_v51, %s7959_s20 }
 0x974   : > { %4222 = vrot.lane.b32.xlu0 %v7547_v61, %s7955_s23  ;;  %4030 = vrot.lane.b32.xlu1 %v7547_v61, %s7959_s20 }
 0x975   : > { %4154 = vrot.lane.b32.xlu2 %v7537_v51, %s7956_s26 }
 0x97c   : > { %3902 = vrot.lane.b32.xlu0 %v7547_v61, %s7961_s29  ;;  %4158 = vrot.lane.b32.xlu1 %v7547_v61, %s7956_s26 }
 0x97d   : > { %3966 = vrot.lane.b32.xlu2 %v7547_v61, %s7960_s27 }
 0x984   : > { %3956 = vrot.lane.b32.xlu0 %v3939_v62, %s7960_s27  ;;  %4276 = vrot.lane.b32.xlu1 %v4259_v13, %s7954_s21 }
 0x985   : > { %4094 = vrot.lane.b32.xlu2 %v7547_v61, %s7958_s25 }
 0x98c   : > { %4084 = vrot.lane.b32.xlu0 %v4067_v40, %s7958_s25  ;;  %4212 = vrot.lane.b32.xlu1 %v4195_v56, %s7955_s23 }
 0x98d   : > { %4020 = vrot.lane.b32.xlu2 %v4003_v37, %s7959_s20 }
 0x994   : > { %4280 = vrot.lane.b32.xlu0 %v4261_v14, %s7954_s21  ;;  %3892 = vrot.lane.b32.xlu1 %v3875_v36, %s7961_s29 }
 0x995   : > { %4148 = vrot.lane.b32.xlu2 %v4131_v47, %s7956_s26 }
 0x997   : > { %v7599_v57 = vpop.permute.xlu2 %3954 }
 0x99c   : > { %4216 = vrot.lane.b32.xlu0 %v4197_v15, %s7955_s23  ;;  %4024 = vrot.lane.b32.xlu1 %v4005_v41, %s7959_s20 }
 0x99d   : > { %3960 = vrot.lane.b32.xlu2 %v3941_v22, %s7960_s27  ;;  %v3970_v22 = vrot.slane %v7599_v57, 4 }
 0x99f   : > { %v7604_v23 = vpop.permute.xlu2 %4082 }
 0x9a4   : > { %3896 = vrot.lane.b32.xlu0 %v3877_v33, %s7961_s29  ;;  %4152 = vrot.lane.b32.xlu1 %v4133_v44, %s7956_s26 }
 0x9a5   : > { %4088 = vrot.lane.b32.xlu2 %v4069_v50, %s7958_s25 }
 0x9a7   : > { %v7609_v27 = vpop.permute.xlu2 %4278 }
 0x9ac   : > { %4284 = vrot.lane.b32.xlu0 %v4263_v52, %s7954_s21  ;;  %3964 = vrot.lane.b32.xlu1 %v3943_v12, %s7960_s27 }
 0x9ad   : > { %4220 = vrot.lane.b32.xlu2 %v4199_v49, %s7955_s23 }
 0x9ae   : > { %v7614_v34 = vpop.permute.xlu0 %4274  ;;  %v7616_v5 = vpop.permute.xlu1 %4018 }
 0x9af   : > { %v7618_v29 = vpop.permute.xlu2 %4214  ;;  %v4290_v33 = vrot.slane %v7614_v34, 4 }
 0x9b4   : > { %4028 = vrot.lane.b32.xlu0 %v4007_v24, %s7959_s20  ;;  %4092 = vrot.lane.b32.xlu1 %v4071_v45, %s7958_s25 }
 0x9b5   : > { %3900 = vrot.lane.b32.xlu2 %v3879_v39, %s7961_s29 }
 0x9b6   : > { %v7623_v3 = vpop.permute.xlu0 %4210  ;;  %v7625_v19 = vpop.permute.xlu1 %4146 }
 0x9b7   : > { %v7627_v8 = vpop.permute.xlu2 %3894  ;;  %v4162_v37 = vrot.slane %v7625_v19, 4 }
 0x9bc   : > { %4156 = vrot.lane.b32.xlu0 %v4135_v26, %s7956_s26  ;;  %4224 = vrot.lane.b32.xlu1 %v4201_v1, %s7955_s23 }
 0x9bd   : > { %4288 = vrot.lane.b32.xlu2 %v4265_v9, %s7954_s21 }
 0x9be   : > { %v7632_v38 = vpop.permute.xlu0 %3890  ;;  %v7634_v4 = vpop.permute.xlu1 %3958 }
 0x9bf   : > { %v7636_v60 = vpop.permute.xlu2 %4282  ;;  %v3972_v12 = vrot.slane %v7634_v4, 4 }
 0x9c4   : > { %3968 = vrot.lane.b32.xlu0 %v3945_v10, %s7960_s27  ;;  %4346 = vrot.lane.b32.xlu1 %v7537_v51, %s7957_s30  ;;  %v4323_v51 = vld [vmem:[#allocation2 + $0x8] sm:$0xf]  ;;  %v4098_v10 = vrot.slane %v7604_v23, 4  ;;  %s4883_s27 = sld [smem:[#allocation4]] }
 0x9c5   : > { %4032 = vrot.lane.b32.xlu2 %v4009_v20, %s7959_s20  ;;  %v4226_v20 = vrot.slane %v7623_v3, 4 }
 0x9c6   : > { %v7642_v30 = vpop.permute.xlu0 %4022  ;;  %v7644_v7 = vpop.permute.xlu1 %4086 }
 0x9c7   : > { %v7646_v21 = vpop.permute.xlu2 %4026 }
 0x9cc   : > { %4096 = vrot.lane.b32.xlu0 %v4073_v59, %s7958_s25  ;;  %3904 = vrot.lane.b32.xlu1 %v3881_v18, %s7961_s29  ;;  %s5901_s29 = sld [smem:[#allocation4 + $0x1]] }
 0x9cd   : > { %4160 = vrot.lane.b32.xlu2 %v4137_v25, %s7956_s26 }
 0x9ce   : > { %v7651_v17 = vpop.permute.xlu0 %4150  ;;  %v7653_v31 = vpop.permute.xlu1 %4218 }
 0x9cf   : > { %v7655_v32 = vpop.permute.xlu2 %4154 }
 0x9d4   : > { %4350 = vrot.lane.b32.xlu0 %v7547_v61, %s7957_s30  ;;  %4352 = vrot.lane.b32.xlu1 %v4329_v0, %s7957_s30 }
 0x9d5   : > { %4348 = vrot.lane.b32.xlu2 %v4327_v63, %s7957_s30 }
 0x9d6   : > { %v7661_v53 = vpop.permute.xlu0 %3962  ;;  %v7663_v58 = vpop.permute.xlu1 %3898 }
 0x9d7   : > { %v7665_v54 = vpop.permute.xlu2 %3966 }
 0x9dc   : > { %4340 = vrot.lane.b32.xlu0 %v4323_v51, %s7957_s30  ;;  %4342 = vrot.lane.b32.xlu1 %v7502_v46, %s7957_s30 }
 0x9dd   : > { %4338 = vrot.lane.b32.xlu2 %v7508_v16, %s7957_s30  ;;  %v4034_v16 = vrot.slane %v7616_v5, 4 }
 0x9de   : > { %v7672_v43 = vpop.permute.xlu0 %4090  ;;  %v7674_v11 = vpop.permute.xlu1 %4286 }
 0x9df   : > { %v7676_v48 = vpop.permute.xlu2 %4094 }
 0x9e4   : > { %4460 = vperm.xlu0 %6161, %v3857_v28  }
 0x9e5   : > { %4344 = vrot.lane.b32.xlu2 %v4325_v55, %s7957_s30 }
 0x9e6   : > { %v7682_v61 = vpop.permute.xlu0 %4222  ;;  %v7684_v46 = vpop.permute.xlu1 %4030 }
 0x9e7   : > { %v4021_v6 = vpop.permute.xlu2 %4020 }
 0x9e8   : > { %v4035_v42 = vrot.slane %v4021_v6, 4  ;;  %4059 = vst.msk [vmem:[#allocation3 + $0x98] sm:$0xf] %vm1057_vm13, %v4021_v6 }
 0x9ea   : > { %v4042_v2 = vsel %vm693_vm6, %v4034_v16, %v4035_v42  ;;  %v4292_v42 = vrot.slane %v7609_v27, 4 }
 0x9eb   : > { %v4043_v62 = vsel %vm595_vm8, %v7616_v5, %v4042_v2  ;;  %v3906_v2 = vrot.slane %v7632_v38, 4 }
 0x9ec   : > { %4058 = vst [vmem:[#allocation3 + $0x90] sm:$0xff] %v4043_v62 }
 0x9ee   : > { %v7691_v13 = vpop.permute.xlu0 %3902  ;;  %v7693_v40 = vpop.permute.xlu1 %4158 }
 0x9ef   : > { %v4149_v56 = vpop.permute.xlu2 %4148 }
 0x9f0   : > { %v4163_v14 = vrot.slane %v4149_v56, 4  ;;  %4187 = vst.msk [vmem:[#allocation3 + $0xf8] sm:$0xf] %vm1057_vm13, %v4149_v56 }
 0x9f2   : > { %v4170_v36 = vsel %vm693_vm6, %v4162_v37, %v4163_v14 }
 0x9f3   : > { %v4171_v47 = vsel %vm632_vm4, %v7625_v19, %v4170_v36 }
 0x9f4   : > { %4186 = vst [vmem:[#allocation3 + $0xf0] sm:$0xff] %v4171_v47 }
 0x9f6   : > { %v3957_v15 = vpop.permute.xlu0 %3956  ;;  %v4277_v41 = vpop.permute.xlu1 %4276 }
 0x9f7   : > { %v3971_v44 = vrot.slane %v3957_v15, 4  ;;  %3995 = vst.msk [vmem:[#allocation3 + $0x68] sm:$0xf] %vm1057_vm13, %v3957_v15  ;;  %v4291_v50 = vrot.slane %v4277_v41, 4  ;;  %v3961_v52 = vpop.permute.xlu2 %3960 }
 0x9f8   : > { %4315 = vst.msk [vmem:[#allocation3 + $0x158] sm:$0xf] %vm1057_vm13, %v4277_v41  ;;  %v3973_v49 = vrot.slane %v3961_v52, 4 }
 0x9f9   : > { %v3978_v5 = vsel %vm693_vm6, %v3970_v22, %v3971_v44  ;;  %v4298_v24 = vsel %vm693_vm6, %v4290_v33, %v4291_v50  ;;  %3997 = vst.msk [vmem:[#allocation3 + $0x74] sm:$0xf] %vm1057_vm13, %v3961_v52  ;;  %v4228_v44 = vrot.slane %v7618_v29, 4  ;;  %v4036_v50 = vrot.slane %v7642_v30, 4 }
 0x9fa   : > { %v3979_v45 = vsel %vm576_vm9, %v7599_v57, %v3978_v5  ;;  %v4299_v39 = vsel %vm669_vm2, %v7614_v34, %v4298_v24  ;;  %v3980_v19 = vsel %vm693_vm6, %v3972_v12, %v3973_v49  ;;  %v4100_v34 = vrot.slane %v7644_v7, 4 }
 0x9fb   : > { %3994 = vst [vmem:[#allocation3 + $0x60] sm:$0xff] %v3979_v45  ;;  %v3981_v26 = vsel %vm576_vm9, %v7634_v4, %v3980_v19 }
 0x9fc   : > { %4314 = vst [vmem:[#allocation3 + $0x150] sm:$0xff] %v4299_v39 }
 0x9fd   : > { %3996 = vst [vmem:[#allocation3 + $0x6c] sm:$0xff] %v3981_v26 }
 0x9fe   : > { %v4085_v1 = vpop.permute.xlu0 %4084  ;;  %v4213_v9 = vpop.permute.xlu1 %4212 }
 0x9ff   : > { %v4099_v59 = vrot.slane %v4085_v1, 4  ;;  %4123 = vst.msk [vmem:[#allocation3 + $0xc8] sm:$0xf] %vm1057_vm13, %v4085_v1  ;;  %v4227_v57 = vrot.slane %v4213_v9, 4  ;;  %v4089_v18 = vpop.permute.xlu2 %4088 }
 0xa00   : > { %4251 = vst.msk [vmem:[#allocation3 + $0x128] sm:$0xf] %vm1057_vm13, %v4213_v9  ;;  %v4101_v25 = vrot.slane %v4089_v18, 4  ;;  %v3908_v9 = vrot.slane %v7627_v8, 4 }
 0xa01   : > { %v4106_v4 = vsel %vm693_vm6, %v4098_v10, %v4099_v59  ;;  %v4234_v0 = vsel %vm693_vm6, %v4226_v20, %v4227_v57  ;;  %4125 = vst.msk [vmem:[#allocation3 + $0xd4] sm:$0xf] %vm1057_vm13, %v4089_v18  ;;  %v4164_v10 = vrot.slane %v7651_v17, 4 }
 0xa02   : > { %v4107_v63 = vsel %vm613_vm1, %v7604_v23, %v4106_v4  ;;  %v4235_v51 = vsel %vm650_vm3, %v7623_v3, %v4234_v0  ;;  %v4108_v28 = vsel %vm693_vm6, %v4100_v34, %v4101_v25  ;;  %v4230_v3 = vrot.slane %v7653_v31, 4 }
 0xa03   : > { %4122 = vst [vmem:[#allocation3 + $0xc0] sm:$0xff] %v4107_v63  ;;  %v4109_v55 = vsel %vm613_vm1, %v7644_v7, %v4108_v28  ;;  %v4294_v28 = vrot.slane %v7636_v60, 4 }
 0xa04   : > { %4250 = vst [vmem:[#allocation3 + $0x120] sm:$0xff] %v4235_v51 }
 0xa05   : > { %4124 = vst [vmem:[#allocation3 + $0xcc] sm:$0xff] %v4109_v55  ;;  %v3974_v55 = vrot.slane %v7661_v53, 4 }
 0xa06   : > { %v4281_v6 = vpop.permute.xlu0 %4280  ;;  %v3893_v16 = vpop.permute.xlu1 %3892 }
 0xa07   : > { %v4293_v62 = vrot.slane %v4281_v6, 4  ;;  %4317 = vst.msk [vmem:[#allocation3 + $0x164] sm:$0xf] %vm1057_vm13, %v4281_v6  ;;  %v3907_v23 = vrot.slane %v3893_v16, 4  ;;  %v4221_v56 = vpop.permute.xlu2 %4220 }
 0xa08   : > { %3931 = vst.msk [vmem:[#allocation3 + $0x38] sm:$0xf] %vm1057_vm13, %v3893_v16  ;;  %v4231_v37 = vrot.slane %v4221_v56, 4 }
 0xa09   : > { %v4300_v7 = vsel %vm693_vm6, %v4292_v42, %v4293_v62  ;;  %v3914_v14 = vsel %vm693_vm6, %v3906_v2, %v3907_v23  ;;  %4255 = vst.msk [vmem:[#allocation3 + $0x140] sm:$0xf] %vm1057_vm13, %v4221_v56 }
 0xa0a   : > { %v4301_v36 = vsel %vm669_vm2, %v7609_v27, %v4300_v7  ;;  %v3915_v47 = vsel %vm558_vm7, %v7632_v38, %v3914_v14  ;;  %v4238_v15 = vsel %vm693_vm6, %v4230_v3, %v4231_v37  ;;  %v3910_v38 = vrot.slane %v7663_v58, 4 }
 0xa0b   : > { %4316 = vst [vmem:[#allocation3 + $0x15c] sm:$0xff] %v4301_v36  ;;  %v4239_v41 = vsel %vm650_vm3, %v7653_v31, %v4238_v15  ;;  %v4038_v14 = vrot.slane %v7646_v21, 4  ;;  %v4102_v36 = vrot.slane %v7672_v43, 4 }
 0xa0c   : > { %3930 = vst [vmem:[#allocation3 + $0x30] sm:$0xff] %v3915_v47 }
 0xa0d   : > { %4254 = vst [vmem:[#allocation3 + $0x138] sm:$0xff] %v4239_v41 }
 0xa0e   : > { %v4217_v22 = vpop.permute.xlu0 %4216  ;;  %v4025_v33 = vpop.permute.xlu1 %4024 }
 0xa0f   : > { %v4229_v52 = vrot.slane %v4217_v22, 4  ;;  %4253 = vst.msk [vmem:[#allocation3 + $0x134] sm:$0xf] %vm1057_vm13, %v4217_v22  ;;  %v4037_v27 = vrot.slane %v4025_v33, 4  ;;  %v3901_v12 = vpop.permute.xlu2 %3900 }
 0xa10   : > { %4061 = vst.msk [vmem:[#allocation3 + $0xa4] sm:$0xf] %vm1057_vm13, %v4025_v33  ;;  %v3911_v49 = vrot.slane %v3901_v12, 4 }
 0xa11   : > { %v4236_v31 = vsel %vm693_vm6, %v4228_v44, %v4229_v52  ;;  %v4044_v5 = vsel %vm693_vm6, %v4036_v50, %v4037_v27  ;;  %3935 = vst.msk [vmem:[#allocation3 + $0x50] sm:$0xf] %vm1057_vm13, %v3901_v12 }
 0xa12   : > { %v4237_v24 = vsel %vm650_vm3, %v7618_v29, %v4236_v31  ;;  %v4045_v45 = vsel %vm595_vm8, %v7642_v30, %v4044_v5  ;;  %v3918_v39 = vsel %vm693_vm6, %v3910_v38, %v3911_v49  ;;  %v4296_v30 = vrot.slane %v7674_v11, 4  ;;  %v6077_v49 = vld [vmem:[#allocation3 + $0x158] sm:$0xf0] }
 0xa13   : > { %4252 = vst [vmem:[#allocation3 + $0x12c] sm:$0xff] %v4237_v24  ;;  %v3919_v19 = vsel %vm558_vm7, %v7663_v58, %v3918_v39  ;;  %v4166_v31 = vrot.slane %v7655_v32, 4  ;;  %v5852_v24 = vld [vmem:[#allocation3 + $0x150] sm:$0xf] }
 0xa14   : > { %4060 = vst [vmem:[#allocation3 + $0x9c] sm:$0xff] %v4045_v45 }
 0xa15   : > { %3934 = vst [vmem:[#allocation3 + $0x48] sm:$0xff] %v3919_v19 }
 0xa16   : > { %v3897_v26 = vpop.permute.xlu0 %3896  ;;  %v4153_v1 = vpop.permute.xlu1 %4152 }
 0xa17   : > { %v3909_v20 = vrot.slane %v3897_v26, 4  ;;  %3933 = vst.msk [vmem:[#allocation3 + $0x44] sm:$0xf] %vm1057_vm13, %v3897_v26  ;;  %v4165_v29 = vrot.slane %v4153_v1, 4  ;;  %v4289_v59 = vpop.permute.xlu2 %4288  ;;  %v5853_v26 = vor.u32 %v6077_v49, %v5852_v24  ;;  %v6047_v24 = vld [vmem:[#allocation3 + $0x68] sm:$0xf0] }
 0xa18   : > { %4189 = vst.msk [vmem:[#allocation3 + $0x104] sm:$0xf] %vm1057_vm13, %v4153_v1  ;;  %v4297_v57 = vrot.slane %v4289_v59, 4 }
 0xa19   : > { %v3916_v58 = vsel %vm693_vm6, %v3908_v9, %v3909_v20  ;;  %v4172_v18 = vsel %vm693_vm6, %v4164_v10, %v4165_v29  ;;  %4321 = vst.msk [vmem:[#allocation3 + $0x17c] sm:$0xf] %vm1057_vm13, %v4289_v59 }
 0xa1a   : > { %v3917_v34 = vsel %vm558_vm7, %v7627_v8, %v3916_v58  ;;  %v4173_v25 = vsel %vm632_vm4, %v7651_v17, %v4172_v18  ;;  %v4304_v4 = vsel %vm693_vm6, %v4296_v30, %v4297_v57  ;;  %v4040_v17 = vrot.slane %v7684_v46, 4 }
 0xa1b   : > { %3932 = vst [vmem:[#allocation3 + $0x3c] sm:$0xff] %v3917_v34  ;;  %v4305_v0 = vsel %vm669_vm2, %v7674_v11, %v4304_v4  ;;  %v6053_v18 = vld [vmem:[#allocation3 + $0x98] sm:$0xf0]  ;;  %v5758_v34 = vld [vmem:[#allocation3 + $0x9c] sm:$0xf0]  ;;  %v3976_v4 = vrot.slane %v7665_v54, 4 }
 0xa1c   : > { %4188 = vst [vmem:[#allocation3 + $0xfc] sm:$0xff] %v4173_v25  ;;  %v5756_v25 = vld [vmem:[#allocation3 + $0x90] sm:$0xf] }
 0xa1d   : > { %4320 = vst [vmem:[#allocation3 + $0x174] sm:$0xff] %v4305_v0 }
 0xa1e   : > { %v4285_v63 = vpop.permute.xlu0 %4284  ;;  %v3965_v51 = vpop.permute.xlu1 %3964 }
 0xa1f   : > { %v4295_v6 = vrot.slane %v4285_v63, 4  ;;  %4319 = vst.msk [vmem:[#allocation3 + $0x170] sm:$0xf] %vm1057_vm13, %v4285_v63  ;;  %v3975_v8 = vrot.slane %v3965_v51, 4  ;;  %v4033_v16 = vpop.permute.xlu2 %4032 }
 0xa20   : > { %3999 = vst.msk [vmem:[#allocation3 + $0x80] sm:$0xf] %vm1057_vm13, %v3965_v51  ;;  %v4041_v42 = vrot.slane %v4033_v16, 4  ;;  %v6052_v51 = vld [vmem:[#allocation3 + $0x94] sm:$0xf] }
 0xa21   : > { %v4302_v11 = vsel %vm693_vm6, %v4294_v28, %v4295_v6  ;;  %v3982_v2 = vsel %vm693_vm6, %v3974_v55, %v3975_v8  ;;  %4065 = vst.msk [vmem:[#allocation3 + $0xbc] sm:$0xf] %vm1057_vm13, %v4033_v16  ;;  %v5761_v8 = vor.u32 %v6052_v51, %v5758_v34  ;;  %v3855_v51 = vld [vmem:[%s7916_s12] sm:$0xff] }
 0xa22   : > { %v4303_v62 = vsel %vm669_vm2, %v7636_v60, %v4302_v11  ;;  %v3983_v23 = vsel %vm576_vm9, %v7661_v53, %v3982_v2  ;;  %v4048_v56 = vsel %vm693_vm6, %v4040_v17, %v4041_v42  ;;  %v4168_v53 = vrot.slane %v7693_v40, 4  ;;  %v5840_v2 = vld [vmem:[#allocation3 + $0x138] sm:$0xf] }
 0xa23   : > { %4318 = vst [vmem:[#allocation3 + $0x168] sm:$0xff] %v4303_v62  ;;  %v4049_v3 = vsel %vm595_vm8, %v7684_v46, %v4048_v56  ;;  %v6071_v56 = vld [vmem:[#allocation3 + $0x128] sm:$0xf0]  ;;  %vm5014_vm2 = vcmask 556032  }
 0xa24   : > { %3998 = vst [vmem:[#allocation3 + $0x78] sm:$0xff] %v3983_v23  ;;  %v6080_v27 = vld [vmem:[#allocation3 + $0x170] sm:$0xf0] }
 0xa25   : > { %4064 = vst [vmem:[#allocation3 + $0xb4] sm:$0xff] %v4049_v3  ;;  %v4104_v3 = vrot.slane %v7676_v48, 4 }
 0xa26   : > { %v4029_v37 = vpop.permute.xlu0 %4028  ;;  %v4093_v7 = vpop.permute.xlu1 %4092 }
 0xa27   : > { %v4039_v47 = vrot.slane %v4029_v37, 4  ;;  %4063 = vst.msk [vmem:[#allocation3 + $0xb0] sm:$0xf] %vm1057_vm13, %v4029_v37  ;;  %v4103_v60 = vrot.slane %v4093_v7, 4  ;;  %v4161_v15 = vpop.permute.xlu2 %4160  ;;  %v3912_v37 = vrot.slane %v7691_v13, 4 }
 0xa28   : > { %4127 = vst.msk [vmem:[#allocation3 + $0xe0] sm:$0xf] %vm1057_vm13, %v4093_v7  ;;  %v4169_v41 = vrot.slane %v4161_v15, 4 }
 0xa29   : > { %v4046_v46 = vsel %vm693_vm6, %v4038_v14, %v4039_v47  ;;  %v4110_v22 = vsel %vm693_vm6, %v4102_v36, %v4103_v60  ;;  %4193 = vst.msk [vmem:[#allocation3 + $0x11c] sm:$0xf] %vm1057_vm13, %v4161_v15  ;;  %v5828_v60 = vld [vmem:[#allocation3 + $0x120] sm:$0xf] }
 0xa2a   : > { %v4047_v33 = vsel %vm595_vm8, %v7646_v21, %v4046_v46  ;;  %v4111_v44 = vsel %vm613_vm1, %v7672_v43, %v4110_v22  ;;  %v4176_v50 = vsel %vm693_vm6, %v4168_v53, %v4169_v41  ;;  %v5864_v52 = vld [vmem:[#allocation3 + $0x168] sm:$0xf]  ;;  %v4232_v43 = vrot.slane %v7682_v61, 4 }
 0xa2b   : > { %4062 = vst [vmem:[#allocation3 + $0xa8] sm:$0xff] %v4047_v33  ;;  %v4177_v12 = vsel %vm632_vm4, %v7693_v40, %v4176_v50  ;;  %v5865_v38 = vor.u32 %v6080_v27, %v5864_v52  ;;  %v5829_v15 = vor.u32 %v6071_v56, %v5828_v60  ;;  %v5744_v46 = vld [vmem:[#allocation3 + $0x78] sm:$0xf]  ;;  %v6049_v52 = vld [vmem:[#allocation3 + $0x7c] sm:$0xf] }
 0xa2c   : > { %4126 = vst [vmem:[#allocation3 + $0xd8] sm:$0xff] %v4111_v44  ;;  %v6056_v9 = vld [vmem:[#allocation3 + $0xb0] sm:$0xf0]  ;;  %v5770_v30 = vld [vmem:[#allocation3 + $0xb4] sm:$0xf0] }
 0xa2d   : > { %4192 = vst [vmem:[#allocation3 + $0x114] sm:$0xff] %v4177_v12  ;;  %4777 = vmatpush.bf16.msra.mxu1 %v5865_v38  ;;  %v5732_v12 = vld [vmem:[#allocation3 + $0x60] sm:$0xf]  ;;  %v6040_v56 = vld [vmem:[#allocation3 + $0x34] sm:$0xf] }
 0xa2e   : > { %v4157_v5 = vpop.permute.xlu0 %4156  ;;  %v4225_v21 = vpop.permute.xlu1 %4224 }
 0xa2f   : > { %v4167_v45 = vrot.slane %v4157_v5, 4  ;;  %4191 = vst.msk [vmem:[#allocation3 + $0x110] sm:$0xf] %vm1057_vm13, %v4157_v5  ;;  %v4233_v39 = vrot.slane %v4225_v21, 4  ;;  %v4349_v19 = vpop.permute.xlu2 %4348  ;;  %v6046_v5 = vld [vmem:[#allocation3 + $0x64] sm:$0xf] }
 0xa30   : > { %4257 = vst.msk [vmem:[#allocation3 + $0x14c] sm:$0xf] %vm1057_vm13, %v4225_v21  ;;  %v4359_v28 = vrot.slane %v4349_v19, 4 }
 0xa31   : > { %v4174_v40 = vsel %vm693_vm6, %v4166_v31, %v4167_v45  ;;  %v4240_v1 = vsel %vm693_vm6, %v4232_v43, %v4233_v39  ;;  %4383 = vst.msk [vmem:[#allocation3 + $0x1a0] sm:$0xf] %vm1057_vm13, %v4349_v19  ;;  %4778 = vmatpush.bf16.msra.mxu1 %v5853_v26  ;;  %v5734_v43 = vld [vmem:[#allocation3 + $0x6c] sm:$0xf0]  ;;  %v5733_v26 = vor.u32 %v6047_v24, %v5732_v12  ;;  %v4465_v12 = vunpack.c.l.b16 %v3855_v51 }
 0xa32   : > { %v4175_v10 = vsel %vm632_vm4, %v7655_v32, %v4174_v40  ;;  %v4241_v20 = vsel %vm650_vm3, %v7682_v61, %v4240_v1  ;;  %v5768_v29 = vld [vmem:[#allocation3 + $0xa8] sm:$0xf]  ;;  %v6055_v59 = vld [vmem:[#allocation3 + $0xac] sm:$0xf]  ;;  %v5757_v32 = vor.u32 %v6053_v18, %v5756_v25  ;;  %v5804_v40 = vld [vmem:[#allocation3 + $0xf0] sm:$0xf]  ;;  %v5737_v1 = vor.u32 %v6046_v5, %v5734_v43 }
 0xa33   : > { %4190 = vst [vmem:[#allocation3 + $0x108] sm:$0xff] %v4175_v10  ;;  %v5769_v57 = vor.u32 %v6056_v9, %v5768_v29  ;;  %v5773_v58 = vor.u32 %v6055_v59, %v5770_v30  ;;  %v5792_v59 = vld [vmem:[#allocation3 + $0xd8] sm:$0xf]  ;;  %v6035_v5 = vld [vmem:[#allocation3 + $0x8] sm:$0xf0] }
 0xa34   : > { %4256 = vst [vmem:[#allocation3 + $0x144] sm:$0xff] %v4241_v20  ;;  %v6068_v49 = vld [vmem:[#allocation3 + $0x110] sm:$0xf0]  ;;  %v5720_v20 = vld [vmem:[#allocation3 + $0x48] sm:$0xf] }
 0xa35   : > { %4764 = vmatpush.bf16.msra.mxu0 %v5769_v57  ;;  %4803 = vmatpush.bf16.msrb.mxu3 %v5773_v58  ;;  %v6043_v57 = vld [vmem:[#allocation3 + $0x4c] sm:$0xf]  ;;  %v5686_v43 = vld [vmem:[#allocation3 + $0xc] sm:$0xf0] }
 0xa36   : > { %v3969_v0 = vpop.permute.xlu0 %3968  ;;  %v4347_v63 = vpop.permute.xlu1 %4346 }
 0xa37   : > { %v3977_v61 = vrot.slane %v3969_v0, 4  ;;  %4001 = vst.msk [vmem:[#allocation3 + $0x8c] sm:$0xf] %vm1057_vm13, %v3969_v0  ;;  %v4358_v55 = vrot.slane %v4347_v63, 4  ;;  %v7818_v6 = vpop.permute.xlu2 %4338  ;;  %v5780_v0 = vld [vmem:[#allocation3 + $0xc0] sm:$0xf] }
 0xa39   : > { %v3984_v16 = vsel %vm693_vm6, %v3976_v4, %v3977_v61  ;;  %v4366_v17 = vsel %vm693_vm6, %v4358_v55, %v4359_v28  ;;  %4765 = vmatpush.bf16.msra.mxu0 %v5757_v32  ;;  %4804 = vmatpush.bf16.msrb.mxu3 %v5761_v8  ;;  %v6059_v32 = vld [vmem:[#allocation3 + $0xc8] sm:$0xf0]  ;;  %v5708_v55 = vld [vmem:[#allocation3 + $0x30] sm:$0xf]  ;;  %v5710_v8 = vld [vmem:[#allocation3 + $0x3c] sm:$0xf0] }
 0xa3a   : > { %v3985_v42 = vsel %vm576_vm9, %v7665_v54, %v3984_v16  ;;  %v4367_v11 = vsel %vm687_vm5, %v4347_v63, %v4366_v17  ;;  %v5816_v22 = vld [vmem:[#allocation3 + $0x108] sm:$0xf]  ;;  %v6041_v63 = vld [vmem:[#allocation3 + $0x38] sm:$0xf0]  ;;  %v4466_v16 = vunpack.c.h.b16 %v3855_v51  ;;  %v4354_v17 = vrot.slane %v7818_v6, 4 }
 0xa3b   : > { %4000 = vst [vmem:[#allocation3 + $0x84] sm:$0xff] %v3985_v42  ;;  %v6074_v62 = vld [vmem:[#allocation3 + $0x140] sm:$0xf0]  ;;  %v5817_v21 = vor.u32 %v6068_v49, %v5816_v22  ;;  %v5696_v22 = vld [vmem:[#allocation3 + $0x18] sm:$0xf] }
 0xa3c   : > { %4382 = vst [vmem:[#allocation3 + $0x198] sm:$0xff] %v4367_v11  ;;  %v5841_v23 = vor.u32 %v6074_v62, %v5840_v2  ;;  %v5709_v62 = vor.u32 %v6041_v63, %v5708_v55  ;;  %v6079_v49 = vld [vmem:[#allocation3 + $0x16c] sm:$0xf] }
 0xa3e   : > { %4779 = vmatpush.bf16.msra.mxu1 %v5841_v23  ;;  %v4097_v7 = vpop.permute.xlu0 %4096  ;;  %v3905_v14 = vpop.permute.xlu1 %3904  ;;  %v5781_v23 = vor.u32 %v6059_v32, %v5780_v0  ;;  %v6081_v0 = vld [vmem:[#allocation3 + $0x178] sm:$0xf0] }
 0xa3f   : > { %v4105_v36 = vrot.slane %v4097_v7, 4  ;;  %4129 = vst.msk [vmem:[#allocation3 + $0xec] sm:$0xf] %vm1057_vm13, %v4097_v7  ;;  %v3913_v47 = vrot.slane %v3905_v14, 4  ;;  %v7828_v54 = vpop.permute.xlu2 %4344  ;;  %v5713_v7 = vor.u32 %v6040_v56, %v5710_v8  ;;  %v6054_v8 = vld [vmem:[#allocation3 + $0xa0] sm:$0xf0] }
 0xa40   : > { %3937 = vst.msk [vmem:[#allocation3 + $0x5c] sm:$0xf] %vm1057_vm13, %v3905_v14  ;;  %v4357_v42 = vrot.slane %v7828_v54, 4  ;;  %v6038_v14 = vld [vmem:[#allocation3 + $0x20] sm:$0xf0] }
 0xa41   : > { %v4112_v53 = vsel %vm693_vm6, %v4104_v3, %v4105_v36  ;;  %v3920_v41 = vsel %vm693_vm6, %v3912_v37, %v3913_v47  ;;  %4381 = vst.msk [vmem:[#allocation3 + $0x194] sm:$0xf] %vm1057_vm13, %v7828_v54  ;;  %v5698_v47 = vld [vmem:[#allocation3 + $0x24] sm:$0xf0]  ;;  %v5830_v56 = vld [vmem:[#allocation3 + $0x12c] sm:$0xf0] }
 0xa42   : > { %v4113_v33 = vsel %vm613_vm1, %v7676_v48, %v4112_v53  ;;  %v3921_v44 = vsel %vm558_vm7, %v7691_v13, %v3920_v41  ;;  %4780 = vmatpush.bf16.msra.mxu1 %v5829_v15  ;;  %v6050_v50 = vld [vmem:[#allocation3 + $0x80] sm:$0xf0]  ;;  %v5746_v27 = vld [vmem:[#allocation3 + $0x84] sm:$0xf0]  ;;  %v6065_v48 = vld [vmem:[#allocation3 + $0xf8] sm:$0xf0] }
 0xa43   : > { %4128 = vst [vmem:[#allocation3 + $0xe4] sm:$0xff] %v4113_v33  ;;  %v5745_v38 = vor.u32 %v6050_v50, %v5744_v46  ;;  %v5749_v31 = vor.u32 %v6049_v52, %v5746_v27  ;;  %v5805_v9 = vor.u32 %v6065_v48, %v5804_v40  ;;  %v5888_v36 = vld [vmem:[#allocation3 + $0x198] sm:$0xf]  ;;  %v6085_v53 = vld [vmem:[#allocation3 + $0x19c] sm:$0xf]  ;;  %v7853_v46 = vpack.c.b16 %v4466_v16, %v4466_v16 }
 0xa44   : > { %3936 = vst [vmem:[#allocation3 + $0x54] sm:$0xff] %v3921_v44  ;;  %v5697_v50 = vor.u32 %v6038_v14, %v5696_v22  ;;  %v6037_v52 = vld [vmem:[#allocation3 + $0x1c] sm:$0xf]  ;;  %v5866_v48 = vld [vmem:[#allocation3 + $0x174] sm:$0xf0] }
 0xa45   : > { %4766 = vmatpush.bf16.msra.mxu0 %v5745_v38  ;;  %4805 = vmatpush.bf16.msrb.mxu3 %v5749_v31  ;;  %v5701_v27 = vor.u32 %v6037_v52, %v5698_v47  ;;  %v6034_v38 = vld [vmem:[#allocation3 + $0x4] sm:$0xf]  ;;  %v3856_v31 = vld [vmem:[%s7916_s12 + $0x8] sm:$0xf]  ;;  %v5848_v47 = vld [vmem:[#allocation3 + $0x140] sm:$0xf] }
 0xa46   : > { %4781 = vmatpush.bf16.msra.mxu1 %v5817_v21  ;;  %v4351_v45 = vpop.permute.xlu0 %4350  ;;  %v4353_v13 = vpop.permute.xlu1 %4352  ;;  %v4467_v40 = vunpack.c.l.b16 %v3856_v31  ;;  %v6078_v16 = vld [vmem:[#allocation3 + $0x160] sm:$0xf0]  ;;  %v6072_v22 = vld [vmem:[#allocation3 + $0x130] sm:$0xf0] }
 0xa47   : > { %v4360_v39 = vrot.slane %v4351_v45, 4  ;;  %v4361_v19 = vrot.slane %v4353_v13, 4  ;;  %4385 = vst.msk [vmem:[#allocation3 + $0x1ac] sm:$0xf] %vm1057_vm13, %v4353_v13  ;;  %v5869_v13 = vor.u32 %v6079_v49, %v5866_v48  ;;  %v6064_v49 = vld [vmem:[#allocation3 + $0xf4] sm:$0xf] }
 0xa48   : > { %v4470_v63 = vpack.c.b16 %v4467_v40, %v4467_v40  ;;  %v5716_v40 = vld [vmem:[#allocation3 + $0x38] sm:$0xf] }
 0xa49   : > { %v4368_v10 = vsel %vm693_vm6, %v4360_v39, %v4361_v19  ;;  %4767 = vmatpush.bf16.msra.mxu0 %v5733_v26  ;;  %4806 = vmatpush.bf16.msrb.mxu3 %v5737_v1  ;;  %v5896_v39 = vld [vmem:[#allocation3 + $0x1a0] sm:$0xf]  ;;  %v7859_v19 = vpack.c.b16 %v4465_v12, %v4465_v12  ;;  %v6045_v12 = vld [vmem:[#allocation3 + $0x58] sm:$0xf0] }
 0xa4a   : > { %v4369_v29 = vsel %vm687_vm5, %v4351_v45, %v4368_v10  ;;  %4782 = vmatpush.bf16.msra.mxu1 %v5805_v9  ;;  %v6062_v30 = vld [vmem:[#allocation3 + $0xe0] sm:$0xf0]  ;;  %v5689_v45 = vor.u32 %v6034_v38, %v5686_v43  ;;  %v5854_v26 = vld [vmem:[#allocation3 + $0x15c] sm:$0xf0]  ;;  %v5824_v38 = vld [vmem:[#allocation3 + $0x110] sm:$0xf] }
 0xa4b   : > { %4384 = vst [vmem:[#allocation3 + $0x1a4] sm:$0xff] %v4369_v29  ;;  %v6044_v58 = vld [vmem:[#allocation3 + $0x50] sm:$0xf0]  ;;  %v5793_v18 = vor.u32 %v6062_v30, %v5792_v59  ;;  %v5722_v34 = vld [vmem:[#allocation3 + $0x54] sm:$0xf0] }
 0xa4c   : > { %v5721_v25 = vor.u32 %v6044_v58, %v5720_v20  ;;  %v5725_v4 = vor.u32 %v6043_v57, %v5722_v34  ;;  %v5872_v20 = vld [vmem:[#allocation3 + $0x170] sm:$0xf]  ;;  %v5794_v48 = vld [vmem:[#allocation3 + $0xe4] sm:$0xf0] }
 0xa4d   : > { %v5776_v30 = vld [vmem:[#allocation3 + $0xb0] sm:$0xf]  ;;  %v5873_v51 = vor.u32 %v6081_v0, %v5872_v20  ;;  %v6058_v20 = vld [vmem:[#allocation3 + $0xc4] sm:$0xf]  ;;  %v5788_v0 = vld [vmem:[#allocation3 + $0xc8] sm:$0xf] }
 0xa4e   : > { %4768 = vmatpush.bf16.msra.mxu0 %v5721_v25  ;;  %4783 = vmatpush.bf16.msra.mxu1 %v5793_v18  ;;  %v4341_v28 = vpop.permute.xlu0 %4340  ;;  %v4343_v61 = vpop.permute.xlu1 %4342  ;;  %v6087_v21 = vld [vmem:[#allocation3 + $0x1a8] sm:$0xf0]  ;;  %v6076_v18 = vld [vmem:[#allocation3 + $0x154] sm:$0xf] }
 0xa4f   : > { %4807 = vmatpush.bf16.msrb.mxu3 %v5725_v4  ;;  %v4355_v11 = vrot.slane %v4341_v28, 4  ;;  %4379 = vst.msk [vmem:[#allocation3 + $0x188] sm:$0xf] %vm1057_vm13, %v4341_v28  ;;  %v4356_v2 = vrot.slane %v4343_v61, 4  ;;  %v5897_v1 = vor.u32 %v6087_v21, %v5896_v39  ;;  %v5857_v25 = vor.u32 %v6076_v18, %v5854_v26  ;;  %v6057_v4 = vld [vmem:[#allocation3 + $0xb8] sm:$0xf0] }
 0xa50   : > { %v5777_v32 = vor.u32 %v6057_v4, %v5776_v30  ;;  %v6084_v28 = vld [vmem:[#allocation3 + $0x190] sm:$0xf0]  ;;  %v6069_v21 = vld [vmem:[#allocation3 + $0x118] sm:$0xf0]  ;;  %v6063_v30 = vld [vmem:[#allocation3 + $0xe8] sm:$0xf0] }
 0xa51   : > { %v4362_v3 = vsel %vm693_vm6, %v4354_v17, %v4355_v11  ;;  %v4364_v37 = vsel %vm693_vm6, %v4356_v2, %v4357_v42  ;;  %v6073_v17 = vld [vmem:[#allocation3 + $0x13c] sm:$0xf]  ;;  %v5764_v11 = vld [vmem:[#allocation3 + $0x98] sm:$0xf]  ;;  %v5825_v43 = vor.u32 %v6069_v21, %v5824_v38  ;;  %v5800_v18 = vld [vmem:[#allocation3 + $0xe0] sm:$0xf] }
 0xa52   : > { %v4363_v60 = vsel %vm687_vm5, %v7818_v6, %v4362_v3  ;;  %v4365_v54 = vsel %vm687_vm5, %v4343_v61, %v4364_v37  ;;  %4769 = vmatpush.bf16.msra.mxu0 %v5709_v62  ;;  %4784 = vmatpush.bf16.msra.mxu1 %v5781_v23  ;;  %v6086_v15 = vld [vmem:[#allocation3 + $0x1a0] sm:$0xf0]  ;;  %v5890_v41 = vld [vmem:[#allocation3 + $0x1a4] sm:$0xf0]  ;;  %v5684_v6 = vld [vmem:[#allocation3] sm:$0xf]  ;;  %v5765_v62 = vor.u32 %v6054_v8, %v5764_v11 }
 0xa53   : > { %4378 = vst [vmem:[#allocation3 + $0x180] sm:$0xff] %v4363_v60  ;;  %4808 = vmatpush.bf16.msrb.mxu3 %v5713_v7  ;;  %v5889_v33 = vor.u32 %v6086_v15, %v5888_v36  ;;  %v5893_v44 = vor.u32 %v6085_v53, %v5890_v41  ;;  %v5685_v24 = vor.u32 %v6035_v5, %v5684_v6  ;;  %v5842_v61 = vld [vmem:[#allocation3 + $0x144] sm:$0xf0]  ;;  %v5860_v2 = vld [vmem:[#allocation3 + $0x158] sm:$0xf] }
 0xa54   : > { %4380 = vst [vmem:[#allocation3 + $0x18c] sm:$0xff] %v4365_v54  ;;  %v5845_v42 = vor.u32 %v6073_v17, %v5842_v61  ;;  %v5861_v23 = vor.u32 %v6078_v16, %v5860_v2  ;;  %v6051_v3 = vld [vmem:[#allocation3 + $0x88] sm:$0xf0]  ;;  %v6070_v7 = vld [vmem:[#allocation3 + $0x124] sm:$0xf] }
 0xa55   : > { %4796 = vmatpush.bf16.msra.mxu2 %v5889_v33  ;;  %4785 = vmatmul.bf16.vlgmr.msra.gmra.mxu1 %v7853_v46  ;;  %v6075_v37 = vld [vmem:[#allocation3 + $0x148] sm:$0xf0]  ;;  %v5833_v14 = vor.u32 %v6070_v7, %v5830_v56  ;;  %v5752_v36 = vld [vmem:[#allocation3 + $0x80] sm:$0xf]  ;;  %v5740_v53 = vld [vmem:[#allocation3 + $0x68] sm:$0xf] }
 0xa56   : > { %4835 = vmatpush.bf16.msrb.mxu1 %v5893_v44  ;;  %4770 = vmatpush.bf16.msra.mxu0 %v5697_v50  ;;  %v5884_v34 = vld [vmem:[#allocation3 + $0x188] sm:$0xf]  ;;  %v5753_v60 = vor.u32 %v6051_v3, %v5752_v36  ;;  %v5849_v54 = vor.u32 %v6075_v37, %v5848_v47  ;;  %v6067_v15 = vld [vmem:[#allocation3 + $0x10c] sm:$0xf]  ;;  %v6048_v41 = vld [vmem:[#allocation3 + $0x70] sm:$0xf0]  ;;  %v4461_v11 = vpop.permute.xlu0 %4460 }
 0xa57   : > { %4809 = vmatpush.bf16.msrb.mxu3 %v5701_v27  ;;  %v5885_v55 = vor.u32 %v6084_v28, %v5884_v34  ;;  %v5818_v33 = vld [vmem:[#allocation3 + $0x114] sm:$0xf0]  ;;  %v5836_v50 = vld [vmem:[#allocation3 + $0x128] sm:$0xf]  ;;  %v5741_v52 = vor.u32 %v6048_v41, %v5740_v53  ;;  %v5806_v6 = vld [vmem:[#allocation3 + $0xfc] sm:$0xf0] }
 0xa58   : > { %v5821_v44 = vor.u32 %v6067_v15, %v5818_v33  ;;  %v5837_v27 = vor.u32 %v6072_v22, %v5836_v50  ;;  %v5809_v31 = vor.u32 %v6064_v49, %v5806_v6  ;;  %v5728_v5 = vld [vmem:[#allocation3 + $0x50] sm:$0xf]  ;;  %v6061_v39 = vld [vmem:[#allocation3 + $0xdc] sm:$0xf]  ;;  %v6036_v4 = vld [vmem:[#allocation3 + $0x10] sm:$0xf0]  ;;  %v4887_v50 = vstv %s4883_s27 }
 0xa59   : > { %v5797_v26 = vor.u32 %v6061_v39, %v5794_v48  ;;  %v4881_v61 = vld [vmem:[%s7906_s2] sm:$0xff]  ;;  %v4903_v7 = vld.sshfl [vmem:[#allocation1 + $0x10] sm:$0xff pattern:$0x75316420] }
 0xa5a   : > { %4771 = vmatpush.bf16.msra.mxu0 %v5685_v24  ;;  %v5876_v9 = vld [vmem:[#allocation3 + $0x180] sm:$0xf]  ;;  %v6082_v10 = vld [vmem:[#allocation3 + $0x184] sm:$0xf]  ;;  %v5729_v24 = vor.u32 %v6045_v12, %v5728_v5  ;;  %4898 = vst [vmem:[#allocation1] ss:$2 sm:$0xff] %v4881_v61  ;;  %v4892_v12 = vstv %s5901_s29 }
 0xa5b   : > { %4810 = vmatpush.bf16.msrb.mxu3 %v5689_v45  ;;  %v6083_v29 = vld [vmem:[#allocation3 + $0x188] sm:$0xf0]  ;;  %v5878_v59 = vld [vmem:[#allocation3 + $0x18c] sm:$0xf0]  ;;  %v6042_v45 = vld [vmem:[#allocation3 + $0x40] sm:$0xf0] }
 0xa5c   : > { %v5877_v57 = vor.u32 %v6083_v29, %v5876_v9  ;;  %v5881_v58 = vor.u32 %v6082_v10, %v5878_v59  ;;  %v5717_v9 = vor.u32 %v6042_v45, %v5716_v40  ;;  %v5782_v29 = vld [vmem:[#allocation3 + $0xcc] sm:$0xf0]  ;;  %v6039_v59 = vld [vmem:[#allocation3 + $0x28] sm:$0xf0]  ;;  %4936 = vst [vmem:[#allocation1 + $0x11] ss:$2 sm:$0xff] %v6335_v35 }
 0xa5d   : > { %4772 = vmatmul.bf16.vlgmr.msra.gmra.mxu0 %v7859_v19 }
 0xa5e   : > { %4816 = vmatpush.bf16.msrb.mxu0 %v5869_v13  ;;  %4811 = vmatmul.bf16.vlgmr.msrb.gmra.mxu3 %v7859_v19  ;;  %v6066_v13 = vld [vmem:[#allocation3 + $0x100] sm:$0xf0] }
 0xa5f   : > { %4874 = vmatpush.bf16.msra.mxu3 %v5897_v1  ;;  %4797 = vmatpush.bf16.msra.mxu2 %v5877_v57  ;;  %v5812_v1 = vld [vmem:[#allocation3 + $0xf8] sm:$0xf]  ;;  %v5785_v57 = vor.u32 %v6058_v20, %v5782_v29 }
 0xa60   : > { %4836 = vmatpush.bf16.msrb.mxu1 %v5881_v58  ;;  %v5813_v10 = vor.u32 %v6066_v13, %v5812_v1  ;;  %v5704_v58 = vld [vmem:[#allocation3 + $0x20] sm:$0xf] }
 0xa61   : > { %v5705_v34 = vor.u32 %v6039_v59, %v5704_v58  ;;  %v4902_v8 = vld.sshfl [vmem:[#allocation1 + $0x8] sm:$0xff pattern:$0x75316420] }
 0xa62   : > { %4817 = vmatpush.bf16.msrb.mxu0 %v5857_v25  ;;  %5898 = vmatmul.msk.bf16.vlgmr.msra.gmra.mxu2 %vm883_vm11, %v4470_v63  ;;  %v5801_v25 = vor.u32 %v6063_v30, %v5800_v18 }
 0xa63   : > { %4842 = vmatpush.bf16.msrb.mxu2 %v5777_v32  ;;  %4875 = vmatpush.bf16.msra.mxu3 %v5885_v55  ;;  %v5692_v32 = vld [vmem:[#allocation3 + $0x8] sm:$0xf] }
 0xa64   : > { %4855 = vmatpush.bf16.msra.mxu1 %v5873_v51  ;;  %v5693_v51 = vor.u32 %v6036_v4, %v5692_v32  ;;  %v4901_v55 = vld.sshfl [vmem:[#allocation1] sm:$0xff pattern:$0x75316420] }
 0xa65   : > { %5899 = vmatmul.msk.bf16.vlgmr.msrb.gmra.mxu1 %vm883_vm11, %v4470_v63  ;;  %4934 = vst [vmem:[#allocation1 + $0x1] ss:$2 sm:$0xff] %v4881_v61 }
 0xa66   : > { %4818 = vmatpush.bf16.msrb.mxu0 %v5845_v42 }
 0xa67   : > { %4843 = vmatpush.bf16.msrb.mxu2 %v5765_v62 }
 0xa68   : > { %4856 = vmatpush.bf16.msra.mxu1 %v5861_v23 }
 0xa6a   : > { %4819 = vmatpush.bf16.msrb.mxu0 %v5833_v14 }
 0xa6b   : > { %4844 = vmatpush.bf16.msrb.mxu2 %v5753_v60 }
 0xa6c   : > { %4857 = vmatpush.bf16.msra.mxu1 %v5849_v54  ;;  %v4937_v37 = vld.sshfl [vmem:[#allocation1] sm:$0xff pattern:$0x75316420]  ;;  %v4938_v22 = vld.sshfl [vmem:[#allocation1 + $0x8] sm:$0xff pattern:$0x75316420] }
 0xa6e   : > { %4820 = vmatpush.bf16.msrb.mxu0 %v5821_v44  ;;  %5900 = vmatmul.msk.bf16.vlgmr.msra.gmra.mxu3 %vm883_vm11, %v4470_v63  ;;  %v6060_v63 = vld [vmem:[#allocation3 + $0xd0] sm:$0xf0] }
 0xa6f   : > { %4845 = vmatpush.bf16.msrb.mxu2 %v5741_v52  ;;  %v5789_v28 = vor.u32 %v6060_v63, %v5788_v0 }
 0xa70   : > { %4858 = vmatpush.bf16.msra.mxu1 %v5837_v27 }
 0xa72   : > { %4821 = vmatpush.bf16.msrb.mxu0 %v5809_v31 }
 0xa73   : > { %4846 = vmatpush.bf16.msrb.mxu2 %v5729_v24 }
 0xa74   : > { %4859 = vmatpush.bf16.msra.mxu1 %v5825_v43 }
 0xa76   : > { %4822 = vmatpush.bf16.msrb.mxu0 %v5797_v26  ;;  %v4939_v26 = vld.sshfl [vmem:[#allocation1 + $0x10] sm:$0xff pattern:$0x75316420] }
 0xa77   : > { %4847 = vmatpush.bf16.msrb.mxu2 %v5717_v9 }
 0xa78   : > { %4860 = vmatpush.bf16.msra.mxu1 %v5813_v10 }
 0xa7a   : > { %4823 = vmatpush.bf16.msrb.mxu0 %v5785_v57 }
 0xa7b   : > { %4848 = vmatpush.bf16.msrb.mxu2 %v5705_v34 }
 0xa7c   : > { %4861 = vmatpush.bf16.msra.mxu1 %v5801_v25 }
 0xa7d   : > { %4824 = vmatmul.bf16.vlgmr.msrb.gmra.mxu0 %v7853_v46 }
 0xa7f   : > { %4849 = vmatpush.bf16.msrb.mxu2 %v5693_v51 }
 0xa80   : > { %4862 = vmatpush.bf16.msra.mxu1 %v5789_v28 }
 0xa82   : > { %4850 = vmatmul.bf16.vlgmr.msrb.gmra.mxu2 %v7859_v19 }
 0xa83   : > { %4863 = vmatmul.bf16.vlgmr.msra.gmra.mxu1 %v7853_v46 }
 0xad2   : > { %v4786_v16 = vpop.f32.mrf.mxu1 }
 0xada   : > { %v4773_v17 = vpop.f32.mrf.mxu0  ;;  %v4788_v42 = vpop.f32.mrf.mxu1 }
 0xadb   : > { %v4774_v2 = vadd.f32 %v4773_v17, %v4461_v11 }
 0xadd   : > { %v4787_v56 = vadd.f32 %v4786_v16, %v4774_v2  ;;  %v6174_v2 = vld [vmem:[%s6317_s16] sm:$0xff] }
 0xae1   : > { %v4812_v62 = vpop.f32.mrf.mxu3 }
 0xae2   : > { %v4775_v23 = vpop.f32.mrf.mxu0  ;;  %v4838_v3 = vpop.f32.mrf.mxu1  ;;  %v4813_v15 = vadd.f32 %v4812_v62, %v4461_v11 }
 0xae5   : > { %v4799_v19 = vpop.f32.mrf.mxu2 }
 0xae6   : > { %v4800_v46 = vadd.f32 %v4799_v19, %v4787_v56  ;;  %v6175_v19 = vld [vmem:[%s6317_s16 + $0x8] sm:$0xf]  ;;  %s6089_s16 = smul.u32 24, %s7963_s19 }
 0xae8   : > { %v4943_v14 = vmul.f32 %v4937_v37, %v4800_v46  ;;  %6162 = vtanh.f32 %v4800_v46  ;;  %s508_s23 = scalar_lea.vmem %s7919_s15, %s6089_s16 }
 0xae9   : > { %v4814_v36 = vpop.f32.mrf.mxu3 }
 0xaea   : > { %4949 = vst.sshfl [vmem:[#allocation1] sm:$0xff pattern:$0x75316420] %v4943_v14  ;;  %v4840_v47 = vpop.f32.mrf.mxu1 }
 0xaed   : > { %v4801_v60 = vpop.f32.mrf.mxu2 }
 0xaee   : > { %v6163_v44 = vpop.eup %6162 }
 0xaef   : > { %v4888_v6 = vmul.f32 %v6163_v44, %v4887_v50 }
 0xaf1   : > { %v4877_v54 = vpop.f32.mrf.mxu3  ;;  %v4893_v49 = vadd.f32 %v4892_v12, %v4888_v6 }
 0xaf3   : > { %v4907_v48 = vmul.f32 %v4901_v55, %v4893_v49 }
 0xaf5   : > { %v4910_v9 = vmul.f32 1.442695, %v4907_v48  ;;  %v4981_v61 = vrot.slane %v4907_v48, 4 }
 0xaf9   : > { %v4879_v33 = vpop.f32.mrf.mxu3 }
 0xafa   : > { %v4825_v53 = vpop.f32.mrf.mxu0 }
 0xafb   : > { %v4826_v41 = vadd.f32 %v4825_v53, %v4813_v15 }
 0xafd   : > { %v4839_v52 = vadd.f32 %v4838_v3, %v4826_v41 }
 0xaff   : > { %6164 = vtanh.f32 %v4839_v52  ;;  %v4944_v27 = vmul.f32 %v4938_v22, %v4839_v52 }
 0xb00   : > { %v4864_v35 = vpop.f32.mrf.mxu1 }
 0xb01   : > { %4950 = vst.sshfl [vmem:[#allocation1 + $0x8] sm:$0xff pattern:$0x75316420] %v4944_v27 }
 0xb02   : > { %v4827_v38 = vpop.f32.mrf.mxu0 }
 0xb05   : > { %v6165_v31 = vpop.eup %6164  ;;  %v4851_v5 = vpop.f32.mrf.mxu2 }
 0xb06   : > { %v4889_v21 = vmul.f32 %v6165_v31, %v4887_v50  ;;  %v4852_v24 = vadd.f32 %v4851_v5, %v4461_v11 }
 0xb08   : > { %v4866_v43 = vpop.f32.mrf.mxu1  ;;  %v4865_v45 = vadd.f32 %v4864_v35, %v4852_v24  ;;  %v4953_v13 = vld [vmem:[#allocation1 + $0x1] ss:$2 sm:$0xff]  ;;  %v4894_v39 = vadd.f32 %v4892_v12, %v4889_v21 }
 0xb09   : > { %4956 = vrot.lane.b32.xlu0 %v4953_v13, %s6213_s24 }
 0xb0a   : > { %v4878_v40 = vadd.f32 %v4877_v54, %v4865_v45  ;;  %v4908_v1 = vmul.f32 %v4902_v8, %v4894_v39 }
 0xb0c   : > { %6166 = vtanh.f32 %v4878_v40  ;;  %v4945_v10 = vmul.f32 %v4939_v26, %v4878_v40  ;;  %v4912_v20 = vmul.f32 1.442695, %v4908_v1  ;;  %v4982_v59 = vrot.slane %v4908_v1, 4 }
 0xb0d   : > { %v4853_v29 = vpop.f32.mrf.mxu2 }
 0xb0e   : > { %4951 = vst.sshfl [vmem:[#allocation1 + $0x10] sm:$0xff pattern:$0x75316420] %v4945_v10  ;;  %6168 = vpow2.f32 %v4912_v20 }
 0xb0f   : > { %6170 = vpow2.f32 %v4910_v9 }
 0xb11   : > { %4986 = vrot.lane.b32.xlu0 %v4982_v59, %s6213_s24 }
 0xb12   : > { %v6167_v30 = vpop.eup %6166 }
 0xb13   : > { %v4890_v57 = vmul.f32 %v6167_v30, %v4887_v50 }
 0xb14   : > { %v6169_v58 = vpop.eup %6168 }
 0xb15   : > { %v4895_v18 = vadd.f32 %v4892_v12, %v4890_v57  ;;  %v4919_v34 = vrot.slane %v6169_v58, 4  ;;  %v6171_v25 = vpop.eup %6170  ;;  %v4955_v32 = vld [vmem:[#allocation1 + $0x11] ss:$2 sm:$0xff] }
 0xb17   : > { %v4909_v4 = vmul.f32 %v4903_v7, %v4895_v18  ;;  %v4920_v0 = vsel %vm693_vm6, %v6171_v25, %v4919_v34 }
 0xb18   : > { %4921 = vrot.lane.b32.xlu1 %v4920_v0, %s6213_s24 }
 0xb19   : > { %v4914_v63 = vmul.f32 1.442695, %v4909_v4  ;;  %v4983_v28 = vrot.slane %v4909_v4, 4 }
 0xb1b   : > { %6172 = vpow2.f32 %v4914_v63 }
 0xb20   : > { %4958 = vrot.lane.b32.xlu1 %v4955_v32, %s6213_s24 }
 0xb21   : > { %v6173_v51 = vpop.eup %6172 }
 0xb22   : > { %4923 = vrot.lane.b32.xlu2 %v6173_v51, %s6213_s24 }
 0xb28   : > { %4988 = vrot.lane.b32.xlu1 %v4983_v28, %s6213_s24 }
 0xb2a   : > { %4984 = vrot.lane.b32.xlu2 %v4981_v61, %s6213_s24 }
 0xb7b   : > { %v4957_v55 = vpop.permute.xlu0 %4956 }
 0xb7c   : > { %v4960_v16 = vrot.slane %v4957_v55, 4  ;;  %v4924_v42 = vpop.permute.xlu2 %4923 }
 0xb7e   : > { %v4961_v23 = vsel %vm1007_vm0, %v4960_v16, %v4957_v55 }
 0xb83   : > { %v4987_v36 = vpop.permute.xlu0 %4986 }
 0xb84   : > { %v4985_v47 = vpop.permute.xlu2 %4984 }
 0xb85   : > { %v4990_v60 = vsel %vm1007_vm0, %v4985_v47, %v4987_v36 }
 0xb8a   : > { %v4922_v8 = vpop.permute.xlu1 %4921 }
 0xb8b   : > { %v4925_v17 = vrot.slane %v4922_v8, 4 }
 0xb8d   : > { %v4927_v11 = vsel %vm1007_vm0, %v4925_v17, %v4922_v8  ;;  %v4928_v56 = vsel %vm1007_vm0, %v4925_v17, %v4924_v42 }
 0xb8e   : > { %v4931_v62 = vmul.f32 %v6174_v2, %v4927_v11  ;;  %v4932_v37 = vmul.f32 %v6175_v19, %v4928_v56 }
 0xb90   : > { %v4965_v3 = vadd.f32 %v4961_v23, %v4931_v62 }
 0xb92   : > { %4969 = vst [vmem:[#allocation1] ss:$2 sm:$0xff] %v4965_v3  ;;  %v4959_v46 = vpop.permute.xlu1 %4958 }
 0xb93   : > { %v4962_v7 = vsel %vm1007_vm0, %v4960_v16, %v4959_v46 }
 0xb94   : > { %v4966_v14 = vadd.f32 %v4962_v7, %v4932_v37 }
 0xb96   : > { %4971 = vst [vmem:[#allocation1 + $0x10] ss:$2 sm:$0xff] %v4966_v14 }
 0xb99   : > { %v4973_v54 = vld.sshfl [vmem:[#allocation1 + $0x8] sm:$0xff pattern:$0x75316420]  ;;  %v4972_v15 = vld.sshfl [vmem:[#allocation1] sm:$0xff pattern:$0x75316420] }
 0xb9a   : > { %v4989_v53 = vpop.permute.xlu1 %4988  ;;  %v4996_v41 = vsel %vm693_vm6, %v4973_v54, %v4990_v60  ;;  %v4995_v22 = vsel %vm693_vm6, %v4972_v15, %v4985_v47 }
 0xb9b   : > { %5003 = vrot.lane.b32.xlu0 %v4996_v41, %s7958_s25  ;;  %5001 = vrot.lane.b32.xlu2 %v4995_v22, %s7958_s25  ;;  %v4991_v33 = vsel %vm1007_vm0, %v4987_v36, %v4989_v53 }
 0xb9d   : > { %v4974_v44 = vld.sshfl [vmem:[#allocation1 + $0x10] sm:$0xff pattern:$0x75316420] }
 0xb9e   : > { %v4997_v50 = vsel %vm693_vm6, %v4974_v44, %v4991_v33 }
 0xb9f   : > { %5005 = vrot.lane.b32.xlu1 %v4997_v50, %s7958_s25 }
 0xbf5   : > { %v5002_v52 = vpop.permute.xlu2 %5001 }
 0xc0d   : > { %v5004_v27 = vpop.permute.xlu0 %5003 }
 0xc0e   : > { %v5007_v35 = vsel %vm613_vm1, %v5002_v52, %v5004_v27 }
 0xc0f   : > { %5012 = vst [vmem:[%s508_s23] sm:$0xff] %v5007_v35 }
 0xc11   : > { %v5006_v6 = vpop.permute.xlu1 %5005 }
 0xc12   : > { %v5008_v12 = vsel %vm613_vm1, %v5004_v27, %v5006_v6  ;;  %5015 = vst.msk [vmem:[%s508_s23 + $0x10] sm:$0xff] %vm5014_vm2, %v5006_v6 }
 0xc13   : > { %5013 = vst [vmem:[%s508_s23 + $0x8] sm:$0xff] %v5008_v12 }
 0xc14 PF: > { %s26_s18 = sadd.s32 1, %s6201_s18  }
 0xc15   : > { %p23_p7 = scmp.ge.s32.totalorder %s26_s18, 4  }
 0xc17   :  { %25 = sbr.rel (!%p23_p7) target bundleno = 1 (0x1), region = 140 }
 0xc1c   :  { %5037 = vsyncpa [#allocation5], 1 }
 0xc1d   :  { %5039 = vsyncpa [#allocation5 + $0x1], 1 }

</bundles_post_ra>
